<compile_context>
chip_gen: v6e
topology: v6e:2x2x1
jax: 0.10.0
libtpu: 0.0.40
codegen_flags: <defaults>
</compile_context>

<pallas_src>
import math
from functools import partial

import numpy as np
import jax
import jax.numpy as jnp
from jax import lax
from jax.experimental import pallas as pl
from jax.experimental.pallas import tpu as pltpu

COMPUTE_DTYPE = jnp.bfloat16      # inter-layer storage / matmul-input dtype
ACC_DTYPE = jnp.float32           # MXU accumulation + epilogue dtype
VMEM_LIMIT = 48 * 1024 * 1024     # explicit budget, fits v7x's 64 MiB VMEM


# ---------------------------------------------------------------------------
# Pallas kernels
# ---------------------------------------------------------------------------
def _conv1_pool_kernel(x_ref, wc_ref, b_ref, o_ref, acc_ref, *,
                       m_rows, wh, ho_out, wo_out):
    """Fused rpad1 + conv1(1->32, 3x3) + ReLU + maxpool2x2 (space-to-depth).

    x_ref : (L1, 4)  bf16  2x2 space-to-depth planes of the padded image,
                           rows flattened over a (H/2+2, W/2+1) grid.
    wc_ref: (4, 16, 32)    per pool-corner weights (scattered 3x3 taps).
    b_ref : (1, 32)  f32
    o_ref : (ho_out, wo_out, 32) bf16  pooled output, valid pixels only.
    acc_ref: (m_rows, 32) f32 scratch, m_rows = (H/2)*(W/2+1).
    """
    offs = [a * wh + b for a in (0, 1) for b in (0, 1)]       # (a, b) 2x2 window
    slabs = [x_ref[o:o + m_rows, :] for o in offs]            # 4 x (M, 4)
    best = None
    for r in range(4):                                        # 4 pool corners
        wcr = wc_ref[r]                                       # (16, 32)
        acc = b_ref[...]
        for k in range(4):                                    # 2x2 window of X2
            acc = acc + jnp.dot(slabs[k], wcr[k * 4:(k + 1) * 4, :],
                                preferred_element_type=ACC_DTYPE)
        best = acc if best is None else jnp.maximum(best, acc)
    acc_ref[...] = jnp.maximum(best, 0.0)                     # ReLU (max commutes)

    def body(r, carry):                                       # drop garbage col
        o_ref[r] = acc_ref[pl.ds(r * wh, wo_out), :].astype(o_ref.dtype)
        return carry

    lax.fori_loop(0, ho_out, body, 0)


def _conv3x3_relu_pool_kernel(x_ref, w_ref, b_ref, o_ref, acc_ref, col_ref, *,
                              m_rows, wp, cin, wo_out, ho_out):
    """Fused rpad + conv3x3 + bias + ReLU + maxpool2x2 for one image.

    x_ref  : (L, cin) bf16   row-flattened padded NHWC image (row length wp).
    w_ref  : (9*cin, cout) bf16, b_ref: (1, cout) f32.
    o_ref  : (ho_out, wo_out, cout) bf16   pooled output (no garbage cols).
    acc_ref: (m_rows, cout) f32 scratch; col_ref: (m_rows//2, cout) f32 scratch.
    """
    taps = [(dy, dx) for dy in range(3) for dx in range(3)]
    acc = b_ref[...]
    for t, (dy, dx) in enumerate(taps):
        off = dy * wp + dx
        acc = acc + jnp.dot(x_ref[off:off + m_rows, :],
                            w_ref[t * cin:(t + 1) * cin, :],
                            preferred_element_type=ACC_DTYPE)
    acc_ref[...] = jnp.maximum(acc, 0.0)

    # 2x2/2 max pool: column pairs first (stride-2 sublane reads), then rows.
    m_half = m_rows // 2
    col_ref[...] = jnp.maximum(acc_ref[pl.ds(0, m_half, stride=2), :],
                               acc_ref[pl.ds(1, m_half, stride=2), :])
    wph = wp // 2

    def body(ho, carry):
        top = col_ref[pl.ds((2 * ho) * wph, wo_out), :]
        bot = col_ref[pl.ds((2 * ho + 1) * wph, wo_out), :]
        o_ref[ho] = jnp.maximum(top, bot).astype(o_ref.dtype)
        return carry

    lax.fori_loop(0, ho_out, body, 0)


def _conv3x3_relu_fconv_kernel(x_ref, w_ref, b_ref, wf_ref, bf_ref, o_ref, *,
                               m_rows, wp, cin):
    """Fused rpad + conv3(64->128, 3x3) + ReLU + 1x1 fconv(128->1)."""
    taps = [(dy, dx) for dy in range(3) for dx in range(3)]
    acc = b_ref[...]
    for t, (dy, dx) in enumerate(taps):
        off = dy * wp + dx
        acc = acc + jnp.dot(x_ref[off:off + m_rows, :],
                            w_ref[t * cin:(t + 1) * cin, :],
                            preferred_element_type=ACC_DTYPE)
    acc = jnp.maximum(acc, 0.0)                               # (M, 128) f32
    out = jnp.sum(acc * wf_ref[...], axis=1, keepdims=True) + bf_ref[...]
    o_ref[...] = out.astype(o_ref.dtype)


# ---------------------------------------------------------------------------
# pallas_call wrappers (grid over batch, "parallel" => both TCs on v7x)
# ---------------------------------------------------------------------------
def _compiler_params():
    return pltpu.CompilerParams(dimension_semantics=("parallel",),
                                vmem_limit_bytes=VMEM_LIMIT)


def conv1_relu_pool(x2f, wc, b1, *, H, W):
    N, L1, _ = x2f.shape
    wh = W // 2 + 1
    m_rows = (H // 2) * wh
    ho_out, wo_out = H // 2, W // 2
    kernel = partial(_conv1_pool_kernel, m_rows=m_rows, wh=wh,
                     ho_out=ho_out, wo_out=wo_out)
    return pl.pallas_call(
        kernel,
        out_shape=jax.ShapeDtypeStruct((N, ho_out, wo_out, 32), COMPUTE_DTYPE),
        grid=(N,),
        in_specs=[
            pl.BlockSpec((None, L1, 4), lambda n: (n, 0, 0)),
            pl.BlockSpec((4, 16, 32), lambda n: (0, 0, 0)),
            pl.BlockSpec((1, 32), lambda n: (0, 0)),
        ],
        out_specs=pl.BlockSpec((None, ho_out, wo_out, 32),
                               lambda n: (n, 0, 0, 0)),
        scratch_shapes=[pltpu.VMEM((m_rows, 32), ACC_DTYPE)],
        compiler_params=_compiler_params(),
    )(x2f, wc, b1)


def conv3x3_relu_pool(xf, w, b, *, H, W, cin, cout):
    N, L, _ = xf.shape
    wp = W + 2
    m_rows = H * wp
    wo_out, ho_out = W // 2, H // 2
    kernel = partial(_conv3x3_relu_pool_kernel, m_rows=m_rows, wp=wp, cin=cin,
                     wo_out=wo_out, ho_out=ho_out)
    return pl.pallas_call(
        kernel,
        out_shape=jax.ShapeDtypeStruct((N, ho_out, wo_out, cout), COMPUTE_DTYPE),
        grid=(N,),
        in_specs=[
            pl.BlockSpec((None, L, cin), lambda n: (n, 0, 0)),
            pl.BlockSpec((9 * cin, cout), lambda n: (0, 0)),
            pl.BlockSpec((1, cout), lambda n: (0, 0)),
        ],
        out_specs=pl.BlockSpec((None, ho_out, wo_out, cout),
                               lambda n: (n, 0, 0, 0)),
        scratch_shapes=[
            pltpu.VMEM((m_rows, cout), ACC_DTYPE),
            pltpu.VMEM((m_rows // 2, cout), ACC_DTYPE),
        ],
        compiler_params=_compiler_params(),
    )(xf, w, b)


def conv3x3_relu_fconv(xf, w, b, wf_row, bf, *, H, W, cin, cout):
    N, L, _ = xf.shape
    wp = W + 2
    m_rows = H * wp
    kernel = partial(_conv3x3_relu_fconv_kernel, m_rows=m_rows, wp=wp, cin=cin)
    return pl.pallas_call(
        kernel,
        out_shape=jax.ShapeDtypeStruct((N, m_rows, 1), jnp.float32),
        grid=(N,),
        in_specs=[
            pl.BlockSpec((None, L, cin), lambda n: (n, 0, 0)),
            pl.BlockSpec((9 * cin, cout), lambda n: (0, 0)),
            pl.BlockSpec((1, cout), lambda n: (0, 0)),
            pl.BlockSpec((1, cout), lambda n: (0, 0)),
            pl.BlockSpec((1, 1), lambda n: (0, 0)),
        ],
        out_specs=pl.BlockSpec((None, m_rows, 1), lambda n: (n, 0, 0)),
        compiler_params=_compiler_params(),
    )(xf, w, b, wf_row, bf)


# ---------------------------------------------------------------------------
# Wrapper-side glue (pad / rearrange only, no math)
# ---------------------------------------------------------------------------
def _edge_pad_hw(x, pad_h, pad_w):
    if x.ndim == 3:
        return jnp.pad(x, ((0, 0), pad_h, pad_w), mode="edge")
    return jnp.pad(x, ((0, 0), pad_h, pad_w, (0, 0)), mode="edge")


def _space_to_depth2(xp):
    """(N, Hp, Wp) -> (N, Hp//2, Wp//2, 4), phase order (py, px)."""
    return jnp.stack([xp[:, py::2, px::2] for py in (0, 1) for px in (0, 1)],
                     axis=-1)


def _conv1_corner_weights(w1, dtype):
    """Scatter the 3x3 conv1 taps into 4 per-pool-corner (16, 32) matrices.

    Patch feature layout: f = (a*2 + b)*4 + (py*2 + px), where (a, b) indexes
    the 2x2 space-to-depth neighbourhood and (py, px) the phase plane.
    Built as one static gather + mask (no per-element scatters in the graph).
    """
    w1q = w1[:, :, 0, :]                                      # (3, 3, 32) f32
    src_dy = np.zeros((4, 16), np.int32)
    src_dx = np.zeros((4, 16), np.int32)
    valid = np.zeros((4, 16), bool)
    for ry in range(2):
        for rx in range(2):
            r = ry * 2 + rx
            for a in range(2):
                for b in range(2):
                    for py in range(2):
                        for px in range(2):
                            f = (a * 2 + b) * 4 + py * 2 + px
                            dy, dx = 2 * a + py - ry, 2 * b + px - rx
                            if 0 <= dy <= 2 and 0 <= dx <= 2:
                                src_dy[r, f] = dy
                                src_dx[r, f] = dx
                                valid[r, f] = True
    gathered = w1q[src_dy, src_dx, :]                         # (4, 16, 32)
    wc = jnp.where(jnp.asarray(valid)[..., None], gathered, 0.0)
    return wc.astype(dtype)


# ---------------------------------------------------------------------------
# Parameters (xavier_uniform weights, zero biases), deterministic
# ---------------------------------------------------------------------------
def xavier_uniform(key, kh, kw, cin, cout):
    fan_in = cin * kh * kw
    fan_out = cout * kh * kw
    bound = math.sqrt(6.0 / (fan_in + fan_out))
    return jax.random.uniform(key, (kh, kw, cin, cout), jnp.float32, -bound, bound)


def init_params(key):
    k1, k2, k3, k4 = jax.random.split(key, 4)
    return {
        "w1": xavier_uniform(k1, 3, 3, 1, 32),    # conv1, HWIO
        "b1": jnp.zeros((32,), jnp.float32),
        "w2": xavier_uniform(k2, 3, 3, 32, 64),   # conv2
        "b2": jnp.zeros((64,), jnp.float32),
        "w3": xavier_uniform(k3, 3, 3, 64, 128),  # conv3
        "b3": jnp.zeros((128,), jnp.float32),
        "wf": xavier_uniform(k4, 1, 1, 128, 1),   # fconv (1x1)
        "bf": jnp.zeros((1,), jnp.float32),
    }


# ---------------------------------------------------------------------------
# Forward pass (Pallas) and matching-precision pure-JAX reference
# ---------------------------------------------------------------------------
def video_comperator_forward(sim_nchw, params):
    N, C, H, W = sim_nchw.shape
    assert C == 1 and H % 4 == 0 and W % 4 == 0, (
        "kernels assume 1 input channel and H, W divisible by 4")
    dt = COMPUTE_DTYPE
    x = sim_nchw[:, 0, :, :].astype(dt)                       # (N, H, W)

    # block 1: rpad1 -> conv1(1->32) -> ReLU -> pool1   (one fused kernel)
    xp1 = _edge_pad_hw(x, (1, 3), (1, 1))                     # (N, H+4, W+2)
    x2 = _space_to_depth2(xp1)                                # (N, H/2+2, W/2+1, 4)
    wh1 = W // 2 + 1
    x2f = x2.reshape(N, (H // 2 + 2) * wh1, 4)
    wc = _conv1_corner_weights(params["w1"], dt)
    b1 = params["b1"].reshape(1, 32).astype(jnp.float32)
    y1 = conv1_relu_pool(x2f, wc, b1, H=H, W=W)               # (N, H/2, W/2, 32)

    # block 2: rpad2 -> conv2(32->64) -> ReLU -> pool2   (one fused kernel)
    H2, W2 = H // 2, W // 2
    xp2 = _edge_pad_hw(y1, (1, 2), (1, 1))                    # (N, H2+3, W2+2, 32)
    x2f2 = xp2.reshape(N, (H2 + 3) * (W2 + 2), 32)
    w2 = params["w2"].reshape(9 * 32, 64).astype(dt)
    b2 = params["b2"].reshape(1, 64).astype(jnp.float32)
    y2 = conv3x3_relu_pool(x2f2, w2, b2, H=H2, W=W2, cin=32, cout=64)

    # block 3: rpad3 -> conv3(64->128) -> ReLU -> fconv(128->1)  (one kernel)
    H3, W3 = H2 // 2, W2 // 2
    xp3 = _edge_pad_hw(y2, (1, 2), (1, 1))                    # (N, H3+3, W3+2, 64)
    x3f = xp3.reshape(N, (H3 + 3) * (W3 + 2), 64)
    w3 = params["w3"].reshape(9 * 64, 128).astype(dt)
    b3 = params["b3"].reshape(1, 128).astype(jnp.float32)
    wf_row = params["wf"].reshape(1, 128).astype(jnp.float32)
    bf = params["bf"].reshape(1, 1).astype(jnp.float32)
    z = conv3x3_relu_fconv(x3f, w3, b3, wf_row, bf, H=H3, W=W3, cin=64, cout=128)
    z = z.reshape(N, H3, W3 + 2, 1)[:, :, :W3, :]             # drop garbage cols
    return jnp.transpose(z, (0, 3, 1, 2))                     # (N, 1, H/4, W/4)


def reference_forward(sim_nchw, params):
    """Pure-JAX reference with the same bf16 storage points as the kernels."""
    dt = COMPUTE_DTYPE
    x = jnp.transpose(sim_nchw, (0, 2, 3, 1)).astype(dt)      # NHWC (N, H, W, 1)

    def rpad(a):
        return jnp.pad(a, ((0, 0), (1, 1), (1, 1), (0, 0)), mode="edge")

    def conv(a, w, b):
        return lax.conv_general_dilated(
            a, w.astype(a.dtype), (1, 1), "VALID",
            dimension_numbers=("NHWC", "HWIO", "NHWC"),
            preferred_element_type=jnp.float32) + b

    def pool(a):
        return lax.reduce_window(a, -jnp.inf, lax.max,
                                 (1, 2, 2, 1), (1, 2, 2, 1), "VALID")

    y = pool(jax.nn.relu(conv(rpad(x), params["w1"], params["b1"]))).astype(dt)
    y = pool(jax.nn.relu(conv(rpad(y), params["w2"], params["b2"]))).astype(dt)
    y = jax.nn.relu(conv(rpad(y), params["w3"], params["b3"]))        # f32
    z = conv(y, params["wf"], params["bf"])                           # f32 1x1
    return jnp.transpose(z, (0, 3, 1, 2))


# ---------------------------------------------------------------------------
if __name__ == "__main__":
    key = jax.random.PRNGKey(0)
    kx, kp = jax.random.split(key)

    # sim_matrix: (batch=2, channels=1, H=16, W=16) -- NCHW, as in PyTorch
    sim_matrix = jax.random.uniform(kx, (2, 1, 16, 16), jnp.float32)
    params = init_params(kp)

    out = jax.block_until_ready(jax.jit(video_comperator_forward)(sim_matrix, params))
    ref = jax.block_until_ready(reference_forward(sim_matrix, params))

    assert out.shape == (2, 1, 4, 4), out.shape
    # bf16 inter-layer storage -> compare against the matching-precision
    # reference; tolerance leaves room for bf16 rounding at layer boundaries.
    assert jnp.allclose(out.astype(jnp.float32), ref.astype(jnp.float32),
                        atol=1e-2, rtol=1e-2), (
        float(jnp.max(jnp.abs(out - ref))))

    print("KERNEL_OK")
</pallas_src>

<mosaic_0001>
module attributes {stable_mosaic.version = 11 : i64} {
  func.func @_conv1_pool_kernel(%arg0: i32, %arg1: memref<1x90x4xbf16, #tpu.memory_space<vmem>>, %arg2: memref<4x16x32xbf16, #tpu.memory_space<vmem>>, %arg3: memref<1x32xf32, #tpu.memory_space<vmem>>, %arg4: memref<1x8x8x32xbf16, #tpu.memory_space<vmem>>, %arg5: memref<72x32xf32, #tpu.memory_space<vmem>>) attributes {dimension_semantics = [#tpu.dimension_semantics<parallel>], iteration_bounds = array<i64: 2>, scalar_prefetch = 0 : i64, scratch_operands = 1 : i64, tpu.core_type = #tpu.core_type<tc>, window_params = [{transform_indices = @transform_0, window_bounds = array<i64: 1, 90, 4>}, {pipeline_mode = #tpu.pipeline_mode<synchronous>, transform_indices = @transform_1, window_bounds = array<i64: 4, 16, 32>}, {pipeline_mode = #tpu.pipeline_mode<synchronous>, transform_indices = @transform_2, window_bounds = array<i64: 1, 32>}, {transform_indices = @transform_3, window_bounds = array<i64: 1, 8, 8, 32>}]} {
    %c0 = arith.constant 0 : index
    %c0_0 = arith.constant 0 : index
    %c0_1 = arith.constant 0 : index
    %0 = vector.load %arg1[%c0, %c0_0, %c0_1] : memref<1x90x4xbf16, #tpu.memory_space<vmem>>, vector<1x72x4xbf16>
    %1 = vector.shape_cast %0 : vector<1x72x4xbf16> to vector<72x4xbf16>
    %c0_2 = arith.constant 0 : index
    %c1 = arith.constant 1 : index
    %c0_3 = arith.constant 0 : index
    %2 = vector.load %arg1[%c0_2, %c1, %c0_3] : memref<1x90x4xbf16, #tpu.memory_space<vmem>>, vector<1x72x4xbf16>
    %3 = vector.shape_cast %2 : vector<1x72x4xbf16> to vector<72x4xbf16>
    %c0_4 = arith.constant 0 : index
    %c9 = arith.constant 9 : index
    %c0_5 = arith.constant 0 : index
    %4 = vector.load %arg1[%c0_4, %c9, %c0_5] : memref<1x90x4xbf16, #tpu.memory_space<vmem>>, vector<1x72x4xbf16>
    %5 = vector.shape_cast %4 : vector<1x72x4xbf16> to vector<72x4xbf16>
    %c0_6 = arith.constant 0 : index
    %c10 = arith.constant 10 : index
    %c0_7 = arith.constant 0 : index
    %6 = vector.load %arg1[%c0_6, %c10, %c0_7] : memref<1x90x4xbf16, #tpu.memory_space<vmem>>, vector<1x72x4xbf16>
    %7 = vector.shape_cast %6 : vector<1x72x4xbf16> to vector<72x4xbf16>
    %c0_8 = arith.constant 0 : index
    %c0_9 = arith.constant 0 : index
    %c0_10 = arith.constant 0 : index
    %8 = vector.load %arg2[%c0_8, %c0_9, %c0_10] : memref<4x16x32xbf16, #tpu.memory_space<vmem>>, vector<1x16x32xbf16>
    %9 = vector.shape_cast %8 : vector<1x16x32xbf16> to vector<16x32xbf16>
    %c0_11 = arith.constant 0 : index
    %c0_12 = arith.constant 0 : index
    %10 = vector.load %arg3[%c0_11, %c0_12] : memref<1x32xf32, #tpu.memory_space<vmem>>, vector<1x32xf32>
    %11 = vector.extract_strided_slice %9 {offsets = [0, 0], sizes = [4, 32], strides = [1, 1]} : vector<16x32xbf16> to vector<4x32xbf16>
    %cst = arith.constant dense<0.000000e+00> : vector<72x32xf32>
    %12 = tpu.matmul %1, %11, %cst {dimension_numbers = #tpu.dot_dimension_numbers<[1], [0], [0], [1], [0, 0, 1, 1], [], []>} : vector<72x4xbf16>, vector<4x32xbf16>, vector<72x32xf32> -> vector<72x32xf32>
    %13 = vector.broadcast %10 : vector<1x32xf32> to vector<72x32xf32>
    %14 = arith.addf %13, %12 : vector<72x32xf32>
    %15 = vector.extract_strided_slice %9 {offsets = [4, 0], sizes = [4, 32], strides = [1, 1]} : vector<16x32xbf16> to vector<4x32xbf16>
    %cst_13 = arith.constant dense<0.000000e+00> : vector<72x32xf32>
    %16 = tpu.matmul %3, %15, %cst_13 {dimension_numbers = #tpu.dot_dimension_numbers<[1], [0], [0], [1], [0, 0, 1, 1], [], []>} : vector<72x4xbf16>, vector<4x32xbf16>, vector<72x32xf32> -> vector<72x32xf32>
    %17 = arith.addf %14, %16 : vector<72x32xf32>
    %18 = vector.extract_strided_slice %9 {offsets = [8, 0], sizes = [4, 32], strides = [1, 1]} : vector<16x32xbf16> to vector<4x32xbf16>
    %cst_14 = arith.constant dense<0.000000e+00> : vector<72x32xf32>
    %19 = tpu.matmul %5, %18, %cst_14 {dimension_numbers = #tpu.dot_dimension_numbers<[1], [0], [0], [1], [0, 0, 1, 1], [], []>} : vector<72x4xbf16>, vector<4x32xbf16>, vector<72x32xf32> -> vector<72x32xf32>
    %20 = arith.addf %17, %19 : vector<72x32xf32>
    %21 = vector.extract_strided_slice %9 {offsets = [12, 0], sizes = [4, 32], strides = [1, 1]} : vector<16x32xbf16> to vector<4x32xbf16>
    %cst_15 = arith.constant dense<0.000000e+00> : vector<72x32xf32>
    %22 = tpu.matmul %7, %21, %cst_15 {dimension_numbers = #tpu.dot_dimension_numbers<[1], [0], [0], [1], [0, 0, 1, 1], [], []>} : vector<72x4xbf16>, vector<4x32xbf16>, vector<72x32xf32> -> vector<72x32xf32>
    %23 = arith.addf %20, %22 : vector<72x32xf32>
    %c1_16 = arith.constant 1 : index
    %c0_17 = arith.constant 0 : index
    %c0_18 = arith.constant 0 : index
    %24 = vector.load %arg2[%c1_16, %c0_17, %c0_18] : memref<4x16x32xbf16, #tpu.memory_space<vmem>>, vector<1x16x32xbf16>
    %25 = vector.shape_cast %24 : vector<1x16x32xbf16> to vector<16x32xbf16>
    %c0_19 = arith.constant 0 : index
    %c0_20 = arith.constant 0 : index
    %26 = vector.load %arg3[%c0_19, %c0_20] : memref<1x32xf32, #tpu.memory_space<vmem>>, vector<1x32xf32>
    %27 = vector.extract_strided_slice %25 {offsets = [0, 0], sizes = [4, 32], strides = [1, 1]} : vector<16x32xbf16> to vector<4x32xbf16>
    %cst_21 = arith.constant dense<0.000000e+00> : vector<72x32xf32>
    %28 = tpu.matmul %1, %27, %cst_21 {dimension_numbers = #tpu.dot_dimension_numbers<[1], [0], [0], [1], [0, 0, 1, 1], [], []>} : vector<72x4xbf16>, vector<4x32xbf16>, vector<72x32xf32> -> vector<72x32xf32>
    %29 = vector.broadcast %26 : vector<1x32xf32> to vector<72x32xf32>
    %30 = arith.addf %29, %28 : vector<72x32xf32>
    %31 = vector.extract_strided_slice %25 {offsets = [4, 0], sizes = [4, 32], strides = [1, 1]} : vector<16x32xbf16> to vector<4x32xbf16>
    %cst_22 = arith.constant dense<0.000000e+00> : vector<72x32xf32>
    %32 = tpu.matmul %3, %31, %cst_22 {dimension_numbers = #tpu.dot_dimension_numbers<[1], [0], [0], [1], [0, 0, 1, 1], [], []>} : vector<72x4xbf16>, vector<4x32xbf16>, vector<72x32xf32> -> vector<72x32xf32>
    %33 = arith.addf %30, %32 : vector<72x32xf32>
    %34 = vector.extract_strided_slice %25 {offsets = [8, 0], sizes = [4, 32], strides = [1, 1]} : vector<16x32xbf16> to vector<4x32xbf16>
    %cst_23 = arith.constant dense<0.000000e+00> : vector<72x32xf32>
    %35 = tpu.matmul %5, %34, %cst_23 {dimension_numbers = #tpu.dot_dimension_numbers<[1], [0], [0], [1], [0, 0, 1, 1], [], []>} : vector<72x4xbf16>, vector<4x32xbf16>, vector<72x32xf32> -> vector<72x32xf32>
    %36 = arith.addf %33, %35 : vector<72x32xf32>
    %37 = vector.extract_strided_slice %25 {offsets = [12, 0], sizes = [4, 32], strides = [1, 1]} : vector<16x32xbf16> to vector<4x32xbf16>
    %cst_24 = arith.constant dense<0.000000e+00> : vector<72x32xf32>
    %38 = tpu.matmul %7, %37, %cst_24 {dimension_numbers = #tpu.dot_dimension_numbers<[1], [0], [0], [1], [0, 0, 1, 1], [], []>} : vector<72x4xbf16>, vector<4x32xbf16>, vector<72x32xf32> -> vector<72x32xf32>
    %39 = arith.addf %36, %38 : vector<72x32xf32>
    %40 = arith.maximumf %23, %39 : vector<72x32xf32>
    %c2 = arith.constant 2 : index
    %c0_25 = arith.constant 0 : index
    %c0_26 = arith.constant 0 : index
    %41 = vector.load %arg2[%c2, %c0_25, %c0_26] : memref<4x16x32xbf16, #tpu.memory_space<vmem>>, vector<1x16x32xbf16>
    %42 = vector.shape_cast %41 : vector<1x16x32xbf16> to vector<16x32xbf16>
    %c0_27 = arith.constant 0 : index
    %c0_28 = arith.constant 0 : index
    %43 = vector.load %arg3[%c0_27, %c0_28] : memref<1x32xf32, #tpu.memory_space<vmem>>, vector<1x32xf32>
    %44 = vector.extract_strided_slice %42 {offsets = [0, 0], sizes = [4, 32], strides = [1, 1]} : vector<16x32xbf16> to vector<4x32xbf16>
    %cst_29 = arith.constant dense<0.000000e+00> : vector<72x32xf32>
    %45 = tpu.matmul %1, %44, %cst_29 {dimension_numbers = #tpu.dot_dimension_numbers<[1], [0], [0], [1], [0, 0, 1, 1], [], []>} : vector<72x4xbf16>, vector<4x32xbf16>, vector<72x32xf32> -> vector<72x32xf32>
    %46 = vector.broadcast %43 : vector<1x32xf32> to vector<72x32xf32>
    %47 = arith.addf %46, %45 : vector<72x32xf32>
    %48 = vector.extract_strided_slice %42 {offsets = [4, 0], sizes = [4, 32], strides = [1, 1]} : vector<16x32xbf16> to vector<4x32xbf16>
    %cst_30 = arith.constant dense<0.000000e+00> : vector<72x32xf32>
    %49 = tpu.matmul %3, %48, %cst_30 {dimension_numbers = #tpu.dot_dimension_numbers<[1], [0], [0], [1], [0, 0, 1, 1], [], []>} : vector<72x4xbf16>, vector<4x32xbf16>, vector<72x32xf32> -> vector<72x32xf32>
    %50 = arith.addf %47, %49 : vector<72x32xf32>
    %51 = vector.extract_strided_slice %42 {offsets = [8, 0], sizes = [4, 32], strides = [1, 1]} : vector<16x32xbf16> to vector<4x32xbf16>
    %cst_31 = arith.constant dense<0.000000e+00> : vector<72x32xf32>
    %52 = tpu.matmul %5, %51, %cst_31 {dimension_numbers = #tpu.dot_dimension_numbers<[1], [0], [0], [1], [0, 0, 1, 1], [], []>} : vector<72x4xbf16>, vector<4x32xbf16>, vector<72x32xf32> -> vector<72x32xf32>
    %53 = arith.addf %50, %52 : vector<72x32xf32>
    %54 = vector.extract_strided_slice %42 {offsets = [12, 0], sizes = [4, 32], strides = [1, 1]} : vector<16x32xbf16> to vector<4x32xbf16>
    %cst_32 = arith.constant dense<0.000000e+00> : vector<72x32xf32>
    %55 = tpu.matmul %7, %54, %cst_32 {dimension_numbers = #tpu.dot_dimension_numbers<[1], [0], [0], [1], [0, 0, 1, 1], [], []>} : vector<72x4xbf16>, vector<4x32xbf16>, vector<72x32xf32> -> vector<72x32xf32>
    %56 = arith.addf %53, %55 : vector<72x32xf32>
    %57 = arith.maximumf %40, %56 : vector<72x32xf32>
    %c3 = arith.constant 3 : index
    %c0_33 = arith.constant 0 : index
    %c0_34 = arith.constant 0 : index
    %58 = vector.load %arg2[%c3, %c0_33, %c0_34] : memref<4x16x32xbf16, #tpu.memory_space<vmem>>, vector<1x16x32xbf16>
    %59 = vector.shape_cast %58 : vector<1x16x32xbf16> to vector<16x32xbf16>
    %c0_35 = arith.constant 0 : index
    %c0_36 = arith.constant 0 : index
    %60 = vector.load %arg3[%c0_35, %c0_36] : memref<1x32xf32, #tpu.memory_space<vmem>>, vector<1x32xf32>
    %61 = vector.extract_strided_slice %59 {offsets = [0, 0], sizes = [4, 32], strides = [1, 1]} : vector<16x32xbf16> to vector<4x32xbf16>
    %cst_37 = arith.constant dense<0.000000e+00> : vector<72x32xf32>
    %62 = tpu.matmul %1, %61, %cst_37 {dimension_numbers = #tpu.dot_dimension_numbers<[1], [0], [0], [1], [0, 0, 1, 1], [], []>} : vector<72x4xbf16>, vector<4x32xbf16>, vector<72x32xf32> -> vector<72x32xf32>
    %63 = vector.broadcast %60 : vector<1x32xf32> to vector<72x32xf32>
    %64 = arith.addf %63, %62 : vector<72x32xf32>
    %65 = vector.extract_strided_slice %59 {offsets = [4, 0], sizes = [4, 32], strides = [1, 1]} : vector<16x32xbf16> to vector<4x32xbf16>
    %cst_38 = arith.constant dense<0.000000e+00> : vector<72x32xf32>
    %66 = tpu.matmul %3, %65, %cst_38 {dimension_numbers = #tpu.dot_dimension_numbers<[1], [0], [0], [1], [0, 0, 1, 1], [], []>} : vector<72x4xbf16>, vector<4x32xbf16>, vector<72x32xf32> -> vector<72x32xf32>
    %67 = arith.addf %64, %66 : vector<72x32xf32>
    %68 = vector.extract_strided_slice %59 {offsets = [8, 0], sizes = [4, 32], strides = [1, 1]} : vector<16x32xbf16> to vector<4x32xbf16>
    %cst_39 = arith.constant dense<0.000000e+00> : vector<72x32xf32>
    %69 = tpu.matmul %5, %68, %cst_39 {dimension_numbers = #tpu.dot_dimension_numbers<[1], [0], [0], [1], [0, 0, 1, 1], [], []>} : vector<72x4xbf16>, vector<4x32xbf16>, vector<72x32xf32> -> vector<72x32xf32>
    %70 = arith.addf %67, %69 : vector<72x32xf32>
    %71 = vector.extract_strided_slice %59 {offsets = [12, 0], sizes = [4, 32], strides = [1, 1]} : vector<16x32xbf16> to vector<4x32xbf16>
    %cst_40 = arith.constant dense<0.000000e+00> : vector<72x32xf32>
    %72 = tpu.matmul %7, %71, %cst_40 {dimension_numbers = #tpu.dot_dimension_numbers<[1], [0], [0], [1], [0, 0, 1, 1], [], []>} : vector<72x4xbf16>, vector<4x32xbf16>, vector<72x32xf32> -> vector<72x32xf32>
    %73 = arith.addf %70, %72 : vector<72x32xf32>
    %74 = arith.maximumf %57, %73 : vector<72x32xf32>
    %cst_41 = arith.constant 0.000000e+00 : f32
    %75 = vector.broadcast %cst_41 : f32 to vector<72x32xf32>
    %76 = arith.maximumf %74, %75 : vector<72x32xf32>
    %c0_42 = arith.constant 0 : index
    %c0_43 = arith.constant 0 : index
    %77 = vector.load %arg5[%c0_42, %c0_43] : memref<72x32xf32, #tpu.memory_space<vmem>>, vector<72x32xf32>
    tpu.vector_store %arg5[%c0_42, %c0_43], %76 {strides = array<i32>} : memref<72x32xf32, #tpu.memory_space<vmem>>, vector<72x32xf32>,
    %c0_i32 = arith.constant 0 : i32
    %c8_i32 = arith.constant 8 : i32
    %78 = arith.addi %c0_i32, %c8_i32 : i32
    %c1_i32 = arith.constant 1 : i32
    scf.for %arg6 = %c0_i32 to %78 step %c1_i32  : i32 {
      %c9_i32 = arith.constant 9 : i32
      %79 = arith.muli %arg6, %c9_i32 : i32
      %80 = arith.index_cast %79 : i32 to index
      %c0_45 = arith.constant 0 : index
      %81 = vector.load %arg5[%80, %c0_45] : memref<72x32xf32, #tpu.memory_space<vmem>>, vector<8x32xf32>
      %82 = arith.truncf %81 : vector<8x32xf32> to vector<8x32xbf16>
      %c0_46 = arith.constant 0 : index
      %83 = arith.index_cast %arg6 : i32 to index
      %c0_47 = arith.constant 0 : index
      %c0_48 = arith.constant 0 : index
      %84 = vector.load %arg4[%c0_46, %83, %c0_47, %c0_48] : memref<1x8x8x32xbf16, #tpu.memory_space<vmem>>, vector<1x1x8x32xbf16>
      %85 = vector.shape_cast %84 : vector<1x1x8x32xbf16> to vector<8x32xbf16>
      %86 = vector.shape_cast %82 : vector<8x32xbf16> to vector<1x1x8x32xbf16>
      tpu.vector_store %arg4[%c0_46, %83, %c0_47, %c0_48], %86 {strides = array<i32>} : memref<1x8x8x32xbf16, #tpu.memory_space<vmem>>, vector<1x1x8x32xbf16>,
    }
    %c8_i32_44 = arith.constant 8 : i32
    return
  }
  func.func @transform_0(%arg0: i32) -> (i32, i32, i32) {
    %c0_i32 = arith.constant 0 : i32
    %c0_i32_0 = arith.constant 0 : i32
    %c0_i32_1 = arith.constant 0 : i32
    return %arg0, %c0_i32, %c0_i32_0 : i32, i32, i32
  }
  func.func @transform_1(%arg0: i32) -> (i32, i32, i32) {
    %c0_i32 = arith.constant 0 : i32
    %c0_i32_0 = arith.constant 0 : i32
    %c0_i32_1 = arith.constant 0 : i32
    %c0_i32_2 = arith.constant 0 : i32
    return %c0_i32, %c0_i32_0, %c0_i32_1 : i32, i32, i32
  }
  func.func @transform_2(%arg0: i32) -> (i32, i32) {
    %c0_i32 = arith.constant 0 : i32
    %c0_i32_0 = arith.constant 0 : i32
    %c0_i32_1 = arith.constant 0 : i32
    return %c0_i32, %c0_i32_0 : i32, i32
  }
  func.func @transform_3(%arg0: i32) -> (i32, i32, i32, i32) {
    %c0_i32 = arith.constant 0 : i32
    %c0_i32_0 = arith.constant 0 : i32
    %c0_i32_1 = arith.constant 0 : i32
    %c0_i32_2 = arith.constant 0 : i32
    return %arg0, %c0_i32, %c0_i32_0, %c0_i32_1 : i32, i32, i32, i32
  }
}

module attributes {stable_mosaic.version = 11 : i64} {
  func.func @_conv3x3_relu_pool_kernel(%arg0: i32, %arg1: memref<1x110x32xbf16, #tpu.memory_space<vmem>>, %arg2: memref<288x64xbf16, #tpu.memory_space<vmem>>, %arg3: memref<1x64xf32, #tpu.memory_space<vmem>>, %arg4: memref<1x4x4x64xbf16, #tpu.memory_space<vmem>>, %arg5: memref<80x64xf32, #tpu.memory_space<vmem>>, %arg6: memref<40x64xf32, #tpu.memory_space<vmem>>) attributes {dimension_semantics = [#tpu.dimension_semantics<parallel>], iteration_bounds = array<i64: 2>, scalar_prefetch = 0 : i64, scratch_operands = 2 : i64, tpu.core_type = #tpu.core_type<tc>, window_params = [{transform_indices = @transform_0, window_bounds = array<i64: 1, 110, 32>}, {pipeline_mode = #tpu.pipeline_mode<synchronous>, transform_indices = @transform_1, window_bounds = array<i64: 288, 64>}, {pipeline_mode = #tpu.pipeline_mode<synchronous>, transform_indices = @transform_2, window_bounds = array<i64: 1, 64>}, {transform_indices = @transform_3, window_bounds = array<i64: 1, 4, 4, 64>}]} {
    %c0 = arith.constant 0 : index
    %c0_0 = arith.constant 0 : index
    %0 = vector.load %arg3[%c0, %c0_0] : memref<1x64xf32, #tpu.memory_space<vmem>>, vector<1x64xf32>
    %c0_1 = arith.constant 0 : index
    %c0_2 = arith.constant 0 : index
    %c0_3 = arith.constant 0 : index
    %1 = vector.load %arg1[%c0_1, %c0_2, %c0_3] : memref<1x110x32xbf16, #tpu.memory_space<vmem>>, vector<1x80x32xbf16>
    %2 = vector.shape_cast %1 : vector<1x80x32xbf16> to vector<80x32xbf16>
    %c0_4 = arith.constant 0 : index
    %c0_5 = arith.constant 0 : index
    %3 = vector.load %arg2[%c0_4, %c0_5] : memref<288x64xbf16, #tpu.memory_space<vmem>>, vector<32x64xbf16>
    %cst = arith.constant dense<0.000000e+00> : vector<80x64xf32>
    %4 = tpu.matmul %2, %3, %cst {dimension_numbers = #tpu.dot_dimension_numbers<[1], [0], [0], [1], [0, 0, 1, 1], [], []>} : vector<80x32xbf16>, vector<32x64xbf16>, vector<80x64xf32> -> vector<80x64xf32>
    %5 = vector.broadcast %0 : vector<1x64xf32> to vector<80x64xf32>
    %6 = arith.addf %5, %4 : vector<80x64xf32>
    %c0_6 = arith.constant 0 : index
    %c1 = arith.constant 1 : index
    %c0_7 = arith.constant 0 : index
    %7 = vector.load %arg1[%c0_6, %c1, %c0_7] : memref<1x110x32xbf16, #tpu.memory_space<vmem>>, vector<1x80x32xbf16>
    %8 = vector.shape_cast %7 : vector<1x80x32xbf16> to vector<80x32xbf16>
    %c32 = arith.constant 32 : index
    %c0_8 = arith.constant 0 : index
    %9 = vector.load %arg2[%c32, %c0_8] : memref<288x64xbf16, #tpu.memory_space<vmem>>, vector<32x64xbf16>
    %cst_9 = arith.constant dense<0.000000e+00> : vector<80x64xf32>
    %10 = tpu.matmul %8, %9, %cst_9 {dimension_numbers = #tpu.dot_dimension_numbers<[1], [0], [0], [1], [0, 0, 1, 1], [], []>} : vector<80x32xbf16>, vector<32x64xbf16>, vector<80x64xf32> -> vector<80x64xf32>
    %11 = arith.addf %6, %10 : vector<80x64xf32>
    %c0_10 = arith.constant 0 : index
    %c2 = arith.constant 2 : index
    %c0_11 = arith.constant 0 : index
    %12 = vector.load %arg1[%c0_10, %c2, %c0_11] : memref<1x110x32xbf16, #tpu.memory_space<vmem>>, vector<1x80x32xbf16>
    %13 = vector.shape_cast %12 : vector<1x80x32xbf16> to vector<80x32xbf16>
    %c64 = arith.constant 64 : index
    %c0_12 = arith.constant 0 : index
    %14 = vector.load %arg2[%c64, %c0_12] : memref<288x64xbf16, #tpu.memory_space<vmem>>, vector<32x64xbf16>
    %cst_13 = arith.constant dense<0.000000e+00> : vector<80x64xf32>
    %15 = tpu.matmul %13, %14, %cst_13 {dimension_numbers = #tpu.dot_dimension_numbers<[1], [0], [0], [1], [0, 0, 1, 1], [], []>} : vector<80x32xbf16>, vector<32x64xbf16>, vector<80x64xf32> -> vector<80x64xf32>
    %16 = arith.addf %11, %15 : vector<80x64xf32>
    %c0_14 = arith.constant 0 : index
    %c10 = arith.constant 10 : index
    %c0_15 = arith.constant 0 : index
    %17 = vector.load %arg1[%c0_14, %c10, %c0_15] : memref<1x110x32xbf16, #tpu.memory_space<vmem>>, vector<1x80x32xbf16>
    %18 = vector.shape_cast %17 : vector<1x80x32xbf16> to vector<80x32xbf16>
    %c96 = arith.constant 96 : index
    %c0_16 = arith.constant 0 : index
    %19 = vector.load %arg2[%c96, %c0_16] : memref<288x64xbf16, #tpu.memory_space<vmem>>, vector<32x64xbf16>
    %cst_17 = arith.constant dense<0.000000e+00> : vector<80x64xf32>
    %20 = tpu.matmul %18, %19, %cst_17 {dimension_numbers = #tpu.dot_dimension_numbers<[1], [0], [0], [1], [0, 0, 1, 1], [], []>} : vector<80x32xbf16>, vector<32x64xbf16>, vector<80x64xf32> -> vector<80x64xf32>
    %21 = arith.addf %16, %20 : vector<80x64xf32>
    %c0_18 = arith.constant 0 : index
    %c11 = arith.constant 11 : index
    %c0_19 = arith.constant 0 : index
    %22 = vector.load %arg1[%c0_18, %c11, %c0_19] : memref<1x110x32xbf16, #tpu.memory_space<vmem>>, vector<1x80x32xbf16>
    %23 = vector.shape_cast %22 : vector<1x80x32xbf16> to vector<80x32xbf16>
    %c128 = arith.constant 128 : index
    %c0_20 = arith.constant 0 : index
    %24 = vector.load %arg2[%c128, %c0_20] : memref<288x64xbf16, #tpu.memory_space<vmem>>, vector<32x64xbf16>
    %cst_21 = arith.constant dense<0.000000e+00> : vector<80x64xf32>
    %25 = tpu.matmul %23, %24, %cst_21 {dimension_numbers = #tpu.dot_dimension_numbers<[1], [0], [0], [1], [0, 0, 1, 1], [], []>} : vector<80x32xbf16>, vector<32x64xbf16>, vector<80x64xf32> -> vector<80x64xf32>
    %26 = arith.addf %21, %25 : vector<80x64xf32>
    %c0_22 = arith.constant 0 : index
    %c12 = arith.constant 12 : index
    %c0_23 = arith.constant 0 : index
    %27 = vector.load %arg1[%c0_22, %c12, %c0_23] : memref<1x110x32xbf16, #tpu.memory_space<vmem>>, vector<1x80x32xbf16>
    %28 = vector.shape_cast %27 : vector<1x80x32xbf16> to vector<80x32xbf16>
    %c160 = arith.constant 160 : index
    %c0_24 = arith.constant 0 : index
    %29 = vector.load %arg2[%c160, %c0_24] : memref<288x64xbf16, #tpu.memory_space<vmem>>, vector<32x64xbf16>
    %cst_25 = arith.constant dense<0.000000e+00> : vector<80x64xf32>
    %30 = tpu.matmul %28, %29, %cst_25 {dimension_numbers = #tpu.dot_dimension_numbers<[1], [0], [0], [1], [0, 0, 1, 1], [], []>} : vector<80x32xbf16>, vector<32x64xbf16>, vector<80x64xf32> -> vector<80x64xf32>
    %31 = arith.addf %26, %30 : vector<80x64xf32>
    %c0_26 = arith.constant 0 : index
    %c20 = arith.constant 20 : index
    %c0_27 = arith.constant 0 : index
    %32 = vector.load %arg1[%c0_26, %c20, %c0_27] : memref<1x110x32xbf16, #tpu.memory_space<vmem>>, vector<1x80x32xbf16>
    %33 = vector.shape_cast %32 : vector<1x80x32xbf16> to vector<80x32xbf16>
    %c192 = arith.constant 192 : index
    %c0_28 = arith.constant 0 : index
    %34 = vector.load %arg2[%c192, %c0_28] : memref<288x64xbf16, #tpu.memory_space<vmem>>, vector<32x64xbf16>
    %cst_29 = arith.constant dense<0.000000e+00> : vector<80x64xf32>
    %35 = tpu.matmul %33, %34, %cst_29 {dimension_numbers = #tpu.dot_dimension_numbers<[1], [0], [0], [1], [0, 0, 1, 1], [], []>} : vector<80x32xbf16>, vector<32x64xbf16>, vector<80x64xf32> -> vector<80x64xf32>
    %36 = arith.addf %31, %35 : vector<80x64xf32>
    %c0_30 = arith.constant 0 : index
    %c21 = arith.constant 21 : index
    %c0_31 = arith.constant 0 : index
    %37 = vector.load %arg1[%c0_30, %c21, %c0_31] : memref<1x110x32xbf16, #tpu.memory_space<vmem>>, vector<1x80x32xbf16>
    %38 = vector.shape_cast %37 : vector<1x80x32xbf16> to vector<80x32xbf16>
    %c224 = arith.constant 224 : index
    %c0_32 = arith.constant 0 : index
    %39 = vector.load %arg2[%c224, %c0_32] : memref<288x64xbf16, #tpu.memory_space<vmem>>, vector<32x64xbf16>
    %cst_33 = arith.constant dense<0.000000e+00> : vector<80x64xf32>
    %40 = tpu.matmul %38, %39, %cst_33 {dimension_numbers = #tpu.dot_dimension_numbers<[1], [0], [0], [1], [0, 0, 1, 1], [], []>} : vector<80x32xbf16>, vector<32x64xbf16>, vector<80x64xf32> -> vector<80x64xf32>
    %41 = arith.addf %36, %40 : vector<80x64xf32>
    %c0_34 = arith.constant 0 : index
    %c22 = arith.constant 22 : index
    %c0_35 = arith.constant 0 : index
    %42 = vector.load %arg1[%c0_34, %c22, %c0_35] : memref<1x110x32xbf16, #tpu.memory_space<vmem>>, vector<1x80x32xbf16>
    %43 = vector.shape_cast %42 : vector<1x80x32xbf16> to vector<80x32xbf16>
    %c256 = arith.constant 256 : index
    %c0_36 = arith.constant 0 : index
    %44 = vector.load %arg2[%c256, %c0_36] : memref<288x64xbf16, #tpu.memory_space<vmem>>, vector<32x64xbf16>
    %cst_37 = arith.constant dense<0.000000e+00> : vector<80x64xf32>
    %45 = tpu.matmul %43, %44, %cst_37 {dimension_numbers = #tpu.dot_dimension_numbers<[1], [0], [0], [1], [0, 0, 1, 1], [], []>} : vector<80x32xbf16>, vector<32x64xbf16>, vector<80x64xf32> -> vector<80x64xf32>
    %46 = arith.addf %41, %45 : vector<80x64xf32>
    %cst_38 = arith.constant 0.000000e+00 : f32
    %47 = vector.broadcast %cst_38 : f32 to vector<80x64xf32>
    %48 = arith.maximumf %46, %47 : vector<80x64xf32>
    %c0_39 = arith.constant 0 : index
    %c0_40 = arith.constant 0 : index
    %49 = vector.load %arg5[%c0_39, %c0_40] : memref<80x64xf32, #tpu.memory_space<vmem>>, vector<80x64xf32>
    tpu.vector_store %arg5[%c0_39, %c0_40], %48 {strides = array<i32>} : memref<80x64xf32, #tpu.memory_space<vmem>>, vector<80x64xf32>,
    %c0_41 = arith.constant 0 : index
    %c0_42 = arith.constant 0 : index
    %50 = tpu.strided_load %arg5[%c0_41, %c0_42] {strides = array<i32: 2, 1>} : memref<80x64xf32, #tpu.memory_space<vmem>>, vector<40x64xf32>
    %c1_43 = arith.constant 1 : index
    %c0_44 = arith.constant 0 : index
    %51 = tpu.strided_load %arg5[%c1_43, %c0_44] {strides = array<i32: 2, 1>} : memref<80x64xf32, #tpu.memory_space<vmem>>, vector<40x64xf32>
    %52 = arith.maximumf %50, %51 : vector<40x64xf32>
    %c0_45 = arith.constant 0 : index
    %c0_46 = arith.constant 0 : index
    %53 = vector.load %arg6[%c0_45, %c0_46] : memref<40x64xf32, #tpu.memory_space<vmem>>, vector<40x64xf32>
    tpu.vector_store %arg6[%c0_45, %c0_46], %52 {strides = array<i32>} : memref<40x64xf32, #tpu.memory_space<vmem>>, vector<40x64xf32>,
    %c0_i32 = arith.constant 0 : i32
    %c4_i32 = arith.constant 4 : i32
    %54 = arith.addi %c0_i32, %c4_i32 : i32
    %c1_i32 = arith.constant 1 : i32
    scf.for %arg7 = %c0_i32 to %54 step %c1_i32  : i32 {
      %c2_i32 = arith.constant 2 : i32
      %55 = arith.muli %c2_i32, %arg7 : i32
      %c5_i32 = arith.constant 5 : i32
      %56 = arith.muli %55, %c5_i32 : i32
      %57 = arith.index_cast %56 : i32 to index
      %c0_48 = arith.constant 0 : index
      %58 = vector.load %arg6[%57, %c0_48] : memref<40x64xf32, #tpu.memory_space<vmem>>, vector<4x64xf32>
      %c2_i32_49 = arith.constant 2 : i32
      %59 = arith.muli %c2_i32_49, %arg7 : i32
      %c1_i32_50 = arith.constant 1 : i32
      %60 = arith.addi %59, %c1_i32_50 : i32
      %c5_i32_51 = arith.constant 5 : i32
      %61 = arith.muli %60, %c5_i32_51 : i32
      %62 = arith.index_cast %61 : i32 to index
      %c0_52 = arith.constant 0 : index
      %63 = vector.load %arg6[%62, %c0_52] : memref<40x64xf32, #tpu.memory_space<vmem>>, vector<4x64xf32>
      %64 = arith.maximumf %58, %63 : vector<4x64xf32>
      %65 = arith.truncf %64 : vector<4x64xf32> to vector<4x64xbf16>
      %c0_53 = arith.constant 0 : index
      %66 = arith.index_cast %arg7 : i32 to index
      %c0_54 = arith.constant 0 : index
      %c0_55 = arith.constant 0 : index
      %67 = vector.load %arg4[%c0_53, %66, %c0_54, %c0_55] : memref<1x4x4x64xbf16, #tpu.memory_space<vmem>>, vector<1x1x4x64xbf16>
      %68 = vector.shape_cast %67 : vector<1x1x4x64xbf16> to vector<4x64xbf16>
      %69 = vector.shape_cast %65 : vector<4x64xbf16> to vector<1x1x4x64xbf16>
      tpu.vector_store %arg4[%c0_53, %66, %c0_54, %c0_55], %69 {strides = array<i32>} : memref<1x4x4x64xbf16, #tpu.memory_space<vmem>>, vector<1x1x4x64xbf16>,
    }
    %c4_i32_47 = arith.constant 4 : i32
    return
  }
  func.func @transform_0(%arg0: i32) -> (i32, i32, i32) {
    %c0_i32 = arith.constant 0 : i32
    %c0_i32_0 = arith.constant 0 : i32
    %c0_i32_1 = arith.constant 0 : i32
    return %arg0, %c0_i32, %c0_i32_0 : i32, i32, i32
  }
  func.func @transform_1(%arg0: i32) -> (i32, i32) {
    %c0_i32 = arith.constant 0 : i32
    %c0_i32_0 = arith.constant 0 : i32
    %c0_i32_1 = arith.constant 0 : i32
    return %c0_i32, %c0_i32_0 : i32, i32
  }
  func.func @transform_2(%arg0: i32) -> (i32, i32) {
    %c0_i32 = arith.constant 0 : i32
    %c0_i32_0 = arith.constant 0 : i32
    %c0_i32_1 = arith.constant 0 : i32
    return %c0_i32, %c0_i32_0 : i32, i32
  }
  func.func @transform_3(%arg0: i32) -> (i32, i32, i32, i32) {
    %c0_i32 = arith.constant 0 : i32
    %c0_i32_0 = arith.constant 0 : i32
    %c0_i32_1 = arith.constant 0 : i32
    %c0_i32_2 = arith.constant 0 : i32
    return %arg0, %c0_i32, %c0_i32_0, %c0_i32_1 : i32, i32, i32, i32
  }
}

module attributes {stable_mosaic.version = 11 : i64} {
  func.func @_conv3x3_relu_fconv_kernel(%arg0: i32, %arg1: memref<1x42x64xbf16, #tpu.memory_space<vmem>>, %arg2: memref<576x128xbf16, #tpu.memory_space<vmem>>, %arg3: memref<1x128xf32, #tpu.memory_space<vmem>>, %arg4: memref<1x128xf32, #tpu.memory_space<vmem>>, %arg5: memref<1x1xf32, #tpu.memory_space<vmem>>, %arg6: memref<1x24x1xf32, #tpu.memory_space<vmem>>) attributes {dimension_semantics = [#tpu.dimension_semantics<parallel>], iteration_bounds = array<i64: 2>, scalar_prefetch = 0 : i64, scratch_operands = 0 : i64, tpu.core_type = #tpu.core_type<tc>, window_params = [{transform_indices = @transform_0, window_bounds = array<i64: 1, 42, 64>}, {pipeline_mode = #tpu.pipeline_mode<synchronous>, transform_indices = @transform_1, window_bounds = array<i64: 576, 128>}, {pipeline_mode = #tpu.pipeline_mode<synchronous>, transform_indices = @transform_2, window_bounds = array<i64: 1, 128>}, {pipeline_mode = #tpu.pipeline_mode<synchronous>, transform_indices = @transform_3, window_bounds = array<i64: 1, 128>}, {pipeline_mode = #tpu.pipeline_mode<synchronous>, transform_indices = @transform_4, window_bounds = array<i64: 1, 1>}, {transform_indices = @transform_5, window_bounds = array<i64: 1, 24, 1>}]} {
    %c0 = arith.constant 0 : index
    %c0_0 = arith.constant 0 : index
    %0 = vector.load %arg3[%c0, %c0_0] : memref<1x128xf32, #tpu.memory_space<vmem>>, vector<1x128xf32>
    %c0_1 = arith.constant 0 : index
    %c0_2 = arith.constant 0 : index
    %c0_3 = arith.constant 0 : index
    %1 = vector.load %arg1[%c0_1, %c0_2, %c0_3] : memref<1x42x64xbf16, #tpu.memory_space<vmem>>, vector<1x24x64xbf16>
    %2 = vector.shape_cast %1 : vector<1x24x64xbf16> to vector<24x64xbf16>
    %c0_4 = arith.constant 0 : index
    %c0_5 = arith.constant 0 : index
    %3 = vector.load %arg2[%c0_4, %c0_5] : memref<576x128xbf16, #tpu.memory_space<vmem>>, vector<64x128xbf16>
    %cst = arith.constant dense<0.000000e+00> : vector<24x128xf32>
    %4 = tpu.matmul %2, %3, %cst {dimension_numbers = #tpu.dot_dimension_numbers<[1], [0], [0], [1], [0, 0, 1, 1], [], []>} : vector<24x64xbf16>, vector<64x128xbf16>, vector<24x128xf32> -> vector<24x128xf32>
    %5 = vector.broadcast %0 : vector<1x128xf32> to vector<24x128xf32>
    %6 = arith.addf %5, %4 : vector<24x128xf32>
    %c0_6 = arith.constant 0 : index
    %c1 = arith.constant 1 : index
    %c0_7 = arith.constant 0 : index
    %7 = vector.load %arg1[%c0_6, %c1, %c0_7] : memref<1x42x64xbf16, #tpu.memory_space<vmem>>, vector<1x24x64xbf16>
    %8 = vector.shape_cast %7 : vector<1x24x64xbf16> to vector<24x64xbf16>
    %c64 = arith.constant 64 : index
    %c0_8 = arith.constant 0 : index
    %9 = vector.load %arg2[%c64, %c0_8] : memref<576x128xbf16, #tpu.memory_space<vmem>>, vector<64x128xbf16>
    %cst_9 = arith.constant dense<0.000000e+00> : vector<24x128xf32>
    %10 = tpu.matmul %8, %9, %cst_9 {dimension_numbers = #tpu.dot_dimension_numbers<[1], [0], [0], [1], [0, 0, 1, 1], [], []>} : vector<24x64xbf16>, vector<64x128xbf16>, vector<24x128xf32> -> vector<24x128xf32>
    %11 = arith.addf %6, %10 : vector<24x128xf32>
    %c0_10 = arith.constant 0 : index
    %c2 = arith.constant 2 : index
    %c0_11 = arith.constant 0 : index
    %12 = vector.load %arg1[%c0_10, %c2, %c0_11] : memref<1x42x64xbf16, #tpu.memory_space<vmem>>, vector<1x24x64xbf16>
    %13 = vector.shape_cast %12 : vector<1x24x64xbf16> to vector<24x64xbf16>
    %c128 = arith.constant 128 : index
    %c0_12 = arith.constant 0 : index
    %14 = vector.load %arg2[%c128, %c0_12] : memref<576x128xbf16, #tpu.memory_space<vmem>>, vector<64x128xbf16>
    %cst_13 = arith.constant dense<0.000000e+00> : vector<24x128xf32>
    %15 = tpu.matmul %13, %14, %cst_13 {dimension_numbers = #tpu.dot_dimension_numbers<[1], [0], [0], [1], [0, 0, 1, 1], [], []>} : vector<24x64xbf16>, vector<64x128xbf16>, vector<24x128xf32> -> vector<24x128xf32>
    %16 = arith.addf %11, %15 : vector<24x128xf32>
    %c0_14 = arith.constant 0 : index
    %c6 = arith.constant 6 : index
    %c0_15 = arith.constant 0 : index
    %17 = vector.load %arg1[%c0_14, %c6, %c0_15] : memref<1x42x64xbf16, #tpu.memory_space<vmem>>, vector<1x24x64xbf16>
    %18 = vector.shape_cast %17 : vector<1x24x64xbf16> to vector<24x64xbf16>
    %c192 = arith.constant 192 : index
    %c0_16 = arith.constant 0 : index
    %19 = vector.load %arg2[%c192, %c0_16] : memref<576x128xbf16, #tpu.memory_space<vmem>>, vector<64x128xbf16>
    %cst_17 = arith.constant dense<0.000000e+00> : vector<24x128xf32>
    %20 = tpu.matmul %18, %19, %cst_17 {dimension_numbers = #tpu.dot_dimension_numbers<[1], [0], [0], [1], [0, 0, 1, 1], [], []>} : vector<24x64xbf16>, vector<64x128xbf16>, vector<24x128xf32> -> vector<24x128xf32>
    %21 = arith.addf %16, %20 : vector<24x128xf32>
    %c0_18 = arith.constant 0 : index
    %c7 = arith.constant 7 : index
    %c0_19 = arith.constant 0 : index
    %22 = vector.load %arg1[%c0_18, %c7, %c0_19] : memref<1x42x64xbf16, #tpu.memory_space<vmem>>, vector<1x24x64xbf16>
    %23 = vector.shape_cast %22 : vector<1x24x64xbf16> to vector<24x64xbf16>
    %c256 = arith.constant 256 : index
    %c0_20 = arith.constant 0 : index
    %24 = vector.load %arg2[%c256, %c0_20] : memref<576x128xbf16, #tpu.memory_space<vmem>>, vector<64x128xbf16>
    %cst_21 = arith.constant dense<0.000000e+00> : vector<24x128xf32>
    %25 = tpu.matmul %23, %24, %cst_21 {dimension_numbers = #tpu.dot_dimension_numbers<[1], [0], [0], [1], [0, 0, 1, 1], [], []>} : vector<24x64xbf16>, vector<64x128xbf16>, vector<24x128xf32> -> vector<24x128xf32>
    %26 = arith.addf %21, %25 : vector<24x128xf32>
    %c0_22 = arith.constant 0 : index
    %c8 = arith.constant 8 : index
    %c0_23 = arith.constant 0 : index
    %27 = vector.load %arg1[%c0_22, %c8, %c0_23] : memref<1x42x64xbf16, #tpu.memory_space<vmem>>, vector<1x24x64xbf16>
    %28 = vector.shape_cast %27 : vector<1x24x64xbf16> to vector<24x64xbf16>
    %c320 = arith.constant 320 : index
    %c0_24 = arith.constant 0 : index
    %29 = vector.load %arg2[%c320, %c0_24] : memref<576x128xbf16, #tpu.memory_space<vmem>>, vector<64x128xbf16>
    %cst_25 = arith.constant dense<0.000000e+00> : vector<24x128xf32>
    %30 = tpu.matmul %28, %29, %cst_25 {dimension_numbers = #tpu.dot_dimension_numbers<[1], [0], [0], [1], [0, 0, 1, 1], [], []>} : vector<24x64xbf16>, vector<64x128xbf16>, vector<24x128xf32> -> vector<24x128xf32>
    %31 = arith.addf %26, %30 : vector<24x128xf32>
    %c0_26 = arith.constant 0 : index
    %c12 = arith.constant 12 : index
    %c0_27 = arith.constant 0 : index
    %32 = vector.load %arg1[%c0_26, %c12, %c0_27] : memref<1x42x64xbf16, #tpu.memory_space<vmem>>, vector<1x24x64xbf16>
    %33 = vector.shape_cast %32 : vector<1x24x64xbf16> to vector<24x64xbf16>
    %c384 = arith.constant 384 : index
    %c0_28 = arith.constant 0 : index
    %34 = vector.load %arg2[%c384, %c0_28] : memref<576x128xbf16, #tpu.memory_space<vmem>>, vector<64x128xbf16>
    %cst_29 = arith.constant dense<0.000000e+00> : vector<24x128xf32>
    %35 = tpu.matmul %33, %34, %cst_29 {dimension_numbers = #tpu.dot_dimension_numbers<[1], [0], [0], [1], [0, 0, 1, 1], [], []>} : vector<24x64xbf16>, vector<64x128xbf16>, vector<24x128xf32> -> vector<24x128xf32>
    %36 = arith.addf %31, %35 : vector<24x128xf32>
    %c0_30 = arith.constant 0 : index
    %c13 = arith.constant 13 : index
    %c0_31 = arith.constant 0 : index
    %37 = vector.load %arg1[%c0_30, %c13, %c0_31] : memref<1x42x64xbf16, #tpu.memory_space<vmem>>, vector<1x24x64xbf16>
    %38 = vector.shape_cast %37 : vector<1x24x64xbf16> to vector<24x64xbf16>
    %c448 = arith.constant 448 : index
    %c0_32 = arith.constant 0 : index
    %39 = vector.load %arg2[%c448, %c0_32] : memref<576x128xbf16, #tpu.memory_space<vmem>>, vector<64x128xbf16>
    %cst_33 = arith.constant dense<0.000000e+00> : vector<24x128xf32>
    %40 = tpu.matmul %38, %39, %cst_33 {dimension_numbers = #tpu.dot_dimension_numbers<[1], [0], [0], [1], [0, 0, 1, 1], [], []>} : vector<24x64xbf16>, vector<64x128xbf16>, vector<24x128xf32> -> vector<24x128xf32>
    %41 = arith.addf %36, %40 : vector<24x128xf32>
    %c0_34 = arith.constant 0 : index
    %c14 = arith.constant 14 : index
    %c0_35 = arith.constant 0 : index
    %42 = vector.load %arg1[%c0_34, %c14, %c0_35] : memref<1x42x64xbf16, #tpu.memory_space<vmem>>, vector<1x24x64xbf16>
    %43 = vector.shape_cast %42 : vector<1x24x64xbf16> to vector<24x64xbf16>
    %c512 = arith.constant 512 : index
    %c0_36 = arith.constant 0 : index
    %44 = vector.load %arg2[%c512, %c0_36] : memref<576x128xbf16, #tpu.memory_space<vmem>>, vector<64x128xbf16>
    %cst_37 = arith.constant dense<0.000000e+00> : vector<24x128xf32>
    %45 = tpu.matmul %43, %44, %cst_37 {dimension_numbers = #tpu.dot_dimension_numbers<[1], [0], [0], [1], [0, 0, 1, 1], [], []>} : vector<24x64xbf16>, vector<64x128xbf16>, vector<24x128xf32> -> vector<24x128xf32>
    %46 = arith.addf %41, %45 : vector<24x128xf32>
    %cst_38 = arith.constant 0.000000e+00 : f32
    %47 = vector.broadcast %cst_38 : f32 to vector<24x128xf32>
    %48 = arith.maximumf %46, %47 : vector<24x128xf32>
    %c0_39 = arith.constant 0 : index
    %c0_40 = arith.constant 0 : index
    %49 = vector.load %arg4[%c0_39, %c0_40] : memref<1x128xf32, #tpu.memory_space<vmem>>, vector<1x128xf32>
    %50 = vector.broadcast %49 : vector<1x128xf32> to vector<24x128xf32>
    %51 = arith.mulf %48, %50 : vector<24x128xf32>
    %cst_41 = arith.constant dense<0.000000e+00> : vector<24xf32>
    %52 = vector.multi_reduction <add>, %51, %cst_41 [1] : vector<24x128xf32> to vector<24xf32>
    %53 = vector.shape_cast %52 : vector<24xf32> to vector<24x1xf32>
    %c0_42 = arith.constant 0 : index
    %c0_43 = arith.constant 0 : index
    %54 = vector.load %arg5[%c0_42, %c0_43] : memref<1x1xf32, #tpu.memory_space<vmem>>, vector<1x1xf32>
    %55 = vector.broadcast %54 : vector<1x1xf32> to vector<24x1xf32>
    %56 = arith.addf %53, %55 : vector<24x1xf32>
    %c0_44 = arith.constant 0 : index
    %c0_45 = arith.constant 0 : index
    %c0_46 = arith.constant 0 : index
    %57 = vector.load %arg6[%c0_44, %c0_45, %c0_46] : memref<1x24x1xf32, #tpu.memory_space<vmem>>, vector<1x24x1xf32>
    %58 = vector.shape_cast %57 : vector<1x24x1xf32> to vector<24x1xf32>
    %59 = vector.shape_cast %56 : vector<24x1xf32> to vector<1x24x1xf32>
    tpu.vector_store %arg6[%c0_44, %c0_45, %c0_46], %59 {strides = array<i32>} : memref<1x24x1xf32, #tpu.memory_space<vmem>>, vector<1x24x1xf32>,
    return
  }
  func.func @transform_0(%arg0: i32) -> (i32, i32, i32) {
    %c0_i32 = arith.constant 0 : i32
    %c0_i32_0 = arith.constant 0 : i32
    %c0_i32_1 = arith.constant 0 : i32
    return %arg0, %c0_i32, %c0_i32_0 : i32, i32, i32
  }
  func.func @transform_1(%arg0: i32) -> (i32, i32) {
    %c0_i32 = arith.constant 0 : i32
    %c0_i32_0 = arith.constant 0 : i32
    %c0_i32_1 = arith.constant 0 : i32
    return %c0_i32, %c0_i32_0 : i32, i32
  }
  func.func @transform_2(%arg0: i32) -> (i32, i32) {
    %c0_i32 = arith.constant 0 : i32
    %c0_i32_0 = arith.constant 0 : i32
    %c0_i32_1 = arith.constant 0 : i32
    return %c0_i32, %c0_i32_0 : i32, i32
  }
  func.func @transform_3(%arg0: i32) -> (i32, i32) {
    %c0_i32 = arith.constant 0 : i32
    %c0_i32_0 = arith.constant 0 : i32
    %c0_i32_1 = arith.constant 0 : i32
    return %c0_i32, %c0_i32_0 : i32, i32
  }
  func.func @transform_4(%arg0: i32) -> (i32, i32) {
    %c0_i32 = arith.constant 0 : i32
    %c0_i32_0 = arith.constant 0 : i32
    %c0_i32_1 = arith.constant 0 : i32
    return %c0_i32, %c0_i32_0 : i32, i32
  }
  func.func @transform_5(%arg0: i32) -> (i32, i32, i32) {
    %c0_i32 = arith.constant 0 : i32
    %c0_i32_0 = arith.constant 0 : i32
    %c0_i32_1 = arith.constant 0 : i32
    return %arg0, %c0_i32, %c0_i32_0 : i32, i32, i32
  }
}

</mosaic_0001>

<bundles_post_ra>
// kernel: video_comperator_forward.3
= control target key start
LH: loop header
LB: loop body
LE: loop exit
PB: predicated region body
PF: predicated region fallthrough
CT: control target
= control target key end

     0   :  { %s2533_s12 = smov 0   ;;  %s3233_s0 = inlined_call_operand.vmem [shape: bf16[2,90,4], index: 0, kind: input, shape index: {}]   ;;  %s3234_s1 = inlined_call_operand.vmem [shape: bf16[4,16,32], index: 1, kind: input, shape index: {}]   ;;  %s3235_s2 = inlined_call_operand.vmem [shape: f32[1,32], index: 2, kind: input, shape index: {}]   ;;  %s3236_s3 = inlined_call_operand.vmem [shape: bf16[2,8,8,32], index: 3, kind: output, shape index: {}]  }
   0x1 LB: > { %s1888_s13 = sadd.s32 4294967295, %s2505_s12   ;;  %p1892_p0 = scmp.ge.s32.totalorder %s2505_s12, 1  ;;  %s2505_s12 = sphi %s2533_s12, %s13_s12  }
   0x2   : > { %p137_p1 = scmp.lt.s32.totalorder %s2505_s12, 3 }
   0x4   : > { %p138_p2 = pnand %p1892_p0, %p137_p1 }
   0x5   : > { %p161_p3 = scmp.lt.s32.totalorder (!%p138_p2), %s1888_s13, 1  ;;  %s2507_s16 = smov (!%p138_p2), 0  }
   0x6   : > { %141 = sbr.rel (%p138_p2) target bundleno = 547 (0x223), region = 32 }
   0xb   : > { %v185_v0 = vld [vmem:[%s3234_s1] sm:$0xf]  ;;  %vm227_vm0 = vcmask 1041408   ;;  %v2511_v1 = vmov 0.0   ;;  %vm2512_vm1 = vmmov 0   ;;  %s3238_s13 = smov (!%p161_p3, %s1888_s13), 1 }
   0xc   : > { %2103 = vmatprep.subr.bf16.mxu0 %v2511_v1  ;;  %v229_v2 = vsel %vm227_vm0, %v185_v0, 0  ;;  %v1908_v3 = vcombine.low %v185_v0, %v185_v0  ;;  %2105 = vmatprep.mubr.msk.bf16.mxu0 %vm2512_vm1, %v2511_v1  ;;  %v186_v5 = vld [vmem:[%s3234_s1 + $0x4] sm:$0xf]  ;;  %s2455_s18 = smul.u32 48, %s3238_s13  ;;  %s2006_s19 = sshll.u32 %s3238_s13, 5  ;;  %vm211_vm2 = vcmask 31744  }
   0xd   : > { %2104 = vmatpush3.bf16.msra.mxu0 %v229_v2  ;;  %2125 = vmatprep.subr.bf16.mxu1 %v2511_v1  ;;  %s2558_s22 = scalar_lea.vmem %s3236_s3, %s2006_s19  ;;  %v524_v7 = vsel %vm227_vm0, %v186_v5, 0  ;;  %v1925_v10 = vcombine.low %v186_v5, %v186_v5  ;;  %vm321_vm3 = vsmask.f32 7424  ;;  %v1931_v61 = vld [vmem:[%s3234_s1 + $0x8] sm:$0xf]  ;;  %vm610_vm4 = vcmask 1046528  }
   0xe   : > { %v360_v4 = vrot.slane %v1908_v3, 2  ;;  %2147 = vmatprep.subr.bf16.mxu0 %v2511_v1  ;;  %2127 = vmatprep.mubr.msk.bf16.mxu1 %vm2512_vm1, %v2511_v1  ;;  %s2564_s25 = scalar_lea.vmem %s3233_s0, %s2455_s18  ;;  %v1938_v0 = vcombine.low %v1931_v61, %v1931_v61  ;;  %vm1800_vm5 = vcmask 261120  }
   0xf   : > { %v172_v8 = vld [vmem:[%s2564_s25] sm:$0xf]  ;;  %v173_v9 = vld [vmem:[%s2564_s25 + $0x4] sm:$0xf]  ;;  %v2571_v11 = vld [vmem:[%s2564_s25 + $0x8] sm:$0xf] }
  0x10   : > { %v377_v6 = vsel %vm227_vm0, %v360_v4, 0  ;;  %v2573_v12 = vcombine.low %v172_v8, %v173_v9  ;;  %v175_v13 = vld [vmem:[%s2564_s25 + $0xc] sm:$0xf]  ;;  %v176_v14 = vld [vmem:[%s2564_s25 + $0x10] sm:$0xf]  ;;  %v623_v21 = vrot.slane %v1925_v10, 2  ;;  %v1914_v45 = vcombine.low %v173_v9, %v2571_v11 }
  0x11   : > { %2126 = vmatpush3.bf16.msra.mxu1 %v377_v6  ;;  %v2578_v15 = vld [vmem:[%s2564_s25 + $0x14] sm:$0xf]  ;;  %v2581_v16 = vcombine.low %v2571_v11, %v175_v13  ;;  %v178_v28 = vld [vmem:[%s2564_s25 + $0x18] sm:$0xf]  ;;  %v2599_v29 = vld [vmem:[%s2564_s25 + $0x1c] sm:$0xf]  ;;  %v1915_v48 = vcombine.low %v175_v13, %v176_v14 }
  0x12   : > { %2169 = vmatprep.subr.bf16.mxu1 %v2511_v1  ;;  %2106 = vmatmul.mubr.msk.bf16.vlgmr.msra.gmra.mxu0 %vm211_vm2, %v2573_v12  ;;  %v322_v17 = vshrl.u32 %v2573_v12, 16  ;;  %v324_v18 = vshll.u32 %v2573_v12, 16  ;;  %v2588_v19 = vcombine.low %v176_v14, %v2578_v15  ;;  %v640_v27 = vsel %vm227_vm0, %v623_v21, 0  ;;  %v180_v37 = vld [vmem:[%s2564_s25 + $0x20] sm:$0xf] }
  0x13   : > { %2148 = vmatpush3.bf16.msra.mxu0 %v524_v7  ;;  %2109 = vmatprep.mubr.msk.bf16.mxu0 %vm2512_vm1, %v2511_v1  ;;  %v328_v20 = vshll.u32 %v2581_v16, 16  ;;  %v332_v25 = vshrl.u32 %v2581_v16, 16  ;;  %v2609_v33 = vcombine.low %v178_v28, %v2599_v29  ;;  %v181_v38 = vld [vmem:[%s2564_s25 + $0x24] sm:$0x1]  ;;  %v472_v49 = vshll.u32 %v1914_v45, 16 }
  0x14   : > { %v326_v22 = vrot.slane %v324_v18, 1  ;;  %2191 = vmatprep.subr.bf16.mxu0 %v2511_v1  ;;  %v335_v26 = vshll.u32 %v2588_v19, 16  ;;  %v339_v35 = vshrl.u32 %v2588_v19, 16  ;;  %v1907_v41 = vcombine.low %v180_v37, %v181_v38  ;;  %v184_v58 = vld [vmem:[%s2564_s25 + $0x4] sm:$0xe] }
  0x15   : > { %v330_v23 = vrot.slane %v328_v20, 1  ;;  %v342_v36 = vshll.u32 %v2609_v33, 16  ;;  %v346_v43 = vshrl.u32 %v2609_v33, 16  ;;  %v2647_v51 = vcombine.low %v180_v37, %v180_v37 }
  0x16   : > { %v327_v24 = vor.u32 %v326_v22, %v322_v17  ;;  %v337_v32 = vrot.slane %v335_v26, 1  ;;  %v350_v44 = vshll.u32 %v1907_v41, 16  ;;  %v470_v52 = vshrl.u32 %v1914_v45, 16  ;;  %v2488_v22 = vld [vmem:[%s2564_s25 + $0x24] sm:$0x1f]  }
  0x17   : > { %v334_v31 = vor.u32 %v332_v25, %v330_v23  ;;  %v344_v40 = vrot.slane %v342_v36, 1  ;;  %v474_v53 = vrot.slane %v472_v49, 1  ;;  %v477_v54 = vshll.u32 %v1915_v48, 16  ;;  %v1955_v45 = vld [vmem:[%s3234_s1 + $0x10] sm:$0xf] }
  0x18   : > { %v2602_v30 = vsel %vm321_vm3, %v327_v24, %v330_v23  ;;  %v341_v39 = vor.u32 %v339_v35, %v337_v32  ;;  %v352_v47 = vrot.slane %v350_v44, 1  ;;  %v354_v55 = vshrl.u32 %v1907_v41, 16 }
  0x19   : > { %2128 = vmatmul.mubr.msk.bf16.vlgmr.msra.gmra.mxu1 %vm211_vm2, %v2602_v30  ;;  %v2617_v34 = vsel %vm321_vm3, %v334_v31, %v337_v32  ;;  %v348_v46 = vor.u32 %v346_v43, %v344_v40  ;;  %v475_v56 = vor.u32 %v474_v53, %v470_v52  ;;  %v479_v57 = vrot.slane %v477_v54, 1  ;;  %v1956_v52 = vld [vmem:[%s3234_s1 + $0x14] sm:$0xf] }
  0x1a   : > { %2170 = vmatpush3.bf16.msra.mxu1 %v640_v27  ;;  %2110 = vmatmul.mubr.msk.bf16.gmra.mxu0 %vm211_vm2, %v2581_v16  ;;  %v2632_v42 = vsel %vm321_vm3, %v341_v39, %v344_v40  ;;  %v1916_v59 = vcombine.low %v2578_v15, %v178_v28  ;;  %v2659_v60 = vor.u32 %v354_v55, %v352_v47  ;;  %v481_v2 = vshrl.u32 %v1915_v48, 16  ;;  %v1932_v39 = vld [vmem:[%s3234_s1 + $0xc] sm:$0xf] }
  0x1b   : > { %2131 = vmatprep.mubr.msk.bf16.mxu1 %vm2512_vm1, %v2511_v1  ;;  %2113 = vmatprep.mubr.msk.bf16.mxu0 %vm2512_vm1, %v2511_v1  ;;  %v2645_v50 = vsel %vm321_vm3, %v348_v46, %v352_v47  ;;  %v1924_v62 = vcombine.low %v184_v58, %v2571_v11  ;;  %v2666_v63 = vsel %vm321_vm3, %v475_v56, %v479_v57  ;;  %v727_v4 = vsel %vm227_vm0, %v1931_v61, 0  ;;  %v2882_v58 = vld [vmem:[%s3235_s2] ss:$0 sm:$0xff]  ;;  %v1979_v61 = vld [vmem:[%s3234_s1 + $0x18] sm:$0xf] }
  0x1c   : > { %2213 = vmatprep.subr.bf16.mxu1 %v2511_v1  ;;  %v485_v3 = vshll.u32 %v1916_v59, 16  ;;  %v612_v6 = vrot.slane %v1915_v48, 1  ;;  %v813_v7 = vrot.slane %v1938_v0, 2  ;;  %v483_v8 = vor.u32 %v481_v2, %v479_v57 }
  0x1d   : > { %v611_v5 = vrot.slane %v1924_v62, 1  ;;  %v1917_v10 = vcombine.low %v2599_v29, %v180_v37  ;;  %v489_v15 = vshrl.u32 %v1916_v59, 16  ;;  %v614_v18 = vrot.slane %v1916_v59, 1 }
  0x1e   : > { %v487_v9 = vrot.slane %v485_v3, 1  ;;  %v815_v13 = vsel %vm227_vm0, %v813_v7, 0  ;;  %v501_v26 = vshll.u32 %v2488_v22, 16  ;;  %v2722_v35 = vrot.slane %v2488_v22, 1 }
  0x1f   : > { %v2680_v11 = vsel %vm610_vm4, %v611_v5, %v612_v6  ;;  %v493_v17 = vshll.u32 %v1917_v10, 16  ;;  %v2697_v23 = vsel %vm610_vm4, %v612_v6, %v614_v18  ;;  %v497_v25 = vshrl.u32 %v1917_v10, 16 }
  0x20   : > { %v2684_v14 = vsel %vm321_vm3, %v483_v8, %v487_v9  ;;  %v491_v20 = vor.u32 %v489_v15, %v487_v9  ;;  %v616_v27 = vrot.slane %v1917_v10, 1  ;;  %v503_v29 = vrot.slane %v501_v26, 1 }
  0x21   : > { %2132 = vmatmul.mubr.msk.bf16.gmra.mxu1 %vm211_vm2, %v2617_v34  ;;  %v495_v21 = vrot.slane %v493_v17, 1  ;;  %v505_v36 = vshrl.u32 %v2488_v22, 16  ;;  %v1949_v40 = vcombine.low %v1932_v39, %v1932_v39  ;;  %v899_v41 = vsel %vm227_vm0, %v1932_v39, 0 }
  0x22   : > { %2114 = vmatmul.mubr.msk.bf16.gmra.mxu0 %vm211_vm2, %v2588_v19  ;;  %2135 = vmatprep.mubr.msk.bf16.mxu1 %vm2512_vm1, %v2511_v1  ;;  %v2711_v31 = vsel %vm610_vm4, %v614_v18, %v616_v27  ;;  %v2728_v37 = vsel %vm610_vm4, %v616_v27, %v2722_v35  ;;  %v1962_v46 = vcombine.low %v1955_v45, %v1955_v45  ;;  %v1083_v47 = vsel %vm227_vm0, %v1955_v45, 0 }
  0x23   : > { %2117 = vmatprep.mubr.msk.bf16.mxu0 %vm2512_vm1, %v2511_v1  ;;  %v2700_v24 = vsel %vm321_vm3, %v491_v20, %v495_v21  ;;  %v499_v28 = vor.u32 %v497_v25, %v495_v21  ;;  %v2730_v38 = vor.u32 %v505_v36, %v503_v29  ;;  %v985_v43 = vrot.slane %v1949_v40, 2 }
  0x24   : > { %v1169_v48 = vrot.slane %v1962_v46, 2  ;;  %v1973_v53 = vcombine.low %v1956_v52, %v1956_v52  ;;  %v1255_v54 = vsel %vm227_vm0, %v1956_v52, 0  ;;  %v1986_v2 = vcombine.low %v1979_v61, %v1979_v61 }
  0x25   : > { %v2714_v32 = vsel %vm321_vm3, %v499_v28, %v503_v29  ;;  %v987_v44 = vsel %vm227_vm0, %v985_v43, 0 }
  0x26   : > { %v1171_v49 = vsel %vm227_vm0, %v1169_v48, 0  ;;  %v1341_v55 = vrot.slane %v1973_v53, 2  ;;  %v1525_v9 = vrot.slane %v1986_v2, 2 }
  0x28   : > { %v1343_v56 = vsel %vm227_vm0, %v1341_v55, 0  ;;  %v1527_v22 = vsel %vm227_vm0, %v1525_v9, 0 }
  0x29   : > { %2136 = vmatmul.mubr.msk.bf16.gmra.mxu1 %vm211_vm2, %v2632_v42 }
  0x2a   : > { %2118 = vmatmul.mubr.msk.bf16.gmra.mxu0 %vm211_vm2, %v2609_v33  ;;  %2139 = vmatprep.mubr.msk.bf16.mxu1 %vm2512_vm1, %v2511_v1 }
  0x2b   : > { %2121 = vmatprep.mubr.msk.bf16.mxu0 %vm2512_vm1, %v2511_v1 }
  0x31   : > { %2140 = vmatmul.mubr.msk.bf16.gmra.mxu1 %vm211_vm2, %v2645_v50 }
  0x32   : > { %2122 = vmatmul.mubr.msk.bf16.gmra.mxu0 %vm211_vm2, %v2647_v51  ;;  %2143 = vmatprep.mubr.msk.bf16.mxu1 %vm2512_vm1, %v2511_v1 }
  0x33   : > { %2149 = vmatprep.mubr.msk.bf16.mxu0 %vm2512_vm1, %v2511_v1 }
  0x39   : > { %2144 = vmatmul.mubr.msk.bf16.gmra.mxu1 %vm211_vm2, %v2659_v60 }
  0x3a   : > { %2150 = vmatmul.mubr.msk.bf16.vlgmr.msra.gmra.mxu0 %vm211_vm2, %v2666_v63  ;;  %2171 = vmatprep.mubr.msk.bf16.mxu1 %vm2512_vm1, %v2511_v1 }
  0x3b   : > { %2192 = vmatpush3.bf16.msra.mxu0 %v727_v4  ;;  %2153 = vmatprep.mubr.msk.bf16.mxu0 %vm2512_vm1, %v2511_v1  ;;  %v1439_v4 = vsel %vm227_vm0, %v1979_v61, 0 }
  0x3c   : > { %2235 = vmatprep.subr.bf16.mxu0 %v2511_v1 }
  0x41   : > { %2172 = vmatmul.mubr.msk.bf16.vlgmr.msra.gmra.mxu1 %vm211_vm2, %v2680_v11 }
  0x42   : > { %2214 = vmatpush3.bf16.msra.mxu1 %v815_v13  ;;  %2154 = vmatmul.mubr.msk.bf16.gmra.mxu0 %vm211_vm2, %v2684_v14 }
  0x43   : > { %2175 = vmatprep.mubr.msk.bf16.mxu1 %vm2512_vm1, %v2511_v1  ;;  %2157 = vmatprep.mubr.msk.bf16.mxu0 %vm2512_vm1, %v2511_v1 }
  0x44   : > { %2257 = vmatprep.subr.bf16.mxu1 %v2511_v1 }
  0x49   : > { %2176 = vmatmul.mubr.msk.bf16.gmra.mxu1 %vm211_vm2, %v2697_v23 }
  0x4a   : > { %2158 = vmatmul.mubr.msk.bf16.gmra.mxu0 %vm211_vm2, %v2700_v24  ;;  %2179 = vmatprep.mubr.msk.bf16.mxu1 %vm2512_vm1, %v2511_v1 }
  0x4b   : > { %2161 = vmatprep.mubr.msk.bf16.mxu0 %vm2512_vm1, %v2511_v1 }
  0x51   : > { %2180 = vmatmul.mubr.msk.bf16.gmra.mxu1 %vm211_vm2, %v2711_v31 }
  0x52   : > { %2162 = vmatmul.mubr.msk.bf16.gmra.mxu0 %vm211_vm2, %v2714_v32  ;;  %2183 = vmatprep.mubr.msk.bf16.mxu1 %vm2512_vm1, %v2511_v1 }
  0x53   : > { %2165 = vmatprep.mubr.msk.bf16.mxu0 %vm2512_vm1, %v2511_v1 }
  0x59   : > { %2184 = vmatmul.mubr.msk.bf16.gmra.mxu1 %vm211_vm2, %v2728_v37 }
  0x5a   : > { %2166 = vmatmul.mubr.msk.bf16.gmra.mxu0 %vm211_vm2, %v2730_v38  ;;  %2187 = vmatprep.mubr.msk.bf16.mxu1 %vm2512_vm1, %v2511_v1 }
  0x5b   : > { %2193 = vmatprep.mubr.msk.bf16.mxu0 %vm2512_vm1, %v2511_v1 }
  0x61   : > { %2188 = vmatmul.mubr.msk.bf16.gmra.mxu1 %vm211_vm2, %v2722_v35 }
  0x62   : > { %2194 = vmatmul.mubr.msk.bf16.vlgmr.msra.gmra.mxu0 %vm211_vm2, %v2573_v12  ;;  %2215 = vmatprep.mubr.msk.bf16.mxu1 %vm2512_vm1, %v2511_v1 }
  0x63   : > { %2236 = vmatpush3.bf16.msra.mxu0 %v899_v41  ;;  %2197 = vmatprep.mubr.msk.bf16.mxu0 %vm2512_vm1, %v2511_v1 }
  0x64   : > { %2279 = vmatprep.subr.bf16.mxu0 %v2511_v1 }
  0x69   : > { %2216 = vmatmul.mubr.msk.bf16.vlgmr.msra.gmra.mxu1 %vm211_vm2, %v2602_v30 }
  0x6a   : > { %2258 = vmatpush3.bf16.msra.mxu1 %v987_v44  ;;  %2198 = vmatmul.mubr.msk.bf16.gmra.mxu0 %vm211_vm2, %v2581_v16 }
  0x6b   : > { %2219 = vmatprep.mubr.msk.bf16.mxu1 %vm2512_vm1, %v2511_v1  ;;  %2201 = vmatprep.mubr.msk.bf16.mxu0 %vm2512_vm1, %v2511_v1 }
  0x6c   : > { %2301 = vmatprep.subr.bf16.mxu1 %v2511_v1 }
  0x71   : > { %2220 = vmatmul.mubr.msk.bf16.gmra.mxu1 %vm211_vm2, %v2617_v34 }
  0x72   : > { %2202 = vmatmul.mubr.msk.bf16.gmra.mxu0 %vm211_vm2, %v2588_v19  ;;  %2223 = vmatprep.mubr.msk.bf16.mxu1 %vm2512_vm1, %v2511_v1 }
  0x73   : > { %2205 = vmatprep.mubr.msk.bf16.mxu0 %vm2512_vm1, %v2511_v1 }
  0x79   : > { %2224 = vmatmul.mubr.msk.bf16.gmra.mxu1 %vm211_vm2, %v2632_v42 }
  0x7a   : > { %2206 = vmatmul.mubr.msk.bf16.gmra.mxu0 %vm211_vm2, %v2609_v33  ;;  %2227 = vmatprep.mubr.msk.bf16.mxu1 %vm2512_vm1, %v2511_v1 }
  0x7b   : > { %2209 = vmatprep.mubr.msk.bf16.mxu0 %vm2512_vm1, %v2511_v1 }
  0x81   : > { %2228 = vmatmul.mubr.msk.bf16.gmra.mxu1 %vm211_vm2, %v2645_v50 }
  0x82   : > { %2210 = vmatmul.mubr.msk.bf16.gmra.mxu0 %vm211_vm2, %v2647_v51  ;;  %2231 = vmatprep.mubr.msk.bf16.mxu1 %vm2512_vm1, %v2511_v1 }
  0x83   : > { %2237 = vmatprep.mubr.msk.bf16.mxu0 %vm2512_vm1, %v2511_v1 }
  0x89   : > { %2232 = vmatmul.mubr.msk.bf16.gmra.mxu1 %vm211_vm2, %v2659_v60 }
  0x8a   : > { %2238 = vmatmul.mubr.msk.bf16.vlgmr.msra.gmra.mxu0 %vm211_vm2, %v2666_v63  ;;  %2259 = vmatprep.mubr.msk.bf16.mxu1 %vm2512_vm1, %v2511_v1 }
  0x8b   : > { %2280 = vmatpush3.bf16.msra.mxu0 %v1083_v47  ;;  %2241 = vmatprep.mubr.msk.bf16.mxu0 %vm2512_vm1, %v2511_v1 }
  0x8c   : > { %2323 = vmatprep.subr.bf16.mxu0 %v2511_v1 }
  0x91   : > { %2260 = vmatmul.mubr.msk.bf16.vlgmr.msra.gmra.mxu1 %vm211_vm2, %v2680_v11 }
  0x92   : > { %2302 = vmatpush3.bf16.msra.mxu1 %v1171_v49  ;;  %2242 = vmatmul.mubr.msk.bf16.gmra.mxu0 %vm211_vm2, %v2684_v14 }
  0x93   : > { %2263 = vmatprep.mubr.msk.bf16.mxu1 %vm2512_vm1, %v2511_v1  ;;  %2245 = vmatprep.mubr.msk.bf16.mxu0 %vm2512_vm1, %v2511_v1 }
  0x94   : > { %2345 = vmatprep.subr.bf16.mxu1 %v2511_v1 }
  0x99   : > { %2264 = vmatmul.mubr.msk.bf16.gmra.mxu1 %vm211_vm2, %v2697_v23 }
  0x9a   : > { %2246 = vmatmul.mubr.msk.bf16.gmra.mxu0 %vm211_vm2, %v2700_v24  ;;  %2267 = vmatprep.mubr.msk.bf16.mxu1 %vm2512_vm1, %v2511_v1 }
  0x9b   : > { %2249 = vmatprep.mubr.msk.bf16.mxu0 %vm2512_vm1, %v2511_v1 }
  0xa1   : > { %2268 = vmatmul.mubr.msk.bf16.gmra.mxu1 %vm211_vm2, %v2711_v31 }
  0xa2   : > { %2250 = vmatmul.mubr.msk.bf16.gmra.mxu0 %vm211_vm2, %v2714_v32  ;;  %2271 = vmatprep.mubr.msk.bf16.mxu1 %vm2512_vm1, %v2511_v1 }
  0xa3   : > { %2253 = vmatprep.mubr.msk.bf16.mxu0 %vm2512_vm1, %v2511_v1 }
  0xa9   : > { %2272 = vmatmul.mubr.msk.bf16.gmra.mxu1 %vm211_vm2, %v2728_v37 }
  0xaa   : > { %2254 = vmatmul.mubr.msk.bf16.gmra.mxu0 %vm211_vm2, %v2730_v38  ;;  %2275 = vmatprep.mubr.msk.bf16.mxu1 %vm2512_vm1, %v2511_v1 }
  0xab   : > { %2281 = vmatprep.mubr.msk.bf16.mxu0 %vm2512_vm1, %v2511_v1 }
  0xb1   : > { %2276 = vmatmul.mubr.msk.bf16.gmra.mxu1 %vm211_vm2, %v2722_v35 }
  0xb2   : > { %2282 = vmatmul.mubr.msk.bf16.vlgmr.msra.gmra.mxu0 %vm211_vm2, %v2573_v12  ;;  %2303 = vmatprep.mubr.msk.bf16.mxu1 %vm2512_vm1, %v2511_v1 }
  0xb3   : > { %2324 = vmatpush3.bf16.msra.mxu0 %v1255_v54  ;;  %2285 = vmatprep.mubr.msk.bf16.mxu0 %vm2512_vm1, %v2511_v1 }
  0xb4   : > { %2367 = vmatprep.subr.bf16.mxu0 %v2511_v1 }
  0xb9   : > { %2304 = vmatmul.mubr.msk.bf16.vlgmr.msra.gmra.mxu1 %vm211_vm2, %v2602_v30 }
  0xba   : > { %2346 = vmatpush3.bf16.msra.mxu1 %v1343_v56  ;;  %2286 = vmatmul.mubr.msk.bf16.gmra.mxu0 %vm211_vm2, %v2581_v16 }
  0xbb   : > { %2307 = vmatprep.mubr.msk.bf16.mxu1 %vm2512_vm1, %v2511_v1  ;;  %2289 = vmatprep.mubr.msk.bf16.mxu0 %vm2512_vm1, %v2511_v1 }
  0xbc   : > { %2389 = vmatprep.subr.bf16.mxu1 %v2511_v1 }
  0xc1   : > { %2308 = vmatmul.mubr.msk.bf16.gmra.mxu1 %vm211_vm2, %v2617_v34 }
  0xc2   : > { %2290 = vmatmul.mubr.msk.bf16.gmra.mxu0 %vm211_vm2, %v2588_v19  ;;  %2311 = vmatprep.mubr.msk.bf16.mxu1 %vm2512_vm1, %v2511_v1 }
  0xc3   : > { %2293 = vmatprep.mubr.msk.bf16.mxu0 %vm2512_vm1, %v2511_v1 }
  0xc9   : > { %2312 = vmatmul.mubr.msk.bf16.gmra.mxu1 %vm211_vm2, %v2632_v42 }
  0xca   : > { %2294 = vmatmul.mubr.msk.bf16.gmra.mxu0 %vm211_vm2, %v2609_v33  ;;  %2315 = vmatprep.mubr.msk.bf16.mxu1 %vm2512_vm1, %v2511_v1 }
  0xcb   : > { %2297 = vmatprep.mubr.msk.bf16.mxu0 %vm2512_vm1, %v2511_v1 }
  0xd1   : > { %2316 = vmatmul.mubr.msk.bf16.gmra.mxu1 %vm211_vm2, %v2645_v50 }
  0xd2   : > { %v265_v57 = vpop.f32.mrf.mxu0  ;;  %2298 = vmatmul.mubr.msk.bf16.gmra.mxu0 %vm211_vm2, %v2647_v51  ;;  %2319 = vmatprep.mubr.msk.bf16.mxu1 %vm2512_vm1, %v2511_v1 }
  0xd3   : > { %2325 = vmatprep.mubr.msk.bf16.mxu0 %vm2512_vm1, %v2511_v1  ;;  %v309_v62 = vadd.f32 %v2882_v58, %v265_v57 }
  0xd4   : > { %v2107_v59 = vpop.f32.mrf.mxu0 }
  0xd6   : > { %v268_v0 = vpop.f32.mrf.mxu0 }
  0xd7   : > { %v310_v10 = vadd.f32 %v2882_v58, %v268_v0 }
  0xd8   : > { %v2108_v3 = vpop.f32.mrf.mxu0 }
  0xd9   : > { %v413_v5 = vpop.f32.mrf.mxu1  ;;  %2320 = vmatmul.mubr.msk.bf16.gmra.mxu1 %vm211_vm2, %v2659_v60 }
  0xda   : > { %v2893_v6 = vadd.f32 %v413_v5, %v309_v62  ;;  %v273_v7 = vpop.f32.mrf.mxu0  ;;  %2326 = vmatmul.mubr.msk.bf16.vlgmr.msra.gmra.mxu0 %vm211_vm2, %v2666_v63  ;;  %2347 = vmatprep.mubr.msk.bf16.mxu1 %vm2512_vm1, %v2511_v1 }
  0xdb   : > { %v2129_v8 = vpop.f32.mrf.mxu1  ;;  %2368 = vmatpush3.bf16.msra.mxu0 %v1439_v4  ;;  %2329 = vmatprep.mubr.msk.bf16.mxu0 %vm2512_vm1, %v2511_v1  ;;  %v311_v17 = vadd.f32 %v2882_v58, %v273_v7 }
  0xdc   : > { %v2111_v13 = vpop.f32.mrf.mxu0  ;;  %2411 = vmatprep.subr.bf16.mxu0 %v2511_v1 }
  0xdd   : > { %v416_v15 = vpop.f32.mrf.mxu1 }
  0xde   : > { %v2904_v18 = vadd.f32 %v416_v15, %v310_v10  ;;  %v276_v20 = vpop.f32.mrf.mxu0 }
  0xdf   : > { %v2130_v21 = vpop.f32.mrf.mxu1  ;;  %v312_v36 = vadd.f32 %v2882_v58, %v276_v20 }
  0xe0   : > { %v2112_v25 = vpop.f32.mrf.mxu0 }
  0xe1   : > { %v421_v26 = vpop.f32.mrf.mxu1  ;;  %2348 = vmatmul.mubr.msk.bf16.vlgmr.msra.gmra.mxu1 %vm211_vm2, %v2680_v11 }
  0xe2   : > { %v2909_v27 = vadd.f32 %v421_v26, %v311_v17  ;;  %2390 = vmatpush3.bf16.msra.mxu1 %v1527_v22  ;;  %v281_v28 = vpop.f32.mrf.mxu0  ;;  %2330 = vmatmul.mubr.msk.bf16.gmra.mxu0 %vm211_vm2, %v2684_v14 }
  0xe3   : > { %v2133_v29 = vpop.f32.mrf.mxu1  ;;  %2351 = vmatprep.mubr.msk.bf16.mxu1 %vm2512_vm1, %v2511_v1  ;;  %2333 = vmatprep.mubr.msk.bf16.mxu0 %vm2512_vm1, %v2511_v1  ;;  %v313_v41 = vadd.f32 %v2882_v58, %v281_v28 }
  0xe4   : > { %v2115_v39 = vpop.f32.mrf.mxu0  ;;  %2433 = vmatprep.subr.bf16.mxu1 %v2511_v1 }
  0xe5   : > { %v424_v40 = vpop.f32.mrf.mxu1 }
  0xe6   : > { %v2920_v43 = vadd.f32 %v424_v40, %v312_v36  ;;  %v284_v44 = vpop.f32.mrf.mxu0  ;;  %v1980_v36 = vld [vmem:[%s3234_s1 + $0x1c] sm:$0xf] }
  0xe7   : > { %v2134_v45 = vpop.f32.mrf.mxu1  ;;  %v314_v53 = vadd.f32 %v2882_v58, %v284_v44  ;;  %v1997_v44 = vcombine.low %v1980_v36, %v1980_v36 }
  0xe8   : > { %v2116_v46 = vpop.f32.mrf.mxu0 }
  0xe9   : > { %v429_v47 = vpop.f32.mrf.mxu1  ;;  %2352 = vmatmul.mubr.msk.bf16.gmra.mxu1 %vm211_vm2, %v2697_v23  ;;  %v1611_v46 = vsel %vm227_vm0, %v1980_v36, 0 }
  0xea   : > { %v2924_v48 = vadd.f32 %v429_v47, %v313_v41  ;;  %v289_v49 = vpop.f32.mrf.mxu0  ;;  %2334 = vmatmul.mubr.msk.bf16.gmra.mxu0 %vm211_vm2, %v2700_v24  ;;  %2355 = vmatprep.mubr.msk.bf16.mxu1 %vm2512_vm1, %v2511_v1 }
  0xeb   : > { %v2137_v52 = vpop.f32.mrf.mxu1  ;;  %2337 = vmatprep.mubr.msk.bf16.mxu0 %vm2512_vm1, %v2511_v1  ;;  %v315_v56 = vadd.f32 %v2882_v58, %v289_v49 }
  0xec   : > { %v2119_v54 = vpop.f32.mrf.mxu0 }
  0xed   : > { %v432_v55 = vpop.f32.mrf.mxu1 }
  0xee   : > { %v2934_v57 = vadd.f32 %v432_v55, %v314_v53  ;;  %v292_v59 = vpop.f32.mrf.mxu0  ;;  %v1697_v53 = vrot.slane %v1997_v44, 2 }
  0xef   : > { %v2138_v61 = vpop.f32.mrf.mxu1  ;;  %v316_v5 = vadd.f32 %v2882_v58, %v292_v59 }
  0xf0   : > { %v2120_v62 = vpop.f32.mrf.mxu0 }
  0xf1   : > { %v437_v0 = vpop.f32.mrf.mxu1  ;;  %2356 = vmatmul.mubr.msk.bf16.gmra.mxu1 %vm211_vm2, %v2711_v31 }
  0xf2   : > { %v2938_v2 = vadd.f32 %v437_v0, %v315_v56  ;;  %v297_v3 = vpop.f32.mrf.mxu0  ;;  %2338 = vmatmul.mubr.msk.bf16.gmra.mxu0 %vm211_vm2, %v2714_v32  ;;  %2359 = vmatprep.mubr.msk.bf16.mxu1 %vm2512_vm1, %v2511_v1 }
  0xf3   : > { %v2141_v4 = vpop.f32.mrf.mxu1  ;;  %2341 = vmatprep.mubr.msk.bf16.mxu0 %vm2512_vm1, %v2511_v1  ;;  %v317_v9 = vadd.f32 %v2882_v58, %v297_v3 }
  0xf4   : > { %v2123_v7 = vpop.f32.mrf.mxu0 }
  0xf5   : > { %v440_v8 = vpop.f32.mrf.mxu1 }
  0xf6   : > { %v2948_v10 = vadd.f32 %v440_v8, %v316_v5  ;;  %v300_v13 = vpop.f32.mrf.mxu0 }
  0xf7   : > { %v2142_v15 = vpop.f32.mrf.mxu1 }
  0xf8   : > { %v2124_v17 = vpop.f32.mrf.mxu0 }
  0xf9   : > { %v445_v20 = vpop.f32.mrf.mxu1  ;;  %2360 = vmatmul.mubr.msk.bf16.gmra.mxu1 %vm211_vm2, %v2728_v37 }
  0xfa   : > { %v2952_v21 = vadd.f32 %v445_v20, %v317_v9  ;;  %v560_v22 = vpop.f32.mrf.mxu0  ;;  %2342 = vmatmul.mubr.msk.bf16.gmra.mxu0 %vm211_vm2, %v2730_v38  ;;  %2363 = vmatprep.mubr.msk.bf16.mxu1 %vm2512_vm1, %v2511_v1 }
  0xfb   : > { %v598_v25 = vadd.f32 %v560_v22, %v2893_v6  ;;  %v2145_v26 = vpop.f32.mrf.mxu1  ;;  %2369 = vmatprep.mubr.msk.bf16.mxu0 %vm2512_vm1, %v2511_v1 }
  0xfc   : > { %v2151_v28 = vpop.f32.mrf.mxu0 }
  0xfd   : > { %v448_v29 = vpop.f32.mrf.mxu1 }
  0xfe   : > { %v563_v39 = vpop.f32.mrf.mxu0 }
  0xff   : > { %v599_v40 = vadd.f32 %v563_v39, %v2904_v18  ;;  %v2146_v41 = vpop.f32.mrf.mxu1 }
 0x100   : > { %v2152_v45 = vpop.f32.mrf.mxu0 }
 0x101   : > { %v676_v47 = vpop.f32.mrf.mxu1  ;;  %2364 = vmatmul.mubr.msk.bf16.gmra.mxu1 %vm211_vm2, %v2722_v35 }
 0x102   : > { %v2968_v6 = vadd.f32 %v676_v47, %v598_v25  ;;  %v568_v49 = vpop.f32.mrf.mxu0  ;;  %2370 = vmatmul.mubr.msk.bf16.vlgmr.msra.gmra.mxu0 %vm211_vm2, %v2573_v12  ;;  %2391 = vmatprep.mubr.msk.bf16.mxu1 %vm2512_vm1, %v2511_v1  ;;  %v1699_v12 = vsel %vm227_vm0, %v1697_v53, 0 }
 0x103   : > { %v600_v18 = vadd.f32 %v568_v49, %v2909_v27  ;;  %v2173_v52 = vpop.f32.mrf.mxu1  ;;  %2412 = vmatpush3.bf16.msra.mxu0 %v1611_v46  ;;  %2373 = vmatprep.mubr.msk.bf16.mxu0 %vm2512_vm1, %v2511_v1 }
 0x104   : > { %v2155_v54 = vpop.f32.mrf.mxu0 }
 0x105   : > { %v679_v55 = vpop.f32.mrf.mxu1 }
 0x106   : > { %v2977_v56 = vadd.f32 %v679_v55, %v599_v40  ;;  %v571_v59 = vpop.f32.mrf.mxu0 }
 0x107   : > { %v601_v61 = vadd.f32 %v571_v59, %v2920_v43  ;;  %v2174_v62 = vpop.f32.mrf.mxu1 }
 0x108   : > { %v2156_v0 = vpop.f32.mrf.mxu0 }
 0x109   : > { %v684_v3 = vpop.f32.mrf.mxu1  ;;  %2392 = vmatmul.mubr.msk.bf16.vlgmr.msra.gmra.mxu1 %vm211_vm2, %v2602_v30 }
 0x10a   : > { %v2983_v27 = vadd.f32 %v684_v3, %v600_v18  ;;  %2434 = vmatpush3.bf16.msra.mxu1 %v1699_v12  ;;  %v576_v4 = vpop.f32.mrf.mxu0  ;;  %2374 = vmatmul.mubr.msk.bf16.gmra.mxu0 %vm211_vm2, %v2581_v16 }
 0x10b   : > { %v602_v5 = vadd.f32 %v576_v4, %v2924_v48  ;;  %v2177_v7 = vpop.f32.mrf.mxu1  ;;  %2395 = vmatprep.mubr.msk.bf16.mxu1 %vm2512_vm1, %v2511_v1  ;;  %2377 = vmatprep.mubr.msk.bf16.mxu0 %vm2512_vm1, %v2511_v1 }
 0x10c   : > { %v2159_v43 = vpop.f32.mrf.mxu0 }
 0x10d   : > { %v687_v8 = vpop.f32.mrf.mxu1 }
 0x10e   : > { %v2992_v9 = vadd.f32 %v687_v8, %v601_v61  ;;  %v579_v30 = vpop.f32.mrf.mxu0 }
 0x10f   : > { %v603_v13 = vadd.f32 %v579_v30, %v2934_v57  ;;  %v2178_v15 = vpop.f32.mrf.mxu1 }
 0x110   : > { %v2160_v17 = vpop.f32.mrf.mxu0 }
 0x111   : > { %v692_v20 = vpop.f32.mrf.mxu1  ;;  %2396 = vmatmul.mubr.msk.bf16.gmra.mxu1 %vm211_vm2, %v2617_v34 }
 0x112   : > { %v2997_v16 = vadd.f32 %v692_v20, %v602_v5  ;;  %v584_v48 = vpop.f32.mrf.mxu0  ;;  %2378 = vmatmul.mubr.msk.bf16.gmra.mxu0 %vm211_vm2, %v2588_v19  ;;  %2399 = vmatprep.mubr.msk.bf16.mxu1 %vm2512_vm1, %v2511_v1 }
 0x113   : > { %v604_v22 = vadd.f32 %v584_v48, %v2938_v2  ;;  %v2181_v25 = vpop.f32.mrf.mxu1  ;;  %2381 = vmatprep.mubr.msk.bf16.mxu0 %vm2512_vm1, %v2511_v1 }
 0x114   : > { %v2163_v57 = vpop.f32.mrf.mxu0 }
 0x115   : > { %v695_v26 = vpop.f32.mrf.mxu1 }
 0x116   : > { %v3006_v28 = vadd.f32 %v695_v26, %v603_v13  ;;  %v587_v34 = vpop.f32.mrf.mxu0 }
 0x117   : > { %v605_v29 = vadd.f32 %v587_v34, %v2948_v10  ;;  %v2182_v36 = vpop.f32.mrf.mxu1 }
 0x118   : > { %v2164_v39 = vpop.f32.mrf.mxu0 }
 0x119   : > { %v700_v40 = vpop.f32.mrf.mxu1  ;;  %2400 = vmatmul.mubr.msk.bf16.gmra.mxu1 %vm211_vm2, %v2632_v42 }
 0x11a   : > { %v3011_v19 = vadd.f32 %v700_v40, %v604_v22  ;;  %v592_v2 = vpop.f32.mrf.mxu0  ;;  %2382 = vmatmul.mubr.msk.bf16.gmra.mxu0 %vm211_vm2, %v2609_v33  ;;  %2403 = vmatprep.mubr.msk.bf16.mxu1 %vm2512_vm1, %v2511_v1 }
 0x11b   : > { %v606_v41 = vadd.f32 %v592_v2, %v2952_v21  ;;  %v2185_v44 = vpop.f32.mrf.mxu1  ;;  %2385 = vmatprep.mubr.msk.bf16.mxu0 %vm2512_vm1, %v2511_v1 }
 0x11c   : > { %v2167_v10 = vpop.f32.mrf.mxu0 }
 0x11d   : > { %v703_v45 = vpop.f32.mrf.mxu1 }
 0x11e   : > { %v3020_v46 = vadd.f32 %v703_v45, %v605_v29  ;;  %v595_v42 = vpop.f32.mrf.mxu0 }
 0x11f   : > { %v2186_v47 = vpop.f32.mrf.mxu1 }
 0x120   : > { %v2168_v49 = vpop.f32.mrf.mxu0 }
 0x121   : > { %v708_v18 = vpop.f32.mrf.mxu1  ;;  %2404 = vmatmul.mubr.msk.bf16.gmra.mxu1 %vm211_vm2, %v2645_v50 }
 0x122   : > { %v3024_v33 = vadd.f32 %v708_v18, %v606_v41  ;;  %v763_v52 = vpop.f32.mrf.mxu0  ;;  %2386 = vmatmul.mubr.msk.bf16.gmra.mxu0 %vm211_vm2, %v2647_v51  ;;  %2407 = vmatprep.mubr.msk.bf16.mxu1 %vm2512_vm1, %v2511_v1 }
 0x123   : > { %v2189_v21 = vpop.f32.mrf.mxu1  ;;  %2413 = vmatprep.mubr.msk.bf16.mxu0 %vm2512_vm1, %v2511_v1  ;;  %v801_v55 = vadd.f32 %v2882_v58, %v763_v52 }
 0x124   : > { %v2195_v53 = vpop.f32.mrf.mxu0 }
 0x125   : > { %v711_v54 = vpop.f32.mrf.mxu1 }
 0x126   : > { %v766_v59 = vpop.f32.mrf.mxu0 }
 0x127   : > { %v2190_v61 = vpop.f32.mrf.mxu1  ;;  %v802_v3 = vadd.f32 %v2882_v58, %v766_v59 }
 0x128   : > { %v2196_v50 = vpop.f32.mrf.mxu0 }
 0x129   : > { %v851_v62 = vpop.f32.mrf.mxu1  ;;  %2408 = vmatmul.mubr.msk.bf16.gmra.mxu1 %vm211_vm2, %v2659_v60 }
 0x12a   : > { %v3035_v12 = vadd.f32 %v851_v62, %v801_v55  ;;  %v771_v51 = vpop.f32.mrf.mxu0  ;;  %2414 = vmatmul.mubr.msk.bf16.vlgmr.msra.gmra.mxu0 %vm211_vm2, %v2666_v63  ;;  %2435 = vmatprep.mubr.msk.bf16.mxu1 %vm2512_vm1, %v2511_v1 }
 0x12b   : > { %v2217_v0 = vpop.f32.mrf.mxu1  ;;  %2417 = vmatprep.mubr.msk.bf16.mxu0 %vm2512_vm1, %v2511_v1  ;;  %v803_v7 = vadd.f32 %v2882_v58, %v771_v51 }
 0x12c   : > { %v2199_v4 = vpop.f32.mrf.mxu0 }
 0x12d   : > { %v854_v5 = vpop.f32.mrf.mxu1 }
 0x12e   : > { %v3045_v60 = vadd.f32 %v854_v5, %v802_v3  ;;  %v774_v43 = vpop.f32.mrf.mxu0 }
 0x12f   : > { %v2218_v8 = vpop.f32.mrf.mxu1  ;;  %v804_v20 = vadd.f32 %v2882_v58, %v774_v43 }
 0x130   : > { %v2200_v30 = vpop.f32.mrf.mxu0 }
 0x131   : > { %v859_v13 = vpop.f32.mrf.mxu1  ;;  %2436 = vmatmul.mubr.msk.bf16.vlgmr.msra.gmra.mxu1 %vm211_vm2, %v2680_v11 }
 0x132   : > { %v3049_v63 = vadd.f32 %v859_v13, %v803_v7  ;;  %v779_v15 = vpop.f32.mrf.mxu0  ;;  %2418 = vmatmul.mubr.msk.bf16.gmra.mxu0 %vm211_vm2, %v2684_v14  ;;  %2439 = vmatprep.mubr.msk.bf16.mxu1 %vm2512_vm1, %v2511_v1 }
 0x133   : > { %v2221_v17 = vpop.f32.mrf.mxu1  ;;  %2421 = vmatprep.mubr.msk.bf16.mxu0 %vm2512_vm1, %v2511_v1  ;;  %v805_v25 = vadd.f32 %v2882_v58, %v779_v15 }
 0x134   : > { %v2203_v48 = vpop.f32.mrf.mxu0 }
 0x135   : > { %v862_v22 = vpop.f32.mrf.mxu1 }
 0x136   : > { %v892_v11 = vadd.f32 %v862_v22, %v804_v20  ;;  %v782_v57 = vpop.f32.mrf.mxu0 }
 0x137   : > { %v2222_v26 = vpop.f32.mrf.mxu1  ;;  %v806_v40 = vadd.f32 %v2882_v58, %v782_v57 }
 0x138   : > { %v2204_v34 = vpop.f32.mrf.mxu0 }
 0x139   : > { %v867_v29 = vpop.f32.mrf.mxu1  ;;  %2440 = vmatmul.mubr.msk.bf16.gmra.mxu1 %vm211_vm2, %v2697_v23 }
 0x13a   : > { %v893_v14 = vadd.f32 %v867_v29, %v805_v25  ;;  %v787_v36 = vpop.f32.mrf.mxu0  ;;  %2422 = vmatmul.mubr.msk.bf16.gmra.mxu0 %vm211_vm2, %v2700_v24  ;;  %2443 = vmatprep.mubr.msk.bf16.mxu1 %vm2512_vm1, %v2511_v1 }
 0x13b   : > { %v2225_v39 = vpop.f32.mrf.mxu1  ;;  %2425 = vmatprep.mubr.msk.bf16.mxu0 %vm2512_vm1, %v2511_v1  ;;  %v807_v44 = vadd.f32 %v2882_v58, %v787_v36 }
 0x13c   : > { %v2207_v2 = vpop.f32.mrf.mxu0 }
 0x13d   : > { %v870_v41 = vpop.f32.mrf.mxu1 }
 0x13e   : > { %v894_v10 = vadd.f32 %v870_v41, %v806_v40  ;;  %v790_v23 = vpop.f32.mrf.mxu0 }
 0x13f   : > { %v2226_v45 = vpop.f32.mrf.mxu1  ;;  %v808_v52 = vadd.f32 %v2882_v58, %v790_v23 }
 0x140   : > { %v2208_v42 = vpop.f32.mrf.mxu0 }
 0x141   : > { %v875_v47 = vpop.f32.mrf.mxu1  ;;  %2444 = vmatmul.mubr.msk.bf16.gmra.mxu1 %vm211_vm2, %v2711_v31 }
 0x142   : > { %v895_v24 = vadd.f32 %v875_v47, %v807_v44  ;;  %v795_v49 = vpop.f32.mrf.mxu0  ;;  %2426 = vmatmul.mubr.msk.bf16.gmra.mxu0 %vm211_vm2, %v2714_v32  ;;  %2447 = vmatprep.mubr.msk.bf16.mxu1 %vm2512_vm1, %v2511_v1 }
 0x143   : > { %v2229_v18 = vpop.f32.mrf.mxu1  ;;  %2429 = vmatprep.mubr.msk.bf16.mxu0 %vm2512_vm1, %v2511_v1  ;;  %v809_v54 = vadd.f32 %v2882_v58, %v795_v49 }
 0x144   : > { %v2211_v21 = vpop.f32.mrf.mxu0 }
 0x145   : > { %v878_v53 = vpop.f32.mrf.mxu1 }
 0x146   : > { %v896_v55 = vadd.f32 %v878_v53, %v808_v52  ;;  %v798_v31 = vpop.f32.mrf.mxu0 }
 0x147   : > { %v2230_v59 = vpop.f32.mrf.mxu1 }
 0x148   : > { %v2212_v61 = vpop.f32.mrf.mxu0 }
 0x149   : > { %v883_v50 = vpop.f32.mrf.mxu1  ;;  %2448 = vmatmul.mubr.msk.bf16.gmra.mxu1 %vm211_vm2, %v2728_v37 }
 0x14a   : > { %v897_v32 = vadd.f32 %v883_v50, %v809_v54  ;;  %v935_v62 = vpop.f32.mrf.mxu0  ;;  %2430 = vmatmul.mubr.msk.bf16.gmra.mxu0 %vm211_vm2, %v2730_v38  ;;  %2451 = vmatprep.mubr.msk.bf16.mxu1 %vm2512_vm1, %v2511_v1 }
 0x14b   : > { %v973_v51 = vadd.f32 %v935_v62, %v3035_v12  ;;  %v2233_v0 = vpop.f32.mrf.mxu1 }
 0x14c   : > { %v2239_v3 = vpop.f32.mrf.mxu0 }
 0x14d   : > { %v886_v4 = vpop.f32.mrf.mxu1 }
 0x14e   : > { %v938_v5 = vpop.f32.mrf.mxu0 }
 0x14f   : > { %v974_v7 = vadd.f32 %v938_v5, %v3045_v60  ;;  %v2234_v43 = vpop.f32.mrf.mxu1 }
 0x150   : > { %v2240_v8 = vpop.f32.mrf.mxu0 }
 0x151   : > { %v1023_v30 = vpop.f32.mrf.mxu1  ;;  %2452 = vmatmul.mubr.msk.bf16.gmra.mxu1 %vm211_vm2, %v2722_v35 }
 0x152   : > { %v3089_v37 = vadd.f32 %v1023_v30, %v973_v51  ;;  %v943_v38 = vpop.f32.mrf.mxu0 }
 0x153   : > { %v975_v13 = vadd.f32 %v943_v38, %v3049_v63  ;;  %v2261_v1 = vpop.f32.mrf.mxu1 }
 0x154   : > { %v1070_v12 = vmax.f32 %v2968_v6, %v3089_v37  ;;  %v2243_v15 = vpop.f32.mrf.mxu0 }
 0x155   : > { %v1026_v17 = vpop.f32.mrf.mxu1 }
 0x156   : > { %v3094_v20 = vadd.f32 %v1026_v17, %v974_v7  ;;  %v946_v60 = vpop.f32.mrf.mxu0 }
 0x157   : > { %v976_v48 = vadd.f32 %v946_v60, %v892_v11  ;;  %v2262_v22 = vpop.f32.mrf.mxu1 }
 0x158   : > { %v1071_v25 = vmax.f32 %v2977_v56, %v3094_v20  ;;  %v2244_v35 = vpop.f32.mrf.mxu0 }
 0x159   : > { %v1031_v57 = vpop.f32.mrf.mxu1 }
 0x15a   : > { %v3098_v26 = vadd.f32 %v1031_v57, %v975_v13  ;;  %v951_v34 = vpop.f32.mrf.mxu0 }
 0x15b   : > { %v977_v63 = vadd.f32 %v951_v34, %v893_v14  ;;  %v2265_v29 = vpop.f32.mrf.mxu1 }
 0x15c   : > { %v1072_v36 = vmax.f32 %v2983_v27, %v3098_v26  ;;  %v2247_v39 = vpop.f32.mrf.mxu0 }
 0x15d   : > { %v1034_v40 = vpop.f32.mrf.mxu1 }
 0x15e   : > { %v3102_v2 = vadd.f32 %v1034_v40, %v976_v48  ;;  %v954_v41 = vpop.f32.mrf.mxu0 }
 0x15f   : > { %v978_v11 = vadd.f32 %v954_v41, %v894_v10  ;;  %v2266_v44 = vpop.f32.mrf.mxu1 }
 0x160   : > { %v1073_v23 = vmax.f32 %v2992_v9, %v3102_v2  ;;  %v2248_v45 = vpop.f32.mrf.mxu0 }
 0x161   : > { %v1039_v42 = vpop.f32.mrf.mxu1 }
 0x162   : > { %v3106_v47 = vadd.f32 %v1039_v42, %v977_v63  ;;  %v959_v49 = vpop.f32.mrf.mxu0 }
 0x163   : > { %v979_v14 = vadd.f32 %v959_v49, %v895_v24  ;;  %v2269_v18 = vpop.f32.mrf.mxu1 }
 0x164   : > { %v1074_v52 = vmax.f32 %v2997_v16, %v3106_v47  ;;  %v2251_v21 = vpop.f32.mrf.mxu0 }
 0x165   : > { %v1042_v53 = vpop.f32.mrf.mxu1 }
 0x166   : > { %v3110_v54 = vadd.f32 %v1042_v53, %v978_v11  ;;  %v962_v31 = vpop.f32.mrf.mxu0 }
 0x167   : > { %v980_v10 = vadd.f32 %v962_v31, %v896_v55  ;;  %v2270_v59 = vpop.f32.mrf.mxu1 }
 0x168   : > { %v1075_v61 = vmax.f32 %v3006_v28, %v3110_v54  ;;  %v2252_v50 = vpop.f32.mrf.mxu0 }
 0x169   : > { %v1047_v62 = vpop.f32.mrf.mxu1 }
 0x16a   : > { %v3114_v51 = vadd.f32 %v1047_v62, %v979_v14  ;;  %v967_v0 = vpop.f32.mrf.mxu0 }
 0x16b   : > { %v981_v24 = vadd.f32 %v967_v0, %v897_v32  ;;  %v2273_v3 = vpop.f32.mrf.mxu1 }
 0x16c   : > { %v1076_v4 = vmax.f32 %v3011_v19, %v3114_v51  ;;  %v2255_v5 = vpop.f32.mrf.mxu0 }
 0x16d   : > { %v1050_v7 = vpop.f32.mrf.mxu1 }
 0x16e   : > { %v3118_v43 = vadd.f32 %v1050_v7, %v980_v10  ;;  %v970_v8 = vpop.f32.mrf.mxu0 }
 0x16f   : > { %v2274_v55 = vpop.f32.mrf.mxu1 }
 0x170   : > { %v1077_v30 = vmax.f32 %v3020_v46, %v3118_v43  ;;  %v2256_v38 = vpop.f32.mrf.mxu0 }
 0x171   : > { %v1055_v13 = vpop.f32.mrf.mxu1 }
 0x172   : > { %v3122_v1 = vadd.f32 %v1055_v13, %v981_v24  ;;  %v1119_v15 = vpop.f32.mrf.mxu0 }
 0x173   : > { %v2277_v17 = vpop.f32.mrf.mxu1  ;;  %v1157_v22 = vadd.f32 %v2882_v58, %v1119_v15 }
 0x174   : > { %v1078_v32 = vmax.f32 %v3024_v33, %v3122_v1  ;;  %v2283_v60 = vpop.f32.mrf.mxu0 }
 0x175   : > { %v1058_v48 = vpop.f32.mrf.mxu1 }
 0x176   : > { %v1122_v35 = vpop.f32.mrf.mxu0 }
 0x177   : > { %v2278_v57 = vpop.f32.mrf.mxu1  ;;  %v1158_v41 = vadd.f32 %v2882_v58, %v1122_v35 }
 0x178   : > { %v2284_v34 = vpop.f32.mrf.mxu0 }
 0x179   : > { %v1207_v63 = vpop.f32.mrf.mxu1 }
 0x17a   : > { %v1245_v29 = vadd.f32 %v1207_v63, %v1157_v22  ;;  %v1127_v39 = vpop.f32.mrf.mxu0 }
 0x17b   : > { %v2305_v40 = vpop.f32.mrf.mxu1  ;;  %v1159_v45 = vadd.f32 %v2882_v58, %v1127_v39 }
 0x17c   : > { %v2287_v11 = vpop.f32.mrf.mxu0 }
 0x17d   : > { %v1210_v44 = vpop.f32.mrf.mxu1 }
 0x17e   : > { %v1246_v42 = vadd.f32 %v1210_v44, %v1158_v41  ;;  %v1130_v49 = vpop.f32.mrf.mxu0 }
 0x17f   : > { %v2306_v14 = vpop.f32.mrf.mxu1  ;;  %v1160_v59 = vadd.f32 %v2882_v58, %v1130_v49 }
 0x180   : > { %v2288_v18 = vpop.f32.mrf.mxu0 }
 0x181   : > { %v1215_v21 = vpop.f32.mrf.mxu1 }
 0x182   : > { %v1247_v53 = vadd.f32 %v1215_v21, %v1159_v45  ;;  %v1135_v31 = vpop.f32.mrf.mxu0 }
 0x183   : > { %v2309_v10 = vpop.f32.mrf.mxu1  ;;  %v1161_v0 = vadd.f32 %v2882_v58, %v1135_v31 }
 0x184   : > { %v2291_v50 = vpop.f32.mrf.mxu0 }
 0x185   : > { %v1218_v62 = vpop.f32.mrf.mxu1 }
 0x186   : > { %v1248_v24 = vadd.f32 %v1218_v62, %v1160_v59  ;;  %v1138_v3 = vpop.f32.mrf.mxu0 }
 0x187   : > { %v2310_v5 = vpop.f32.mrf.mxu1  ;;  %v1162_v15 = vadd.f32 %v2882_v58, %v1138_v3 }
 0x188   : > { %v2292_v7 = vpop.f32.mrf.mxu0 }
 0x189   : > { %v1223_v8 = vpop.f32.mrf.mxu1 }
 0x18a   : > { %v1249_v55 = vadd.f32 %v1223_v8, %v1161_v0  ;;  %v1143_v38 = vpop.f32.mrf.mxu0 }
 0x18b   : > { %v2313_v13 = vpop.f32.mrf.mxu1  ;;  %v1163_v48 = vadd.f32 %v2882_v58, %v1143_v38 }
 0x18c   : > { %v2295_v17 = vpop.f32.mrf.mxu0 }
 0x18d   : > { %v1226_v60 = vpop.f32.mrf.mxu1 }
 0x18e   : > { %v1250_v22 = vadd.f32 %v1226_v60, %v1162_v15  ;;  %v1146_v35 = vpop.f32.mrf.mxu0 }
 0x18f   : > { %v2314_v57 = vpop.f32.mrf.mxu1  ;;  %v1164_v11 = vadd.f32 %v2882_v58, %v1146_v35 }
 0x190   : > { %v2296_v34 = vpop.f32.mrf.mxu0 }
 0x191   : > { %v1231_v63 = vpop.f32.mrf.mxu1 }
 0x192   : > { %v1251_v39 = vadd.f32 %v1231_v63, %v1163_v48  ;;  %v1151_v40 = vpop.f32.mrf.mxu0 }
 0x193   : > { %v2317_v41 = vpop.f32.mrf.mxu1  ;;  %v1165_v49 = vadd.f32 %v2882_v58, %v1151_v40 }
 0x194   : > { %v2299_v44 = vpop.f32.mrf.mxu0 }
 0x195   : > { %v1234_v45 = vpop.f32.mrf.mxu1 }
 0x196   : > { %v1252_v14 = vadd.f32 %v1234_v45, %v1164_v11  ;;  %v1154_v18 = vpop.f32.mrf.mxu0 }
 0x197   : > { %v2318_v21 = vpop.f32.mrf.mxu1 }
 0x198   : > { %v2300_v31 = vpop.f32.mrf.mxu0 }
 0x199   : > { %v1239_v10 = vpop.f32.mrf.mxu1 }
 0x19a   : > { %v1253_v59 = vadd.f32 %v1239_v10, %v1165_v49  ;;  %v1291_v50 = vpop.f32.mrf.mxu0 }
 0x19b   : > { %v1329_v62 = vadd.f32 %v1291_v50, %v1245_v29  ;;  %v2321_v0 = vpop.f32.mrf.mxu1 }
 0x19c   : > { %v2327_v3 = vpop.f32.mrf.mxu0 }
 0x19d   : > { %v1242_v5 = vpop.f32.mrf.mxu1 }
 0x19e   : > { %v1294_v7 = vpop.f32.mrf.mxu0 }
 0x19f   : > { %v1330_v8 = vadd.f32 %v1294_v7, %v1246_v42  ;;  %v2322_v38 = vpop.f32.mrf.mxu1 }
 0x1a0   : > { %v2328_v13 = vpop.f32.mrf.mxu0 }
 0x1a1   : > { %v1379_v15 = vpop.f32.mrf.mxu1 }
 0x1a2   : > { %v1417_v17 = vadd.f32 %v1379_v15, %v1329_v62  ;;  %v1299_v60 = vpop.f32.mrf.mxu0 }
 0x1a3   : > { %v1331_v48 = vadd.f32 %v1299_v60, %v1247_v53  ;;  %v2349_v35 = vpop.f32.mrf.mxu1 }
 0x1a4   : > { %v3138_v57 = vmax.f32 %v1070_v12, %v1417_v17  ;;  %v2331_v34 = vpop.f32.mrf.mxu0 }
 0x1a5   : > { %v1382_v63 = vpop.f32.mrf.mxu1 }
 0x1a6   : > { %v1418_v29 = vadd.f32 %v1382_v63, %v1330_v8  ;;  %v1302_v40 = vpop.f32.mrf.mxu0 }
 0x1a7   : > { %v1332_v41 = vadd.f32 %v1302_v40, %v1248_v24  ;;  %v2350_v11 = vpop.f32.mrf.mxu1 }
 0x1a8   : > { %v3143_v42 = vmax.f32 %v1071_v25, %v1418_v29  ;;  %v2332_v44 = vpop.f32.mrf.mxu0 }
 0x1a9   : > { %v1387_v45 = vpop.f32.mrf.mxu1 }
 0x1aa   : > { %v1419_v53 = vadd.f32 %v1387_v45, %v1331_v48  ;;  %v1307_v49 = vpop.f32.mrf.mxu0 }
 0x1ab   : > { %v1333_v18 = vadd.f32 %v1307_v49, %v1249_v55  ;;  %v2353_v21 = vpop.f32.mrf.mxu1 }
 0x1ac   : > { %v3148_v6 = vmax.f32 %v1072_v36, %v1419_v53  ;;  %v2335_v37 = vpop.f32.mrf.mxu0 }
 0x1ad   : > { %v1390_v12 = vpop.f32.mrf.mxu1 }
 0x1ae   : > { %v1420_v24 = vadd.f32 %v1390_v12, %v1332_v41  ;;  %v1310_v31 = vpop.f32.mrf.mxu0 }
 0x1af   : > { %v1334_v10 = vadd.f32 %v1310_v31, %v1250_v22  ;;  %v2354_v50 = vpop.f32.mrf.mxu1 }
 0x1b0   : > { %v3153_v56 = vmax.f32 %v1073_v23, %v1420_v24  ;;  %v2336_v20 = vpop.f32.mrf.mxu0 }
 0x1b1   : > { %v1395_v25 = vpop.f32.mrf.mxu1 }
 0x1b2   : > { %v1421_v55 = vadd.f32 %v1395_v25, %v1333_v18  ;;  %v1315_v62 = vpop.f32.mrf.mxu0 }
 0x1b3   : > { %v1335_v0 = vadd.f32 %v1315_v62, %v1251_v39  ;;  %v2357_v3 = vpop.f32.mrf.mxu1 }
 0x1b4   : > { %v3158_v27 = vmax.f32 %v1074_v52, %v1421_v55  ;;  %v2339_v26 = vpop.f32.mrf.mxu0 }
 0x1b5   : > { %v1398_v36 = vpop.f32.mrf.mxu1 }
 0x1b6   : > { %v1422_v22 = vadd.f32 %v1398_v36, %v1334_v10  ;;  %v1318_v5 = vpop.f32.mrf.mxu0 }
 0x1b7   : > { %v1336_v7 = vadd.f32 %v1318_v5, %v1252_v14  ;;  %v2358_v8 = vpop.f32.mrf.mxu1 }
 0x1b8   : > { %v3163_v9 = vmax.f32 %v1075_v61, %v1422_v22  ;;  %v2340_v2 = vpop.f32.mrf.mxu0 }
 0x1b9   : > { %v1403_v23 = vpop.f32.mrf.mxu1 }
 0x1ba   : > { %v1423_v39 = vadd.f32 %v1403_v23, %v1335_v0  ;;  %v1323_v38 = vpop.f32.mrf.mxu0 }
 0x1bb   : > { %v1337_v13 = vadd.f32 %v1323_v38, %v1253_v59  ;;  %v2361_v15 = vpop.f32.mrf.mxu1 }
 0x1bc   : > { %v3168_v16 = vmax.f32 %v1076_v4, %v1423_v39  ;;  %v2343_v47 = vpop.f32.mrf.mxu0 }
 0x1bd   : > { %v1406_v52 = vpop.f32.mrf.mxu1 }
 0x1be   : > { %v1424_v14 = vadd.f32 %v1406_v52, %v1336_v7  ;;  %v1326_v17 = vpop.f32.mrf.mxu0 }
 0x1bf   : > { %v2362_v60 = vpop.f32.mrf.mxu1 }
 0x1c0   : > { %v3173_v28 = vmax.f32 %v1077_v30, %v1424_v14  ;;  %v2344_v54 = vpop.f32.mrf.mxu0 }
 0x1c1   : > { %v1411_v61 = vpop.f32.mrf.mxu1 }
 0x1c2   : > { %v1425_v48 = vadd.f32 %v1411_v61, %v1337_v13  ;;  %v1475_v59 = vpop.f32.mrf.mxu0 }
 0x1c3   : > { %v2365_v35 = vpop.f32.mrf.mxu1  ;;  %v1513_v2 = vadd.f32 %v2882_v58, %v1475_v59 }
 0x1c4   : > { %v3178_v19 = vmax.f32 %v1078_v32, %v1425_v48  ;;  %v2371_v51 = vpop.f32.mrf.mxu0 }
 0x1c5   : > { %v1414_v4 = vpop.f32.mrf.mxu1 }
 0x1c6   : > { %v1478_v34 = vpop.f32.mrf.mxu0 }
 0x1c7   : > { %v2366_v63 = vpop.f32.mrf.mxu1  ;;  %v1514_v14 = vadd.f32 %v2882_v58, %v1478_v34 }
 0x1c8   : > { %v2372_v29 = vpop.f32.mrf.mxu0 }
 0x1c9   : > { %v1563_v40 = vpop.f32.mrf.mxu1 }
 0x1ca   : > { %v1483_v41 = vpop.f32.mrf.mxu0  ;;  %v1601_v15 = vadd.f32 %v1563_v40, %v1513_v2 }
 0x1cb   : > { %v2393_v46 = vpop.f32.mrf.mxu1  ;;  %v1515_v61 = vadd.f32 %v2882_v58, %v1483_v41 }
 0x1cc   : > { %v2375_v43 = vpop.f32.mrf.mxu0 }
 0x1cd   : > { %v1566_v30 = vpop.f32.mrf.mxu1 }
 0x1ce   : > { %v1486_v11 = vpop.f32.mrf.mxu0  ;;  %v1602_v48 = vadd.f32 %v1566_v30, %v1514_v14 }
 0x1cf   : > { %v2394_v44 = vpop.f32.mrf.mxu1 }
 0x1d0   : > { %v2376_v45 = vpop.f32.mrf.mxu0 }
 0x1d1   : > { %v1571_v53 = vpop.f32.mrf.mxu1 }
 0x1d2   : > { %v1491_v49 = vpop.f32.mrf.mxu0  ;;  %v1603_v40 = vadd.f32 %v1571_v53, %v1515_v61 }
 0x1d3   : > { %v2397_v18 = vpop.f32.mrf.mxu1 }
 0x1d4   : > { %v2379_v21 = vpop.f32.mrf.mxu0  ;;  %v1516_v18 = vadd.f32 %v2882_v58, %v1486_v11 }
 0x1d5   : > { %v1574_v33 = vpop.f32.mrf.mxu1 }
 0x1d6   : > { %v3180_v1 = vpop.f32.mrf.mxu0 }
 0x1d7   : > { %v2398_v32 = vpop.f32.mrf.mxu1 }
 0x1d8   : > { %v2380_v37 = vpop.f32.mrf.mxu0 }
 0x1d9   : > { %v1579_v12 = vpop.f32.mrf.mxu1 }
 0x1da   : > { %v3182_v24 = vpop.f32.mrf.mxu0 }
 0x1db   : > { %v2401_v31 = vpop.f32.mrf.mxu1 }
 0x1dc   : > { %v2383_v10 = vpop.f32.mrf.mxu0  ;;  %v1604_v31 = vadd.f32 %v1574_v33, %v1516_v18 }
 0x1dd   : > { %v3184_v50 = vpop.f32.mrf.mxu1 }
 0x1de   : > { %v3186_v20 = vpop.f32.mrf.mxu0 }
 0x1df   : > { %v2402_v25 = vpop.f32.mrf.mxu1 }
 0x1e0   : > { %v2384_v55 = vpop.f32.mrf.mxu0 }
 0x1e1   : > { %v3188_v62 = vpop.f32.mrf.mxu1 }
 0x1e2   : > { %v3190_v0 = vpop.f32.mrf.mxu0 }
 0x1e3   : > { %v2405_v3 = vpop.f32.mrf.mxu1 }
 0x1e4   : > { %v2387_v26 = vpop.f32.mrf.mxu0 }
 0x1e5   : > { %v3192_v36 = vpop.f32.mrf.mxu1 }
 0x1e6   : > { %v1510_v22 = vpop.f32.mrf.mxu0 }
 0x1e7   : > { %v2406_v5 = vpop.f32.mrf.mxu1 }
 0x1e8   : > { %v2388_v7 = vpop.f32.mrf.mxu0 }
 0x1e9   : > { %v3194_v8 = vpop.f32.mrf.mxu1 }
 0x1ea   : > { %v1647_v23 = vpop.f32.mrf.mxu0 }
 0x1eb   : > { %v2409_v39 = vpop.f32.mrf.mxu1  ;;  %v1685_v17 = vadd.f32 %v1647_v23, %v1601_v15 }
 0x1ec   : > { %v2415_v38 = vpop.f32.mrf.mxu0 }
 0x1ed   : > { %v1598_v13 = vpop.f32.mrf.mxu1 }
 0x1ee   : > { %v1650_v47 = vpop.f32.mrf.mxu0 }
 0x1ef   : > { %v2410_v52 = vpop.f32.mrf.mxu1  ;;  %v1686_v63 = vadd.f32 %v1650_v47, %v1602_v48 }
 0x1f0   : > { %v2416_v60 = vpop.f32.mrf.mxu0 }
 0x1f1   : > { %v1735_v54 = vpop.f32.mrf.mxu1 }
 0x1f2   : > { %v1773_v35 = vadd.f32 %v1735_v54, %v1685_v17  ;;  %v1655_v51 = vpop.f32.mrf.mxu0 }
 0x1f3   : > { %v2437_v4 = vpop.f32.mrf.mxu1  ;;  %v1687_v41 = vadd.f32 %v1655_v51, %v1603_v40 }
 0x1f4   : > { %v1782_v59 = vmax.f32 %v3138_v57, %v1773_v35  ;;  %v2419_v29 = vpop.f32.mrf.mxu0  ;;  %v2494_v57 = vld [vmem:[%s3235_s2] ss:$0 sm:$0xff] }
 0x1f5   : > { %v1738_v46 = vpop.f32.mrf.mxu1  ;;  %v1517_v37 = vadd.f32 %v2494_v57, %v1491_v49  ;;  %v1518_v23 = vadd.f32 %v2494_v57, %v3180_v1  ;;  %v1519_v13 = vadd.f32 %v2494_v57, %v3182_v24  ;;  %v1520_v24 = vadd.f32 %v2494_v57, %v3186_v20 }
 0x1f6   : > { %v1791_v43 = vmax.f32 %v1782_v59, 0.0  ;;  %v1774_v44 = vadd.f32 %v1738_v46, %v1686_v63  ;;  %v1658_v45 = vpop.f32.mrf.mxu0  ;;  %v1521_v59 = vadd.f32 %v2494_v57, %v3190_v0 }
 0x1f7   : > { %v2438_v34 = vpop.f32.mrf.mxu1  ;;  %v1688_v58 = vadd.f32 %v1658_v45, %v1604_v31  ;;  %v1607_v54 = vadd.f32 %v3188_v62, %v1519_v13 }
 0x1f8   : > { %1801 = vst.msk [vmem:[#allocation2] sm:$0xff] %vm1800_vm5, %v1791_v43  ;;  %v1783_v30 = vmax.f32 %v3143_v42, %v1774_v44  ;;  %v2420_v21 = vpop.f32.mrf.mxu0  ;;  %v1605_v42 = vadd.f32 %v1579_v12, %v1517_v37  ;;  %v1609_v34 = vadd.f32 %v3194_v8, %v1521_v59 }
 0x1f9   : > { %v1743_v32 = vpop.f32.mrf.mxu1 }
 0x1fa   : > { %v1792_v53 = vmax.f32 %v1783_v30, 0.0  ;;  %v1775_v10 = vadd.f32 %v1743_v32, %v1687_v41  ;;  %v1663_v25 = vpop.f32.mrf.mxu0 }
 0x1fb   : > { %v2441_v55 = vpop.f32.mrf.mxu1  ;;  %v1689_v49 = vadd.f32 %v1663_v25, %v1605_v42 }
 0x1fc   : > { %1802 = vst.msk [vmem:[#allocation2 + $0x8] sm:$0xff] %vm1800_vm5, %v1792_v53  ;;  %v1784_v11 = vmax.f32 %v3148_v6, %v1775_v10  ;;  %v2423_v3 = vpop.f32.mrf.mxu0  ;;  %v1606_v6 = vadd.f32 %v3184_v50, %v1518_v23 }
 0x1fd   : > { %v1746_v26 = vpop.f32.mrf.mxu1 }
 0x1fe   : > { %v1793_v22 = vmax.f32 %v1784_v11, 0.0  ;;  %v1776_v5 = vadd.f32 %v1746_v26, %v1688_v58  ;;  %v1666_v7 = vpop.f32.mrf.mxu0 }
 0x1ff   : > { %v2442_v2 = vpop.f32.mrf.mxu1  ;;  %v1690_v14 = vadd.f32 %v1666_v7, %v1606_v6 }
 0x200   : > { %1803 = vst.msk [vmem:[#allocation2 + $0x10] sm:$0xff] %vm1800_vm5, %v1793_v22  ;;  %v1785_v33 = vmax.f32 %v3153_v56, %v1776_v5  ;;  %v2424_v39 = vpop.f32.mrf.mxu0 }
 0x201   : > { %v1751_v38 = vpop.f32.mrf.mxu1 }
 0x202   : > { %v1794_v15 = vmax.f32 %v1785_v33, 0.0  ;;  %v1777_v47 = vadd.f32 %v1751_v38, %v1689_v49  ;;  %v1671_v12 = vpop.f32.mrf.mxu0 }
 0x203   : > { %v2445_v52 = vpop.f32.mrf.mxu1  ;;  %v1691_v50 = vadd.f32 %v1671_v12, %v1607_v54 }
 0x204   : > { %1804 = vst.msk [vmem:[#allocation2 + $0x18] sm:$0xff] %vm1800_vm5, %v1794_v15  ;;  %v1786_v1 = vmax.f32 %v3158_v27, %v1777_v47  ;;  %v2427_v17 = vpop.f32.mrf.mxu0  ;;  %v1608_v27 = vadd.f32 %v3192_v36, %v1520_v24 }
 0x205   : > { %v1754_v60 = vpop.f32.mrf.mxu1 }
 0x206   : > { %v1795_v56 = vmax.f32 %v1786_v1, 0.0  ;;  %v1778_v61 = vadd.f32 %v1754_v60, %v1690_v14  ;;  %v1674_v48 = vpop.f32.mrf.mxu0 }
 0x207   : > { %v2446_v35 = vpop.f32.mrf.mxu1  ;;  %v1692_v43 = vadd.f32 %v1674_v48, %v1608_v27 }
 0x208   : > { %1805 = vst.msk [vmem:[#allocation2 + $0x20] sm:$0xff] %vm1800_vm5, %v1795_v56  ;;  %v1787_v51 = vmax.f32 %v3163_v9, %v1778_v61  ;;  %v2428_v4 = vpop.f32.mrf.mxu0 }
 0x209   : > { %v1759_v63 = vpop.f32.mrf.mxu1 }
 0x20a   : > { %v1796_v29 = vmax.f32 %v1787_v51, 0.0  ;;  %v1779_v46 = vadd.f32 %v1759_v63, %v1691_v50  ;;  %v1679_v62 = vpop.f32.mrf.mxu0 }
 0x20b   : > { %v2449_v40 = vpop.f32.mrf.mxu1  ;;  %v1693_v0 = vadd.f32 %v1679_v62, %v1609_v34 }
 0x20c   : > { %1806 = vst.msk [vmem:[#allocation2 + $0x28] sm:$0xff] %vm1800_vm5, %v1796_v29  ;;  %v1788_v20 = vmax.f32 %v3168_v16, %v1779_v46  ;;  %v2431_v44 = vpop.f32.mrf.mxu0 }
 0x20d   : > { %v1762_v45 = vpop.f32.mrf.mxu1 }
 0x20e   : > { %v1797_v9 = vmax.f32 %v1788_v20, 0.0  ;;  %v1780_v18 = vadd.f32 %v1762_v45, %v1692_v43  ;;  %v1682_v41 = vpop.f32.mrf.mxu0 }
 0x20f   : > { %v2450_v30 = vpop.f32.mrf.mxu1 }
 0x210   : > { %1807 = vst.msk [vmem:[#allocation2 + $0x30] sm:$0xff] %vm1800_vm5, %v1797_v9  ;;  %v1789_v36 = vmax.f32 %v3173_v28, %v1780_v18  ;;  %v2432_v21 = vpop.f32.mrf.mxu0 }
 0x211   : > { %v1767_v32 = vpop.f32.mrf.mxu1 }
 0x212   : > { %v1798_v57 = vmax.f32 %v1789_v36, 0.0  ;;  %v1781_v37 = vadd.f32 %v1767_v32, %v1693_v0 }
 0x213   : > { %v2453_v31 = vpop.f32.mrf.mxu1 }
 0x214   : > { %1808 = vst.msk [vmem:[#allocation2 + $0x38] sm:$0xff] %vm1800_vm5, %v1798_v57  ;;  %v1790_v16 = vmax.f32 %v3178_v19, %v1781_v37 }
 0x215   : > { %v1770_v53 = vpop.f32.mrf.mxu1 }
 0x216   : > { %v1799_v8 = vmax.f32 %v1790_v16, 0.0 }
 0x217   : > { %v2454_v10 = vpop.f32.mrf.mxu1 }
 0x218   : > { %1809 = vst.msk [vmem:[#allocation2 + $0x40] sm:$0xff] %vm1800_vm5, %v1799_v8 }
 0x219 LB: >> { %s1816_s17 = smul.u32 9, %s2509_s16  ;;  %s2003_s18 = sshll.u32 %s2509_s16, 2  ;;  %vm1822_vm6 = vcmask 257024   ;;  %s2509_s16 = sphi %s2507_s16, %s1815_s16  }
 0x21a   : >> { %s1821_s20 = scalar_lea.vmem %s2558_s22, %s2003_s18  ;;  %s1815_s16 = sadd.s32 1, %s2509_s16  }
 0x21b   : >> { %s1817_s19 = scalar_lea.vmem [#allocation2], %s1816_s17  ;;  %p1812_p4 = scmp.ge.s32.totalorder %s1815_s16, 8  }
 0x21e   : > { %1814 = sbr.rel (!%p1812_p4) target bundleno = 537 (0x219), region = 74 }
 0x21f   : >> { %v1818_v28 = vld [vmem:[%s1817_s19] sm:$0xff] }
 0x220   : >> { %v1819_v25 = vpack.c.bf16 %v1818_v28, %v1818_v28 }
 0x222   : >> { %1823 = vst.msk [vmem:[%s1821_s20] sm:$0xf] %vm1822_vm6, %v1819_v25 }
 0x223 PF: > { %s13_s12 = sadd.s32 1, %s2505_s12  }
 0x224   : > { %p10_p5 = scmp.ge.s32.totalorder %s13_s12, 4  }
 0x226   :  { %12 = sbr.rel (!%p10_p5) target bundleno = 1 (0x1), region = 85 }

// kernel: video_comperator_forward.4
= control target key start
LH: loop header
LB: loop body
LE: loop exit
PB: predicated region body
PF: predicated region fallthrough
CT: control target
= control target key end

     0   :  { %s2220_s12 = smov 0   ;;  %s2683_s0 = inlined_call_operand.vmem [shape: bf16[2,110,32], index: 0, kind: input, shape index: {}]   ;;  %s2684_s1 = inlined_call_operand.vmem [shape: bf16[288,64], index: 1, kind: input, shape index: {}]   ;;  %s2685_s2 = inlined_call_operand.vmem [shape: f32[1,64], index: 2, kind: input, shape index: {}]   ;;  %s2686_s3 = inlined_call_operand.vmem [shape: bf16[2,4,4,64], index: 3, kind: output, shape index: {}]  }
   0x1 LB: > { %s1727_s13 = sadd.s32 4294967295, %s2192_s12   ;;  %p1731_p0 = scmp.ge.s32.totalorder %s2192_s12, 1  ;;  %s2192_s12 = sphi %s2220_s12, %s13_s12  }
   0x2   : > { %p137_p1 = scmp.lt.s32.totalorder %s2192_s12, 3 }
   0x4   : > { %p138_p2 = pnand %p1731_p0, %p137_p1 }
   0x5   : > { %p161_p3 = scmp.lt.s32.totalorder (!%p138_p2), %s1727_s13, 1  ;;  %s2194_s8 = smov (!%p138_p2), 0  }
   0x6   : > { %141 = sbr.rel (%p138_p2) target bundleno = 420 (0x1a4), region = 32 }
   0xb   : > { %v2136_v0 = vld [vmem:[%s2684_s1 + $0x8] sm:$0xff]   ;;  %v2198_v1 = vmov 0.0   ;;  %v2137_v2 = vld [vmem:[%s2684_s1] sm:$0xff]   ;;  %vm2199_vm0 = vmmov 0   ;;  %s2688_s13 = smov (!%p161_p3, %s1727_s13), 1  ;;  %vm224_vm1 = vcmask 261120  }
   0xc   : > { %1897 = vmatprep.subr.bf16.mxu0 %v2198_v1  ;;  %2113 = vmatprep.subr.bf16.mxu1 %v2198_v1  ;;  %s2117_s18 = smul.u32 56, %s2688_s13  ;;  %s1833_s19 = sshll.u32 %s2688_s13, 3  ;;  %v2140_v3 = vld [vmem:[%s2684_s1 + $0x28] sm:$0xff]   ;;  %v2141_v4 = vld [vmem:[%s2684_s1 + $0x18] sm:$0xff]   ;;  %v2144_v7 = vld [vmem:[%s2684_s1 + $0x10] sm:$0xff]   ;;  %vm535_vm3 = vcmask 1046528  }
   0xd   : > { %1898 = vmatpush3.bf16.msra.mxu0 %v2136_v0  ;;  %2115 = vmatpush3.bf16.msra.mxu1 %v2136_v0  ;;  %s2248_s24 = scalar_lea.vmem %s2686_s3, %s1833_s19  ;;  %v2145_v8 = vld [vmem:[%s2684_s1 + $0x20] sm:$0xff]   ;;  %vm372_vm2 = vsmask.f32 7424  ;;  %v2149_v26 = vld [vmem:[%s2684_s1 + $0x38] sm:$0xff]   ;;  %v2155_v34 = vld [vmem:[%s2684_s1 + $0x30] sm:$0xff]   ;;  %vm1001_vm5 = vcmask 1045504  }
   0xe   : > { %1899 = vmatprep.subr.bf16.mxu0 %v2198_v1  ;;  %2114 = vmatprep.subr.bf16.mxu1 %v2198_v1  ;;  %s2255_s27 = scalar_lea.vmem %s2683_s0, %s2117_s18  ;;  %v2152_v36 = vld [vmem:[%s2684_s1 + $0x48] sm:$0xff]   ;;  %v2156_v42 = vld [vmem:[%s2684_s1 + $0x40] sm:$0xff]   ;;  %vm829_vm4 = vsmask.f32 6400  ;;  %vm1295_vm6 = vsmask.f32 5376 }
   0xf   : > { %1901 = vmatprep.mubr.msk.bf16.mxu0 %vm2199_vm0, %v2198_v1  ;;  %1913 = vmatprep.mubr.msk.bf16.mxu1 %vm2199_vm0, %v2198_v1  ;;  %v2138_v5 = vld [vmem:[%s2255_s27] sm:$0xff]   ;;  %v2139_v6 = vld [vmem:[%s2255_s27 + $0x18] sm:$0xff]   ;;  %v2142_v9 = vld [vmem:[%s2255_s27 + $0x8] sm:$0xff]   ;;  %vm1467_vm7 = vcmask 1044480   ;;  %vm1599_vm8 = vcmask 523264  }
  0x10   : > { %v329_v10 = vld [vmem:[%s2255_s27] sm:$0xf]  ;;  %v330_v11 = vld [vmem:[%s2255_s27 + $0x4] sm:$0xf]  ;;  %v2148_v13 = vld [vmem:[%s2255_s27 + $0x8] sm:$0xff]  }
  0x11   : > { %1900 = vmatpush3.bf16.msra.mxu0 %v2137_v2  ;;  %2116 = vmatpush3.bf16.msra.mxu1 %v2137_v2  ;;  %v1748_v12 = vcombine.low %v329_v10, %v330_v11  ;;  %v2143_v14 = vld [vmem:[%s2255_s27 + $0x20] sm:$0xff]   ;;  %v381_v17 = vshll.u32 %v2148_v13, 16  ;;  %v2150_v22 = vld [vmem:[%s2255_s27 + $0x10] sm:$0xff]   ;;  %v385_v27 = vshrl.u32 %v2148_v13, 16  ;;  %v537_v30 = vrot.slane %v2148_v13, 1  ;;  %v2153_v31 = vld [vmem:[%s2255_s27 + $0x18] sm:$0xff]  }
  0x12   : > { %1945 = vmatprep.subr.bf16.mxu0 %v2198_v1  ;;  %1921 = vmatprep.subr.bf16.mxu1 %v2198_v1  ;;  %v527_v19 = vld [vmem:[%s2255_s27] sm:$0xe]  ;;  %v2146_v23 = vld [vmem:[%s2255_s27 + $0x10] sm:$0xff]   ;;  %v389_v28 = vshll.u32 %v2150_v22, 16  ;;  %v393_v38 = vshrl.u32 %v2150_v22, 16  ;;  %v397_v39 = vshll.u32 %v2153_v31, 16 }
  0x13   : > { %v374_v15 = vshrl.u32 %v1748_v12, 16  ;;  %v376_v16 = vshll.u32 %v1748_v12, 16  ;;  %v383_v21 = vrot.slane %v381_v17, 1  ;;  %v1761_v24 = vcombine.low %v527_v19, %v330_v11  ;;  %v2314_v40 = vld [vmem:[%s2255_s27 + $0x24] sm:$0xff]  }
  0x14   : > { %1902 = vmatmul.mubr.msk.bf16.vlgmr.msra.gmra.mxu0 %vm224_vm1, %v2138_v5  ;;  %1914 = vmatmul.mubr.msk.bf16.vlgmr.msra.gmra.mxu1 %vm224_vm1, %v2139_v6  ;;  %v391_v33 = vrot.slane %v389_v28, 1  ;;  %v539_v41 = vrot.slane %v2150_v22, 1  ;;  %v2167_v43 = vld [vmem:[%s2255_s27 + $0x2c] ss:$0 sps:$4 sm:$0x11]   ;;  %v399_v45 = vrot.slane %v397_v39, 1 }
  0x15   : > { %1946 = vmatpush3.bf16.msra.mxu0 %v2140_v3  ;;  %1905 = vmatprep.mubr.msk.bf16.mxu0 %vm2199_vm0, %v2198_v1  ;;  %v378_v18 = vrot.slane %v376_v16, 1  ;;  %v536_v29 = vrot.slane %v1761_v24, 1  ;;  %v387_v32 = vor.u32 %v385_v27, %v383_v21  ;;  %v2154_v46 = vld [vmem:[%s2255_s27 + $0x20] sm:$0xff]   ;;  %v707_v47 = vrot.slane %v2314_v40, 1  ;;  %v2354_v3 = vld [vmem:[%s2255_s27 + $0x8] sm:$0xf] }
  0x16   : > { %1917 = vmatprep.mubr.msk.bf16.mxu1 %vm2199_vm0, %v2198_v1  ;;  %1922 = vmatpush3.bf16.msra.mxu1 %v2141_v4  ;;  %v395_v44 = vor.u32 %v393_v38, %v391_v33  ;;  %v709_v48 = vrot.slane %v2167_v43, 1  ;;  %v540_v49 = vsel %vm535_vm3, %v537_v30, %v539_v41  ;;  %v401_v52 = vshrl.u32 %v2153_v31, 16  ;;  %v2157_v54 = vld [vmem:[%s2255_s27 + $0x28] ss:$0 sps:$4 sm:$0x11]   ;;  %v2377_v22 = vld [vmem:[%s2255_s27 + $0x14] sm:$0xff]  }
  0x17   : > { %1947 = vmatprep.subr.bf16.mxu0 %v2198_v1  ;;  %1923 = vmatprep.subr.bf16.mxu1 %v2198_v1  ;;  %v379_v20 = vor.u32 %v378_v18, %v374_v15  ;;  %v538_v35 = vsel %vm535_vm3, %v536_v29, %v537_v30  ;;  %v392_v37 = vsel %vm372_vm2, %v387_v32, %v391_v33  ;;  %v405_v53 = vshll.u32 %v2154_v46, 16  ;;  %v657_v2 = vld [vmem:[%s2255_s27 + $0x4] sm:$0xe]  ;;  %v2165_v28 = vld [vmem:[%s2684_s1 + $0x50] sm:$0xff]   ;;  %v2162_v30 = vld [vmem:[%s2684_s1 + $0x68] sm:$0xff]  }
  0x18   : > { %v2333_v50 = vsel %vm535_vm3, %v707_v47, %v709_v48  ;;  %v400_v51 = vsel %vm372_vm2, %v395_v44, %v399_v45  ;;  %v541_v55 = vrot.slane %v2153_v31, 1  ;;  %v403_v56 = vor.u32 %v401_v52, %v399_v45  ;;  %v2166_v38 = vld [vmem:[%s2684_s1 + $0x60] sm:$0xff]  }
  0x19   : > { %1948 = vmatpush3.bf16.msra.mxu0 %v2145_v8  ;;  %v384_v25 = vsel %vm372_vm2, %v379_v20, %v383_v21  ;;  %v407_v57 = vrot.slane %v405_v53, 1  ;;  %v409_v60 = vshrl.u32 %v2154_v46, 16  ;;  %v413_v61 = vshll.u32 %v2157_v54, 16  ;;  %v2160_v21 = vld [vmem:[%s2684_s1 + $0x58] sm:$0xff]  }
  0x1a   : > { %1993 = vmatprep.subr.bf16.mxu0 %v2198_v1  ;;  %1924 = vmatpush3.bf16.msra.mxu1 %v2144_v7  ;;  %v542_v58 = vsel %vm535_vm3, %v539_v41, %v541_v55  ;;  %v543_v62 = vrot.slane %v2154_v46, 1  ;;  %v1769_v6 = vcombine.low %v657_v2, %v2354_v3  ;;  %v2360_v7 = vld [vmem:[%s2255_s27 + $0xc] sm:$0xff]   ;;  %v545_v8 = vrot.slane %v2157_v54, 1  ;;  %v1123_v2 = vld [vmem:[%s2255_s27 + $0x8] sm:$0xc] }
  0x1b   : > { %1969 = vmatprep.subr.bf16.mxu1 %v2198_v1  ;;  %v408_v59 = vsel %vm372_vm2, %v403_v56, %v407_v57  ;;  %v411_v63 = vor.u32 %v409_v60, %v407_v57  ;;  %v415_v0 = vrot.slane %v413_v61, 1  ;;  %v839_v11 = vshrl.u32 %v2360_v7, 16  ;;  %v2427_v53 = vld [vmem:[%s2255_s27 + $0x2c] ss:$0 sps:$4 sm:$0x33]  }
  0x1c   : > { %1906 = vmatmul.mubr.msk.bf16.gmra.mxu0 %vm224_vm1, %v2142_v9  ;;  %1918 = vmatmul.mubr.msk.bf16.gmra.mxu1 %vm224_vm1, %v2143_v14  ;;  %v544_v4 = vsel %vm535_vm3, %v541_v55, %v543_v62  ;;  %v831_v9 = vshrl.u32 %v1769_v6, 16  ;;  %v834_v10 = vshll.u32 %v1769_v6, 16  ;;  %v842_v12 = vshll.u32 %v2360_v7, 16 }
  0x1d   : > { %1909 = vmatprep.mubr.msk.bf16.mxu0 %vm2199_vm0, %v2198_v1  ;;  %1925 = vmatprep.mubr.msk.bf16.mxu1 %vm2199_vm0, %v2198_v1  ;;  %v416_v5 = vsel %vm372_vm2, %v411_v63, %v415_v0  ;;  %v700_v13 = vrot.slane %v1769_v6, 1  ;;  %v701_v14 = vrot.slane %v2360_v7, 1  ;;  %v546_v15 = vsel %vm535_vm3, %v543_v62, %v545_v8  ;;  %v2170_v8 = vld [vmem:[%s2684_s1 + $0x78] sm:$0xff]  }
  0x1e   : > { %v833_v16 = vrot.slane %v831_v9, 1  ;;  %v836_v17 = vrot.slane %v834_v10, 2  ;;  %v841_v18 = vrot.slane %v839_v11, 1  ;;  %v844_v19 = vrot.slane %v842_v12, 2  ;;  %v2176_v11 = vld [vmem:[%s2684_s1 + $0x70] sm:$0xff]  }
  0x1f   : > { %v702_v20 = vsel %vm535_vm3, %v700_v13, %v701_v14  ;;  %v703_v27 = vrot.slane %v2377_v22, 1  ;;  %v866_v46 = vshrl.u32 %v2314_v40, 16  ;;  %v869_v48 = vshll.u32 %v2314_v40, 16  ;;  %v2173_v13 = vld [vmem:[%s2684_s1 + $0x88] sm:$0xff]  }
  0x20   : > { %v845_v24 = vor.u32 %v844_v19, %v841_v18  ;;  %v875_v56 = vshrl.u32 %v2427_v53, 16  ;;  %v878_v57 = vshll.u32 %v2427_v53, 16  ;;  %v1003_v0 = vrot.slane %v2360_v7, 2 }
  0x21   : > { %v704_v33 = vsel %vm535_vm3, %v701_v14, %v703_v27  ;;  %v871_v52 = vrot.slane %v869_v48, 2  ;;  %v1005_v10 = vrot.slane %v2377_v22, 2  ;;  %v2481_v14 = vld [vmem:[%s2255_s27 + $0x18] sm:$0xff]  }
  0x22   : > { %v880_v60 = vrot.slane %v878_v57, 2 }
  0x24   : > { %1910 = vmatmul.mubr.msk.bf16.gmra.mxu0 %vm224_vm1, %v2146_v23  ;;  %1926 = vmatmul.mubr.msk.bf16.vlgmr.msra.gmra.mxu1 %vm224_vm1, %v384_v25  ;;  %v837_v23 = vor.u32 %v836_v17, %v833_v16  ;;  %v848_v25 = vshrl.u32 %v2377_v22, 16  ;;  %v1169_v16 = vrot.slane %v2481_v14, 2  ;;  %v2177_v17 = vld [vmem:[%s2684_s1 + $0x80] sm:$0xff]  }
  0x25   : > { %1949 = vmatprep.mubr.msk.bf16.mxu0 %vm2199_vm0, %v2198_v1  ;;  %1929 = vmatprep.mubr.msk.bf16.mxu1 %vm2199_vm0, %v2198_v1 }
  0x26   : > { %1970 = vmatpush3.bf16.msra.mxu1 %v2149_v26  ;;  %v851_v26 = vshll.u32 %v2377_v22, 16  ;;  %v846_v29 = vsel %vm829_vm4, %v837_v23, %v845_v24  ;;  %v850_v31 = vrot.slane %v848_v25, 1  ;;  %v1009_v23 = vrot.slane %v2314_v40, 2  ;;  %v2511_v25 = vld [vmem:[%s2255_s27 + $0x28] sm:$0xff]  }
  0x27   : > { %1971 = vmatprep.subr.bf16.mxu1 %v2198_v1 }
  0x28   : > { %v853_v32 = vrot.slane %v851_v26, 2 }
  0x2a   : > { %1972 = vmatpush3.bf16.msra.mxu1 %v2155_v34  ;;  %v2398_v34 = vld [vmem:[%s2255_s27 + $0x1c] sm:$0xff]  }
  0x2b   : > { %2017 = vmatprep.subr.bf16.mxu1 %v2198_v1  ;;  %v705_v39 = vrot.slane %v2398_v34, 1  ;;  %v1007_v18 = vrot.slane %v2398_v34, 2 }
  0x2c   : > { %1950 = vmatmul.mubr.msk.bf16.vlgmr.msra.gmra.mxu0 %vm224_vm1, %v538_v35  ;;  %1930 = vmatmul.mubr.msk.bf16.gmra.mxu1 %vm224_vm1, %v392_v37  ;;  %v854_v35 = vor.u32 %v853_v32, %v850_v31  ;;  %v860_v37 = vshll.u32 %v2398_v34, 16 }
  0x2d   : > { %1994 = vmatpush3.bf16.msra.mxu0 %v2152_v36  ;;  %1933 = vmatprep.mubr.msk.bf16.mxu1 %vm2199_vm0, %v2198_v1  ;;  %v857_v36 = vshrl.u32 %v2398_v34, 16  ;;  %v706_v44 = vsel %vm535_vm3, %v703_v27, %v705_v39  ;;  %v708_v54 = vsel %vm535_vm3, %v705_v39, %v707_v47  ;;  %v1010_v26 = vsel %vm1001_vm5, %v1007_v18, %v1009_v23  ;;  %v2179_v34 = vld [vmem:[%s2255_s27 + $0x30] ss:$0 sps:$4 sm:$0x33]  }
  0x2e   : > { %1953 = vmatprep.mubr.msk.bf16.mxu0 %vm2199_vm0, %v2198_v1  ;;  %1995 = vmatprep.subr.bf16.mxu0 %v2198_v1  ;;  %v855_v41 = vsel %vm829_vm4, %v845_v24, %v854_v35  ;;  %v862_v43 = vrot.slane %v860_v37, 2  ;;  %v1011_v27 = vrot.slane %v2427_v53, 2  ;;  %v1175_v39 = vrot.slane %v2179_v34, 2 }
  0x30   : > { %v1012_v32 = vsel %vm1001_vm5, %v1009_v23, %v1011_v27 }
  0x31   : > { %1996 = vmatpush3.bf16.msra.mxu0 %v2156_v42  ;;  %v859_v42 = vrot.slane %v857_v36, 1 }
  0x32   : > { %2041 = vmatprep.subr.bf16.mxu0 %v2198_v1 }
  0x33   : > { %v863_v45 = vor.u32 %v862_v43, %v859_v42  ;;  %v1314_v43 = vshrl.u32 %v2481_v14, 16 }
  0x34   : > { %1954 = vmatmul.mubr.msk.bf16.gmra.mxu0 %vm224_vm1, %v540_v49  ;;  %1934 = vmatmul.mubr.msk.bf16.gmra.mxu1 %vm224_vm1, %v400_v51  ;;  %v868_v51 = vrot.slane %v866_v46, 1 }
  0x35   : > { %1957 = vmatprep.mubr.msk.bf16.mxu0 %vm2199_vm0, %v2198_v1  ;;  %1937 = vmatprep.mubr.msk.bf16.mxu1 %vm2199_vm0, %v2198_v1  ;;  %v864_v49 = vsel %vm829_vm4, %v854_v35, %v863_v45 }
  0x36   : > { %v872_v55 = vor.u32 %v871_v52, %v868_v51  ;;  %v1316_v51 = vrot.slane %v1314_v43, 2 }
  0x38   : > { %v873_v47 = vsel %vm829_vm4, %v863_v45, %v872_v55  ;;  %v1459_v45 = vld [vmem:[%s2255_s27 + $0x8] sm:$0x8] }
  0x3c   : > { %1958 = vmatmul.mubr.msk.bf16.gmra.mxu0 %vm224_vm1, %v542_v58  ;;  %1938 = vmatmul.mubr.msk.bf16.gmra.mxu1 %vm224_vm1, %v408_v59  ;;  %v993_v58 = vld [vmem:[%s2255_s27 + $0x4] sm:$0xc]  ;;  %v877_v59 = vrot.slane %v875_v56, 1 }
  0x3d   : > { %1961 = vmatprep.mubr.msk.bf16.mxu0 %vm2199_vm0, %v2198_v1  ;;  %1941 = vmatprep.mubr.msk.bf16.mxu1 %vm2199_vm0, %v2198_v1  ;;  %v1790_v61 = vcombine.low %v993_v58, %v2354_v3 }
  0x3e   : > { %v881_v62 = vor.u32 %v880_v60, %v877_v59 }
  0x3f   : > { %v1002_v63 = vrot.slane %v1790_v61, 2  ;;  %v1471_v61 = vrot.slane %v2481_v14, 3 }
  0x40   : > { %v882_v3 = vsel %vm829_vm4, %v872_v55, %v881_v62 }
  0x41   : > { %v1004_v6 = vsel %vm1001_vm5, %v1002_v63, %v1003_v0  ;;  %v1332_v63 = vshrl.u32 %v2511_v25, 16 }
  0x44   : > { %1962 = vmatmul.mubr.msk.bf16.gmra.mxu0 %vm224_vm1, %v544_v4  ;;  %1942 = vmatmul.mubr.msk.bf16.gmra.mxu1 %vm224_vm1, %v416_v5  ;;  %v2453_v4 = vld [vmem:[%s2255_s27 + $0xc] sm:$0xf] }
  0x45   : > { %1965 = vmatprep.mubr.msk.bf16.mxu0 %vm2199_vm0, %v2198_v1  ;;  %1973 = vmatprep.mubr.msk.bf16.mxu1 %vm2199_vm0, %v2198_v1  ;;  %v1798_v5 = vcombine.low %v1123_v2, %v2453_v4  ;;  %v1819_v48 = vcombine.low %v1459_v45, %v2453_v4 }
  0x47   : > { %v1166_v7 = vrot.slane %v1798_v5, 2  ;;  %v1297_v40 = vshrl.u32 %v1798_v5, 16  ;;  %v1468_v53 = vrot.slane %v1819_v48, 3 }
  0x49   : > { %v1299_v35 = vrot.slane %v1297_v40, 2 }
  0x4c   : > { %1966 = vmatmul.mubr.msk.bf16.gmra.mxu0 %vm224_vm1, %v546_v15  ;;  %1974 = vmatmul.mubr.msk.bf16.vlgmr.msra.gmra.mxu1 %vm224_vm1, %v702_v20  ;;  %v1006_v15 = vsel %vm1001_vm5, %v1003_v0, %v1005_v10  ;;  %v2498_v20 = vld [vmem:[%s2255_s27 + $0x20] sm:$0xff]   ;;  %v1335_v0 = vshll.u32 %v2511_v25, 16 }
  0x4d   : > { %1997 = vmatprep.mubr.msk.bf16.mxu0 %vm2199_vm0, %v2198_v1  ;;  %1977 = vmatprep.mubr.msk.bf16.mxu1 %vm2199_vm0, %v2198_v1  ;;  %v1171_v22 = vrot.slane %v2498_v20, 2  ;;  %v1323_v56 = vshrl.u32 %v2498_v20, 16  ;;  %v1326_v57 = vshll.u32 %v2498_v20, 16 }
  0x4e   : > { %2018 = vmatpush3.bf16.msra.mxu1 %v2160_v21  ;;  %v1008_v21 = vsel %vm1001_vm5, %v1005_v10, %v1007_v18 }
  0x4f   : > { %2019 = vmatprep.subr.bf16.mxu1 %v2198_v1  ;;  %v1172_v24 = vsel %vm1001_vm5, %v1169_v16, %v1171_v22  ;;  %v1325_v59 = vrot.slane %v1323_v56, 2  ;;  %v1328_v60 = vrot.slane %v1326_v57, 3 }
  0x51   : > { %v1329_v62 = vor.u32 %v1328_v60, %v1325_v59 }
  0x52   : > { %2020 = vmatpush3.bf16.msra.mxu1 %v2165_v28  ;;  %v1173_v28 = vrot.slane %v2511_v25, 2 }
  0x53   : > { %2065 = vmatprep.subr.bf16.mxu1 %v2198_v1 }
  0x54   : > { %1998 = vmatmul.mubr.msk.bf16.vlgmr.msra.gmra.mxu0 %vm224_vm1, %v846_v29  ;;  %1978 = vmatmul.mubr.msk.bf16.gmra.mxu1 %vm224_vm1, %v704_v33  ;;  %v1300_v29 = vshll.u32 %v1798_v5, 16  ;;  %v1174_v33 = vsel %vm1001_vm5, %v1171_v22, %v1173_v28  ;;  %v1176_v46 = vsel %vm1001_vm5, %v1173_v28, %v1175_v39  ;;  %v1337_v5 = vrot.slane %v1335_v0, 3 }
  0x55   : > { %2042 = vmatpush3.bf16.msra.mxu0 %v2162_v30  ;;  %1981 = vmatprep.mubr.msk.bf16.mxu1 %vm2199_vm0, %v2198_v1 }
  0x56   : > { %2001 = vmatprep.mubr.msk.bf16.mxu0 %vm2199_vm0, %v2198_v1  ;;  %2043 = vmatprep.subr.bf16.mxu0 %v2198_v1  ;;  %v1302_v36 = vrot.slane %v1300_v29, 3 }
  0x59   : > { %2044 = vmatpush3.bf16.msra.mxu0 %v2166_v38 }
  0x5a   : > { %2089 = vmatprep.subr.bf16.mxu0 %v2198_v1 }
  0x5c   : > { %2002 = vmatmul.mubr.msk.bf16.gmra.mxu0 %vm224_vm1, %v855_v41  ;;  %1982 = vmatmul.mubr.msk.bf16.gmra.mxu1 %vm224_vm1, %v706_v44  ;;  %v1303_v41 = vor.u32 %v1302_v36, %v1299_v35  ;;  %v1317_v44 = vshll.u32 %v2481_v14, 16  ;;  %v1475_v14 = vrot.slane %v2511_v25, 3 }
  0x5d   : > { %2005 = vmatprep.mubr.msk.bf16.mxu0 %vm2199_vm0, %v2198_v1  ;;  %1985 = vmatprep.mubr.msk.bf16.mxu1 %vm2199_vm0, %v2198_v1 }
  0x5e   : > { %v1319_v52 = vrot.slane %v1317_v44, 3 }
  0x60   : > { %v1320_v55 = vor.u32 %v1319_v52, %v1316_v51 }
  0x62   : > { %v1330_v4 = vsel %vm1295_vm6, %v1320_v55, %v1329_v62 }
  0x64   : > { %2006 = vmatmul.mubr.msk.bf16.gmra.mxu0 %vm224_vm1, %v864_v49  ;;  %1986 = vmatmul.mubr.msk.bf16.gmra.mxu1 %vm224_vm1, %v708_v54 }
  0x65   : > { %2009 = vmatprep.mubr.msk.bf16.mxu0 %vm2199_vm0, %v2198_v1  ;;  %1989 = vmatprep.mubr.msk.bf16.mxu1 %vm2199_vm0, %v2198_v1 }
  0x6c   : > { %2010 = vmatmul.mubr.msk.bf16.gmra.mxu0 %vm224_vm1, %v873_v47  ;;  %1990 = vmatmul.mubr.msk.bf16.gmra.mxu1 %vm224_vm1, %v2333_v50  ;;  %v2458_v50 = vld [vmem:[%s2255_s27 + $0x10] sm:$0xff]  }
  0x6d   : > { %2013 = vmatprep.mubr.msk.bf16.mxu0 %vm2199_vm0, %v2198_v1  ;;  %2021 = vmatprep.mubr.msk.bf16.mxu1 %vm2199_vm0, %v2198_v1  ;;  %v1167_v9 = vrot.slane %v2458_v50, 2  ;;  %v1305_v30 = vshrl.u32 %v2458_v50, 16  ;;  %v1308_v31 = vshll.u32 %v2458_v50, 16  ;;  %v1469_v54 = vrot.slane %v2458_v50, 3 }
  0x6e   : > { %v2181_v50 = vld [vmem:[%s2255_s27 + $0x30] ss:$0 sps:$4 sm:$0x77]  }
  0x6f   : > { %v1168_v12 = vsel %vm1001_vm5, %v1166_v7, %v1167_v9  ;;  %v1170_v19 = vsel %vm1001_vm5, %v1167_v9, %v1169_v16  ;;  %v1307_v37 = vrot.slane %v1305_v30, 2  ;;  %v1310_v38 = vrot.slane %v1308_v31, 3 }
  0x70   : > { %v1470_v58 = vsel %vm1467_vm7, %v1468_v53, %v1469_v54  ;;  %v1472_v2 = vsel %vm1467_vm7, %v1469_v54, %v1471_v61  ;;  %v1341_v7 = vshrl.u32 %v2181_v50, 16  ;;  %v1344_v9 = vshll.u32 %v2181_v50, 16 }
  0x71   : > { %v1311_v42 = vor.u32 %v1310_v38, %v1307_v37  ;;  %v1477_v18 = vrot.slane %v2181_v50, 3 }
  0x73   : > { %v1312_v49 = vsel %vm1295_vm6, %v1303_v41, %v1311_v42  ;;  %v1321_v47 = vsel %vm1295_vm6, %v1311_v42, %v1320_v55 }
  0x74   : > { %2014 = vmatmul.mubr.msk.bf16.gmra.mxu0 %vm224_vm1, %v882_v3  ;;  %2022 = vmatmul.mubr.msk.bf16.vlgmr.msra.gmra.mxu1 %vm224_vm1, %v1004_v6  ;;  %v1334_v3 = vrot.slane %v1332_v63, 2  ;;  %v1473_v6 = vrot.slane %v2498_v20, 3 }
  0x75   : > { %2045 = vmatprep.mubr.msk.bf16.mxu0 %vm2199_vm0, %v2198_v1  ;;  %2025 = vmatprep.mubr.msk.bf16.mxu1 %vm2199_vm0, %v2198_v1 }
  0x76   : > { %2066 = vmatpush3.bf16.msra.mxu1 %v2170_v8  ;;  %v1338_v8 = vor.u32 %v1337_v5, %v1334_v3  ;;  %v1474_v10 = vsel %vm1467_vm7, %v1471_v61, %v1473_v6  ;;  %v1476_v16 = vsel %vm1467_vm7, %v1473_v6, %v1475_v14 }
  0x77   : > { %2067 = vmatprep.subr.bf16.mxu1 %v2198_v1 }
  0x7a   : > { %2068 = vmatpush3.bf16.msra.mxu1 %v2176_v11  ;;  %v1339_v11 = vsel %vm1295_vm6, %v1329_v62, %v1338_v8 }
  0x7c   : > { %2046 = vmatmul.mubr.msk.bf16.vlgmr.msra.gmra.mxu0 %vm224_vm1, %v1168_v12  ;;  %2026 = vmatmul.mubr.msk.bf16.gmra.mxu1 %vm224_vm1, %v1006_v15  ;;  %v1343_v12 = vrot.slane %v1341_v7, 2 }
  0x7d   : > { %2090 = vmatpush3.bf16.msra.mxu0 %v2173_v13  ;;  %2029 = vmatprep.mubr.msk.bf16.mxu1 %vm2199_vm0, %v2198_v1  ;;  %v1346_v13 = vrot.slane %v1344_v9, 3 }
  0x7e   : > { %2049 = vmatprep.mubr.msk.bf16.mxu0 %vm2199_vm0, %v2198_v1  ;;  %2091 = vmatprep.subr.bf16.mxu0 %v2198_v1 }
  0x7f   : > { %v1347_v15 = vor.u32 %v1346_v13, %v1343_v12 }
  0x81   : > { %2092 = vmatpush3.bf16.msra.mxu0 %v2177_v17  ;;  %v1348_v17 = vsel %vm1295_vm6, %v1338_v8, %v1347_v15 }
  0x84   : > { %2050 = vmatmul.mubr.msk.bf16.gmra.mxu0 %vm224_vm1, %v1170_v19  ;;  %2030 = vmatmul.mubr.msk.bf16.gmra.mxu1 %vm224_vm1, %v1008_v21  ;;  %v1478_v19 = vsel %vm1467_vm7, %v1475_v14, %v1477_v18 }
  0x85   : > { %2053 = vmatprep.mubr.msk.bf16.mxu0 %vm2199_vm0, %v2198_v1  ;;  %2033 = vmatprep.mubr.msk.bf16.mxu1 %vm2199_vm0, %v2198_v1 }
  0x8c   : > { %2054 = vmatmul.mubr.msk.bf16.gmra.mxu0 %vm224_vm1, %v1172_v24  ;;  %2034 = vmatmul.mubr.msk.bf16.gmra.mxu1 %vm224_vm1, %v1010_v26 }
  0x8d   : > { %2057 = vmatprep.mubr.msk.bf16.mxu0 %vm2199_vm0, %v2198_v1  ;;  %2037 = vmatprep.mubr.msk.bf16.mxu1 %vm2199_vm0, %v2198_v1 }
  0x94   : > { %2058 = vmatmul.mubr.msk.bf16.gmra.mxu0 %vm224_vm1, %v1174_v33  ;;  %2038 = vmatmul.mubr.msk.bf16.gmra.mxu1 %vm224_vm1, %v1012_v32 }
  0x95   : > { %2061 = vmatprep.mubr.msk.bf16.mxu0 %vm2199_vm0, %v2198_v1  ;;  %2069 = vmatprep.mubr.msk.bf16.mxu1 %vm2199_vm0, %v2198_v1 }
  0x9c   : > { %2062 = vmatmul.mubr.msk.bf16.gmra.mxu0 %vm224_vm1, %v1176_v46  ;;  %2070 = vmatmul.mubr.msk.bf16.vlgmr.msra.gmra.mxu1 %vm224_vm1, %v1312_v49 }
  0x9d   : > { %2093 = vmatprep.mubr.msk.bf16.mxu0 %vm2199_vm0, %v2198_v1  ;;  %2073 = vmatprep.mubr.msk.bf16.mxu1 %vm2199_vm0, %v2198_v1 }
  0xa4   : > { %2094 = vmatmul.mubr.msk.bf16.vlgmr.msra.gmra.mxu0 %vm224_vm1, %v1470_v58  ;;  %2074 = vmatmul.mubr.msk.bf16.gmra.mxu1 %vm224_vm1, %v1321_v47 }
  0xa5   : > { %2097 = vmatprep.mubr.msk.bf16.mxu0 %vm2199_vm0, %v2198_v1  ;;  %2077 = vmatprep.mubr.msk.bf16.mxu1 %vm2199_vm0, %v2198_v1 }
  0xac   : > { %2098 = vmatmul.mubr.msk.bf16.gmra.mxu0 %vm224_vm1, %v1472_v2  ;;  %2078 = vmatmul.mubr.msk.bf16.gmra.mxu1 %vm224_vm1, %v1330_v4 }
  0xad   : > { %2101 = vmatprep.mubr.msk.bf16.mxu0 %vm2199_vm0, %v2198_v1  ;;  %2081 = vmatprep.mubr.msk.bf16.mxu1 %vm2199_vm0, %v2198_v1 }
  0xb4   : > { %2102 = vmatmul.mubr.msk.bf16.gmra.mxu0 %vm224_vm1, %v1474_v10  ;;  %2082 = vmatmul.mubr.msk.bf16.gmra.mxu1 %vm224_vm1, %v1339_v11 }
  0xb5   : > { %2105 = vmatprep.mubr.msk.bf16.mxu0 %vm2199_vm0, %v2198_v1  ;;  %2085 = vmatprep.mubr.msk.bf16.mxu1 %vm2199_vm0, %v2198_v1 }
  0xbc   : > { %2106 = vmatmul.mubr.msk.bf16.gmra.mxu0 %vm224_vm1, %v1476_v16  ;;  %2086 = vmatmul.mubr.msk.bf16.gmra.mxu1 %vm224_vm1, %v1348_v17 }
  0xbd   : > { %2109 = vmatprep.mubr.msk.bf16.mxu0 %vm2199_vm0, %v2198_v1  ;;  %v2589_v1 = vld [vmem:[%s2685_s2] ss:$0 sm:$0xff] }
  0xc4   : > { %2110 = vmatmul.mubr.msk.bf16.gmra.mxu0 %vm224_vm1, %v1478_v19 }
  0xd4   : > { %v274_v20 = vpop.f32.mrf.mxu0  ;;  %v298_v21 = vpop.f32.mrf.mxu1 }
  0xd5   : > { %v319_v35 = vadd.f32 %v2589_v1, %v274_v20  ;;  %v325_v13 = vadd.f32 %v2589_v1, %v298_v21 }
  0xd6   : > { %v1903_v22 = vpop.f32.mrf.mxu0  ;;  %v1915_v23 = vpop.f32.mrf.mxu1 }
  0xd8   : > { %v277_v24 = vpop.f32.mrf.mxu0  ;;  %v301_v25 = vpop.f32.mrf.mxu1 }
  0xd9   : > { %v320_v42 = vadd.f32 %v2589_v1, %v277_v24  ;;  %v326_v20 = vadd.f32 %v2589_v1, %v301_v25 }
  0xda   : > { %v1904_v26 = vpop.f32.mrf.mxu0  ;;  %v1916_v27 = vpop.f32.mrf.mxu1 }
  0xdc   : > { %v282_v28 = vpop.f32.mrf.mxu0  ;;  %v306_v40 = vpop.f32.mrf.mxu1 }
  0xdd   : > { %v321_v49 = vadd.f32 %v2589_v1, %v282_v28 }
  0xde   : > { %v1907_v29 = vpop.f32.mrf.mxu0  ;;  %v1919_v30 = vpop.f32.mrf.mxu1 }
  0xdf   : > { %v327_v29 = vadd.f32 %v2589_v1, %v306_v40 }
  0xe0   : > { %v285_v31 = vpop.f32.mrf.mxu0  ;;  %v2591_v32 = vpop.f32.mrf.mxu1 }
  0xe1   : > { %v322_v57 = vadd.f32 %v2589_v1, %v285_v31 }
  0xe2   : > { %v1908_v33 = vpop.f32.mrf.mxu0  ;;  %v1920_v34 = vpop.f32.mrf.mxu1 }
  0xe4   : > { %v290_v36 = vpop.f32.mrf.mxu0  ;;  %v478_v37 = vpop.f32.mrf.mxu1 }
  0xe5   : > { %v517_v38 = vadd.f32 %v478_v37, %v319_v35  ;;  %v323_v63 = vadd.f32 %v2589_v1, %v290_v36  ;;  %v328_v36 = vadd.f32 %v2589_v1, %v2591_v32 }
  0xe6   : > { %v1911_v39 = vpop.f32.mrf.mxu0  ;;  %v1927_v41 = vpop.f32.mrf.mxu1 }
  0xe8   : > { %v293_v43 = vpop.f32.mrf.mxu0  ;;  %v481_v44 = vpop.f32.mrf.mxu1 }
  0xe9   : > { %v518_v45 = vadd.f32 %v481_v44, %v320_v42  ;;  %v324_v6 = vadd.f32 %v2589_v1, %v293_v43 }
  0xea   : > { %v1912_v46 = vpop.f32.mrf.mxu0  ;;  %v1928_v48 = vpop.f32.mrf.mxu1 }
  0xec   : > { %v608_v51 = vpop.f32.mrf.mxu0  ;;  %v486_v52 = vpop.f32.mrf.mxu1 }
  0xed   : > { %v647_v53 = vadd.f32 %v608_v51, %v517_v38  ;;  %v519_v54 = vadd.f32 %v486_v52, %v321_v49 }
  0xee   : > { %v1951_v55 = vpop.f32.mrf.mxu0  ;;  %v1931_v56 = vpop.f32.mrf.mxu1 }
  0xf0   : > { %v611_v58 = vpop.f32.mrf.mxu0  ;;  %v489_v47 = vpop.f32.mrf.mxu1 }
  0xf1   : > { %v648_v59 = vadd.f32 %v611_v58, %v518_v45  ;;  %v520_v60 = vadd.f32 %v489_v47, %v322_v57 }
  0xf2   : > { %v1952_v61 = vpop.f32.mrf.mxu0  ;;  %v1932_v62 = vpop.f32.mrf.mxu1 }
  0xf4   : > { %v616_v0 = vpop.f32.mrf.mxu0  ;;  %v494_v2 = vpop.f32.mrf.mxu1 }
  0xf5   : > { %v649_v4 = vadd.f32 %v616_v0, %v519_v54  ;;  %v521_v3 = vadd.f32 %v494_v2, %v323_v63 }
  0xf6   : > { %v1955_v5 = vpop.f32.mrf.mxu0  ;;  %v1935_v50 = vpop.f32.mrf.mxu1 }
  0xf8   : > { %v619_v8 = vpop.f32.mrf.mxu0  ;;  %v497_v7 = vpop.f32.mrf.mxu1 }
  0xf9   : > { %v650_v9 = vadd.f32 %v619_v8, %v520_v60  ;;  %v522_v10 = vadd.f32 %v497_v7, %v324_v6 }
  0xfa   : > { %v1956_v11 = vpop.f32.mrf.mxu0  ;;  %v1936_v12 = vpop.f32.mrf.mxu1 }
  0xfc   : > { %v624_v14 = vpop.f32.mrf.mxu0  ;;  %v502_v15 = vpop.f32.mrf.mxu1 }
  0xfd   : > { %v651_v16 = vadd.f32 %v624_v14, %v521_v3  ;;  %v523_v17 = vadd.f32 %v502_v15, %v325_v13 }
  0xfe   : > { %v1959_v18 = vpop.f32.mrf.mxu0  ;;  %v1939_v19 = vpop.f32.mrf.mxu1 }
 0x100   : > { %v627_v22 = vpop.f32.mrf.mxu0  ;;  %v505_v23 = vpop.f32.mrf.mxu1 }
 0x101   : > { %v652_v24 = vadd.f32 %v627_v22, %v522_v10  ;;  %v524_v26 = vadd.f32 %v505_v23, %v326_v20 }
 0x102   : > { %v1960_v27 = vpop.f32.mrf.mxu0  ;;  %v1940_v28 = vpop.f32.mrf.mxu1 }
 0x104   : > { %v632_v30 = vpop.f32.mrf.mxu0  ;;  %v510_v31 = vpop.f32.mrf.mxu1 }
 0x105   : > { %v653_v33 = vadd.f32 %v632_v30, %v523_v17  ;;  %v525_v21 = vadd.f32 %v510_v31, %v327_v29 }
 0x106   : > { %v1963_v34 = vpop.f32.mrf.mxu0  ;;  %v1943_v35 = vpop.f32.mrf.mxu1 }
 0x108   : > { %v635_v37 = vpop.f32.mrf.mxu0  ;;  %v513_v38 = vpop.f32.mrf.mxu1 }
 0x109   : > { %v654_v25 = vadd.f32 %v635_v37, %v524_v26  ;;  %v526_v39 = vadd.f32 %v513_v38, %v328_v36 }
 0x10a   : > { %v1964_v41 = vpop.f32.mrf.mxu0  ;;  %v1944_v42 = vpop.f32.mrf.mxu1 }
 0x10c   : > { %v640_v43 = vpop.f32.mrf.mxu0  ;;  %v772_v45 = vpop.f32.mrf.mxu1 }
 0x10d   : > { %v655_v44 = vadd.f32 %v640_v43, %v525_v21  ;;  %v811_v46 = vadd.f32 %v772_v45, %v647_v53 }
 0x10e   : > { %v1967_v40 = vpop.f32.mrf.mxu0  ;;  %v1975_v48 = vpop.f32.mrf.mxu1 }
 0x110   : > { %v643_v49 = vpop.f32.mrf.mxu0  ;;  %v775_v52 = vpop.f32.mrf.mxu1 }
 0x111   : > { %v656_v51 = vadd.f32 %v643_v49, %v526_v39  ;;  %v812_v54 = vadd.f32 %v775_v52, %v648_v59 }
 0x112   : > { %v1968_v55 = vpop.f32.mrf.mxu0  ;;  %v1976_v56 = vpop.f32.mrf.mxu1 }
 0x114   : > { %v944_v57 = vpop.f32.mrf.mxu0  ;;  %v780_v1 = vpop.f32.mrf.mxu1 }
 0x115   : > { %v2604_v32 = vadd.f32 %v944_v57, %v811_v46  ;;  %v813_v58 = vadd.f32 %v780_v1, %v649_v4 }
 0x116   : > { %v1999_v47 = vpop.f32.mrf.mxu0  ;;  %v1979_v60 = vpop.f32.mrf.mxu1 }
 0x118   : > { %v947_v61 = vpop.f32.mrf.mxu0  ;;  %v783_v62 = vpop.f32.mrf.mxu1 }
 0x119   : > { %v2606_v63 = vadd.f32 %v947_v61, %v812_v54  ;;  %v814_v53 = vadd.f32 %v783_v62, %v650_v9 }
 0x11a   : > { %v2000_v0 = vpop.f32.mrf.mxu0  ;;  %v1980_v2 = vpop.f32.mrf.mxu1 }
 0x11c   : > { %v952_v3 = vpop.f32.mrf.mxu0  ;;  %v788_v5 = vpop.f32.mrf.mxu1 }
 0x11d   : > { %v2608_v50 = vadd.f32 %v952_v3, %v813_v58  ;;  %v815_v59 = vadd.f32 %v788_v5, %v651_v16 }
 0x11e   : > { %v2003_v6 = vpop.f32.mrf.mxu0  ;;  %v1983_v8 = vpop.f32.mrf.mxu1 }
 0x120   : > { %v955_v7 = vpop.f32.mrf.mxu0  ;;  %v791_v10 = vpop.f32.mrf.mxu1 }
 0x121   : > { %v2610_v11 = vadd.f32 %v955_v7, %v814_v53  ;;  %v816_v4 = vadd.f32 %v791_v10, %v652_v24 }
 0x122   : > { %v2004_v12 = vpop.f32.mrf.mxu0  ;;  %v1984_v13 = vpop.f32.mrf.mxu1 }
 0x124   : > { %v960_v14 = vpop.f32.mrf.mxu0  ;;  %v796_v15 = vpop.f32.mrf.mxu1 }
 0x125   : > { %v2612_v17 = vadd.f32 %v960_v14, %v815_v59  ;;  %v817_v9 = vadd.f32 %v796_v15, %v653_v33 }
 0x126   : > { %v2007_v18 = vpop.f32.mrf.mxu0  ;;  %v1987_v19 = vpop.f32.mrf.mxu1 }
 0x128   : > { %v963_v20 = vpop.f32.mrf.mxu0  ;;  %v799_v22 = vpop.f32.mrf.mxu1 }
 0x129   : > { %v2614_v23 = vadd.f32 %v963_v20, %v816_v4  ;;  %v818_v16 = vadd.f32 %v799_v22, %v654_v25 }
 0x12a   : > { %v2008_v26 = vpop.f32.mrf.mxu0  ;;  %v1988_v27 = vpop.f32.mrf.mxu1 }
 0x12c   : > { %v968_v28 = vpop.f32.mrf.mxu0  ;;  %v804_v29 = vpop.f32.mrf.mxu1 }
 0x12d   : > { %v2616_v30 = vadd.f32 %v968_v28, %v817_v9  ;;  %v819_v24 = vadd.f32 %v804_v29, %v655_v44 }
 0x12e   : > { %v2011_v31 = vpop.f32.mrf.mxu0  ;;  %v1991_v21 = vpop.f32.mrf.mxu1 }
 0x130   : > { %v971_v34 = vpop.f32.mrf.mxu0  ;;  %v807_v35 = vpop.f32.mrf.mxu1 }
 0x131   : > { %v2618_v36 = vadd.f32 %v971_v34, %v818_v16  ;;  %v820_v33 = vadd.f32 %v807_v35, %v656_v51 }
 0x132   : > { %v2012_v37 = vpop.f32.mrf.mxu0  ;;  %v1992_v38 = vpop.f32.mrf.mxu1 }
 0x134   : > { %v976_v39 = vpop.f32.mrf.mxu0  ;;  %v1074_v25 = vpop.f32.mrf.mxu1 }
 0x135   : > { %v2620_v41 = vadd.f32 %v976_v39, %v819_v24  ;;  %v1113_v27 = vadd.f32 %v1074_v25, %v2604_v32 }
 0x136   : > { %v2015_v42 = vpop.f32.mrf.mxu0  ;;  %v2023_v43 = vpop.f32.mrf.mxu1 }
 0x138   : > { %v979_v45 = vpop.f32.mrf.mxu0  ;;  %v1077_v40 = vpop.f32.mrf.mxu1 }
 0x139   : > { %v2622_v46 = vadd.f32 %v979_v45, %v820_v33  ;;  %v1114_v34 = vadd.f32 %v1077_v40, %v2606_v63 }
 0x13a   : > { %v2016_v44 = vpop.f32.mrf.mxu0  ;;  %v2024_v48 = vpop.f32.mrf.mxu1 }
 0x13c   : > { %v1238_v49 = vpop.f32.mrf.mxu0  ;;  %v1082_v52 = vpop.f32.mrf.mxu1 }
 0x13d   : > { %v1277_v24 = vadd.f32 %v1238_v49, %v1113_v27  ;;  %v1115_v45 = vadd.f32 %v1082_v52, %v2608_v50 }
 0x13e   : > { %v2047_v54 = vpop.f32.mrf.mxu0  ;;  %v2027_v55 = vpop.f32.mrf.mxu1 }
 0x140   : > { %v1241_v56 = vpop.f32.mrf.mxu0  ;;  %v1085_v51 = vpop.f32.mrf.mxu1 }
 0x141   : > { %v1278_v38 = vadd.f32 %v1241_v56, %v1114_v34  ;;  %v1116_v40 = vadd.f32 %v1085_v51, %v2610_v11 }
 0x142   : > { %v2048_v57 = vpop.f32.mrf.mxu0  ;;  %v2028_v1 = vpop.f32.mrf.mxu1 }
 0x144   : > { %v1246_v58 = vpop.f32.mrf.mxu0  ;;  %v1090_v47 = vpop.f32.mrf.mxu1 }
 0x145   : > { %v1279_v54 = vadd.f32 %v1246_v58, %v1115_v45 }
 0x146   : > { %v2051_v60 = vpop.f32.mrf.mxu0  ;;  %v2031_v61 = vpop.f32.mrf.mxu1 }
 0x148   : > { %v1249_v62 = vpop.f32.mrf.mxu0  ;;  %v2624_v53 = vpop.f32.mrf.mxu1 }
 0x149   : > { %v1280_v61 = vadd.f32 %v1249_v62, %v1116_v40  ;;  %v1118_v62 = vadd.f32 %v2624_v53, %v2614_v23 }
 0x14a   : > { %v2052_v0 = vpop.f32.mrf.mxu0  ;;  %v2032_v2 = vpop.f32.mrf.mxu1 }
 0x14b   : > { %v1117_v2 = vadd.f32 %v1090_v47, %v2612_v17 }
 0x14c   : > { %v1254_v3 = vpop.f32.mrf.mxu0  ;;  %v2626_v5 = vpop.f32.mrf.mxu1 }
 0x14e   : > { %v2055_v59 = vpop.f32.mrf.mxu0  ;;  %v2035_v6 = vpop.f32.mrf.mxu1 }
 0x150   : > { %v2628_v8 = vpop.f32.mrf.mxu0  ;;  %v2630_v7 = vpop.f32.mrf.mxu1 }
 0x151   : > { %v1282_v17 = vadd.f32 %v2628_v8, %v1118_v62 }
 0x152   : > { %v2056_v10 = vpop.f32.mrf.mxu0  ;;  %v2036_v4 = vpop.f32.mrf.mxu1 }
 0x153   : > { %v1281_v4 = vadd.f32 %v1254_v3, %v1117_v2 }
 0x154   : > { %v2632_v12 = vpop.f32.mrf.mxu0  ;;  %v2634_v13 = vpop.f32.mrf.mxu1 }
 0x156   : > { %v2059_v14 = vpop.f32.mrf.mxu0  ;;  %v2039_v15 = vpop.f32.mrf.mxu1 }
 0x158   : > { %v2636_v9 = vpop.f32.mrf.mxu0  ;;  %v2638_v18 = vpop.f32.mrf.mxu1 }
 0x15a   : > { %v2060_v19 = vpop.f32.mrf.mxu0  ;;  %v2040_v20 = vpop.f32.mrf.mxu1 }
 0x15c   : > { %v2640_v22 = vpop.f32.mrf.mxu0  ;;  %v1410_v16 = vpop.f32.mrf.mxu1 }
 0x15d   : > { %v1449_v35 = vadd.f32 %v1410_v16, %v1277_v24 }
 0x15e   : > { %v2063_v26 = vpop.f32.mrf.mxu0  ;;  %v2071_v28 = vpop.f32.mrf.mxu1 }
 0x160   : > { %v2643_v29 = vpop.f32.mrf.mxu0  ;;  %v1413_v31 = vpop.f32.mrf.mxu1 }
 0x161   : > { %v1450_v44 = vadd.f32 %v1413_v31, %v1278_v38  ;;  %v1119_v31 = vadd.f32 %v2626_v5, %v2616_v30  ;;  %v1120_v38 = vadd.f32 %v2630_v7, %v2618_v36 }
 0x162   : > { %v2064_v21 = vpop.f32.mrf.mxu0  ;;  %v2072_v33 = vpop.f32.mrf.mxu1 }
 0x164   : > { %v1540_v37 = vpop.f32.mrf.mxu0  ;;  %v1418_v39 = vpop.f32.mrf.mxu1 }
 0x165   : > { %v1579_v42 = vadd.f32 %v1540_v37, %v1449_v35  ;;  %v1451_v57 = vadd.f32 %v1418_v39, %v1279_v54  ;;  %v1283_v35 = vadd.f32 %v2632_v12, %v1119_v31  ;;  %v1121_v54 = vadd.f32 %v2634_v13, %v2620_v41 }
 0x166   : > { %v2095_v43 = vpop.f32.mrf.mxu0  ;;  %v2075_v25 = vpop.f32.mrf.mxu1 }
 0x167   : > { %v1589_v32 = vmax.f32 %v1579_v42, 0.0 }
 0x168   : > { %v1543_v48 = vpop.f32.mrf.mxu0  ;;  %v1421_v49 = vpop.f32.mrf.mxu1 }
 0x169   : > { %1600 = vst.msk [vmem:[#allocation2] sm:$0xff] %vm1599_vm8, %v1589_v32  ;;  %v1580_v55 = vadd.f32 %v1543_v48, %v1450_v44  ;;  %v1452_v58 = vadd.f32 %v1421_v49, %v1280_v61  ;;  %v1284_v44 = vadd.f32 %v2636_v9, %v1120_v38 }
 0x16a   : > { %v2096_v63 = vpop.f32.mrf.mxu0  ;;  %v2076_v1 = vpop.f32.mrf.mxu1 }
 0x16b   : > { %v1590_v56 = vmax.f32 %v1580_v55, 0.0  ;;  %v1285_v63 = vadd.f32 %v2640_v22, %v1121_v54 }
 0x16c   : > { %v1548_v60 = vpop.f32.mrf.mxu0  ;;  %v1426_v50 = vpop.f32.mrf.mxu1 }
 0x16d   : > { %1601 = vst.msk [vmem:[#allocation2 + $0x8] sm:$0xff] %vm1599_vm8, %v1590_v56  ;;  %v1581_v52 = vadd.f32 %v1548_v60, %v1451_v57  ;;  %v1453_v15 = vadd.f32 %v1426_v50, %v1281_v4  ;;  %v1122_v56 = vadd.f32 %v2638_v18, %v2622_v46 }
 0x16e   : > { %v2099_v0 = vpop.f32.mrf.mxu0  ;;  %v2079_v6 = vpop.f32.mrf.mxu1 }
 0x16f   : > { %v1591_v59 = vmax.f32 %v1581_v52, 0.0  ;;  %v1286_v52 = vadd.f32 %v2643_v29, %v1122_v56 }
 0x170   : > { %v1551_v10 = vpop.f32.mrf.mxu0  ;;  %v1429_v11 = vpop.f32.mrf.mxu1 }
 0x171   : > { %1602 = vst.msk [vmem:[#allocation2 + $0x10] sm:$0xff] %vm1599_vm8, %v1591_v59  ;;  %v1582_v51 = vadd.f32 %v1551_v10, %v1452_v58  ;;  %v1454_v23 = vadd.f32 %v1429_v11, %v1282_v17 }
 0x172   : > { %v2100_v14 = vpop.f32.mrf.mxu0  ;;  %v2080_v20 = vpop.f32.mrf.mxu1 }
 0x173   : > { %v1592_v19 = vmax.f32 %v1582_v51, 0.0 }
 0x174   : > { %v1610_v16 = vld [vmem:[#allocation2] ss:$2 sm:$0xff]  ;;  %v1620_v26 = vld [vmem:[#allocation2 + $0x1] ss:$2 sm:$0xff]  ;;  %v1556_v27 = vpop.f32.mrf.mxu0  ;;  %v1434_v3 = vpop.f32.mrf.mxu1 }
 0x175   : > { %v1629_v47 = vmax.f32 %v1610_v16, %v1620_v26  ;;  %1603 = vst.msk [vmem:[#allocation2 + $0x18] sm:$0xff] %vm1599_vm8, %v1592_v19  ;;  %v1583_v28 = vadd.f32 %v1556_v27, %v1453_v15  ;;  %v1455_v39 = vadd.f32 %v1434_v3, %v1283_v35 }
 0x176   : > { %v2103_v24 = vpop.f32.mrf.mxu0  ;;  %v2083_v21 = vpop.f32.mrf.mxu1 }
 0x177   : > { %1634 = vst.msk [vmem:[#allocation3] sm:$0xff] %vm1599_vm8, %v1629_v47  ;;  %v1593_v53 = vmax.f32 %v1583_v28, 0.0 }
 0x178   : > { %v1559_v34 = vpop.f32.mrf.mxu0  ;;  %v1437_v8 = vpop.f32.mrf.mxu1 }
 0x179   : > { %1604 = vst.msk [vmem:[#allocation2 + $0x20] sm:$0xff] %vm1599_vm8, %v1593_v53  ;;  %v1584_v33 = vadd.f32 %v1559_v34, %v1454_v23  ;;  %v1456_v36 = vadd.f32 %v1437_v8, %v1284_v44 }
 0x17a   : > { %v2104_v37 = vpop.f32.mrf.mxu0  ;;  %v2084_v43 = vpop.f32.mrf.mxu1 }
 0x17b   : > { %v1594_v42 = vmax.f32 %v1584_v33, 0.0 }
 0x17c   : > { %v1612_v30 = vld [vmem:[#allocation2 + $0x10] ss:$2 sm:$0xff]  ;;  %v1622_v5 = vld [vmem:[#allocation2 + $0x11] ss:$2 sm:$0xff]  ;;  %v1564_v45 = vpop.f32.mrf.mxu0  ;;  %v1442_v12 = vpop.f32.mrf.mxu1 }
 0x17d   : > { %v1630_v32 = vmax.f32 %v1612_v30, %v1622_v5  ;;  %1605 = vst.msk [vmem:[#allocation2 + $0x28] sm:$0xff] %vm1599_vm8, %v1594_v42  ;;  %v1585_v25 = vadd.f32 %v1564_v45, %v1455_v39  ;;  %v1457_v1 = vadd.f32 %v1442_v12, %v1285_v63 }
 0x17e   : > { %v2107_v48 = vpop.f32.mrf.mxu0  ;;  %v2087_v49 = vpop.f32.mrf.mxu1 }
 0x17f   : > { %1635 = vst.msk [vmem:[#allocation3 + $0x8] sm:$0xff] %vm1599_vm8, %v1630_v32  ;;  %v1595_v7 = vmax.f32 %v1585_v25, 0.0 }
 0x180   : > { %v1567_v55 = vpop.f32.mrf.mxu0  ;;  %v1445_v9 = vpop.f32.mrf.mxu1 }
 0x181   : > { %1606 = vst.msk [vmem:[#allocation2 + $0x30] sm:$0xff] %vm1599_vm8, %v1595_v7  ;;  %v1586_v40 = vadd.f32 %v1567_v55, %v1456_v36  ;;  %v1458_v58 = vadd.f32 %v1445_v9, %v1286_v52 }
 0x182   : > { %v2108_v57 = vpop.f32.mrf.mxu0  ;;  %v2088_v61 = vpop.f32.mrf.mxu1 }
 0x183   : > { %v1596_v60 = vmax.f32 %v1586_v40, 0.0 }
 0x184   : > { %v1614_v41 = vld [vmem:[#allocation2 + $0x20] ss:$2 sm:$0xff]  ;;  %v1624_v13 = vld [vmem:[#allocation2 + $0x21] ss:$2 sm:$0xff]  ;;  %v1572_v50 = vpop.f32.mrf.mxu0 }
 0x185   : > { %v1631_v0 = vmax.f32 %v1614_v41, %v1624_v13  ;;  %1607 = vst.msk [vmem:[#allocation2 + $0x38] sm:$0xff] %vm1599_vm8, %v1596_v60  ;;  %v1587_v22 = vadd.f32 %v1572_v50, %v1457_v1 }
 0x186   : > { %v2111_v2 = vpop.f32.mrf.mxu0 }
 0x187   : > { %1636 = vst.msk [vmem:[#allocation3 + $0x10] sm:$0xff] %vm1599_vm8, %v1631_v0  ;;  %v1597_v59 = vmax.f32 %v1587_v22, 0.0 }
 0x188   : > { %v1575_v6 = vpop.f32.mrf.mxu0 }
 0x189   : > { %1608 = vst.msk [vmem:[#allocation2 + $0x40] sm:$0xff] %vm1599_vm8, %v1597_v59  ;;  %v1588_v46 = vadd.f32 %v1575_v6, %v1458_v58 }
 0x18a   : > { %v2112_v18 = vpop.f32.mrf.mxu0 }
 0x18b   : > { %v1598_v10 = vmax.f32 %v1588_v46, 0.0 }
 0x18c   : > { %v1616_v4 = vld [vmem:[#allocation2 + $0x30] ss:$2 sm:$0xff]  ;;  %v1626_v11 = vld [vmem:[#allocation2 + $0x31] ss:$2 sm:$0xff] }
 0x18d   : > { %v1632_v51 = vmax.f32 %v1616_v4, %v1626_v11  ;;  %1609 = vst.msk [vmem:[#allocation2 + $0x48] sm:$0xff] %vm1599_vm8, %v1598_v10 }
 0x18f   : > { %1637 = vst.msk [vmem:[#allocation3 + $0x18] sm:$0xff] %vm1599_vm8, %v1632_v51 }
 0x194   : > { %v1618_v29 = vld [vmem:[#allocation2 + $0x40] ss:$2 sm:$0xff]  ;;  %v1628_v14 = vld [vmem:[#allocation2 + $0x41] ss:$2 sm:$0xff] }
 0x195   : > { %v1633_v62 = vmax.f32 %v1618_v29, %v1628_v14 }
 0x197   : > { %1638 = vst.msk [vmem:[#allocation3 + $0x20] sm:$0xff] %vm1599_vm8, %v1633_v62 }
 0x198 LB: >> { %s1645_s9 = smul.u32 10, %s2196_s8  ;;  %s1830_s10 = sshll.u32 %s2196_s8, 1  ;;  %vm1657_vm9 = vcmask 517120   ;;  %s2196_s8 = sphi %s2194_s8, %s1644_s8  }
 0x199   : >> { %s1656_s13 = scalar_lea.vmem %s2248_s24, %s1830_s10  ;;  %s1644_s8 = sadd.s32 1, %s2196_s8  }
 0x19a   : >> { %s1646_s11 = scalar_lea.vmem [#allocation3], %s1645_s9  ;;  %p1641_p4 = scmp.ge.s32.totalorder %s1644_s8, 4  }
 0x19e   : >> { %v1647_v15 = vld [vmem:[%s1646_s11] sm:$0xf]  ;;  %v1829_v19 = vld [vmem:[%s1646_s11 + $0x5] sm:$0xf] }
 0x19f   : >> { %v1653_v20 = vmax.f32 %v1647_v15, %v1829_v19  ;;  %1643 = sbr.rel (!%p1641_p4) target bundleno = 408 (0x198), region = 81 }
 0x1a1   : >> { %v1654_v16 = vpack.c.bf16 %v1653_v20, %v1653_v20 }
 0x1a3   : >> { %1658 = vst.msk [vmem:[%s1656_s13] sm:$0x3] %vm1657_vm9, %v1654_v16 }
 0x1a4 PF: > { %s13_s12 = sadd.s32 1, %s2192_s12  }
 0x1a5   : > { %p10_p5 = scmp.ge.s32.totalorder %s13_s12, 4  }
 0x1a7   :  { %12 = sbr.rel (!%p10_p5) target bundleno = 1 (0x1), region = 92 }

// kernel: video_comperator_forward.5
= control target key start
LH: loop header
LB: loop body
LE: loop exit
PB: predicated region body
PF: predicated region fallthrough
CT: control target
= control target key end

     0   :  { %s1599_s20 = smov 0   ;;  %s1808_s0 = inlined_call_operand.vmem [shape: bf16[2,42,64], index: 0, kind: input, shape index: {}]   ;;  %s1809_s1 = inlined_call_operand.vmem [shape: bf16[576,128], index: 1, kind: input, shape index: {}]   ;;  %s1810_s2 = inlined_call_operand.vmem [shape: f32[1,128], index: 2, kind: input, shape index: {}]   ;;  %s1811_s3 = inlined_call_operand.vmem [shape: f32[1,128], index: 3, kind: input, shape index: {}]   ;;  %s1812_s4 = inlined_call_operand.<no memory space> [shape: f32[1,1], index: 4, kind: input, shape index: {}]   ;;  %s1813_s5 = inlined_call_operand.vmem [shape: f32[2,24,1], index: 5, kind: output, shape index: {}]  }
   0x1   :  { %v10_v0 = vstv %s1812_s4 }
   0x2   :  { %11 = vst [vmem:[#allocation2] sm:$0x1] %v10_v0 }
   0x3 LB: > { %s1257_s21 = sadd.s32 4294967295, %s1564_s20   ;;  %p1261_p0 = scmp.ge.s32.totalorder %s1564_s20, 1  ;;  %s1564_s20 = sphi %s1599_s20, %s17_s20  }
   0x4   : > { %p189_p1 = scmp.lt.s32.totalorder %s1564_s20, 3 }
   0x6   : > { %p190_p2 = pnand %p1261_p0, %p189_p1 }
   0x7   : > { %p217_p3 = scmp.lt.s32.totalorder (!%p190_p2), %s1257_s21, 1 }
   0x8   : > { %193 = sbr.rel (%p190_p2) target bundleno = 440 (0x1b8), region = 40 }
   0xd   : > { %v1508_v1 = vld [vmem:[%s1809_s1 + $0x18] sm:$0xff]   ;;  %v1510_v3 = vld [vmem:[%s1809_s1 + $0x10] sm:$0xff]   ;;  %s1815_s21 = smov (!%p217_p3, %s1257_s21), 1  ;;  %v1512_v5 = vld [vmem:[%s1809_s1 + $0x8] sm:$0xff]   ;;  %vm272_vm0 = vcmask 523264   ;;  %vm467_vm2 = vcmask 1046528  }
   0xe   : > { %v1509_v2 = vld [vmem:[%s1809_s1 + $0x38] sm:$0xff]   ;;  %1391 = vmatprep.subr.bf16.mxu0 %v1508_v1  ;;  %v1511_v4 = vld [vmem:[%s1809_s1 + $0x30] sm:$0xff]   ;;  %s1499_s6 = smul.u32 24, %s1815_s21  ;;  %v1513_v6 = vld [vmem:[%s1809_s1 + $0x28] sm:$0xff]   ;;  %vm358_vm1 = vsmask.f32 7424 }
   0xf   : > { %1392 = vmatpush3.bf16.msra.mxu0 %v1508_v1  ;;  %1403 = vmatprep.subr.bf16.mxu1 %v1509_v2  ;;  %v1514_v7 = vld [vmem:[%s1809_s1] sm:$0xff]   ;;  %v1518_v10 = vld [vmem:[%s1809_s1 + $0x58] sm:$0xff]   ;;  %v1522_v25 = vld [vmem:[%s1809_s1 + $0x50] sm:$0xff]   ;;  %vm568_vm3 = vcmask 1044480   ;;  %vm665_vm4 = vsmask.f32 4352 }
  0x10   : > { %1404 = vmatpush3.bf16.msra.mxu1 %v1509_v2  ;;  %1393 = vmatprep.subr.bf16.mxu0 %v1510_v3  ;;  %s1636_s13 = scalar_lea.vmem %s1808_s0, %s1499_s6  ;;  %v1515_v9 = vld [vmem:[%s1809_s1 + $0x20] sm:$0xff]   ;;  %v1521_v17 = vld [vmem:[%s1809_s1 + $0x78] sm:$0xff]   ;;  %v1523_v28 = vld [vmem:[%s1809_s1 + $0x70] sm:$0xff]   ;;  %vm877_vm5 = vcmask 1045504   ;;  %vm974_vm6 = vsmask.f32 5376  ;;  %s226_s10 = scalar_lea.vmem %s1813_s5, %s1499_s6 }
  0x11   : > { %1405 = vmatprep.subr.bf16.mxu1 %v1511_v4  ;;  %v1516_v8 = vld [vmem:[%s1636_s13] sm:$0xff]   ;;  %v1651_v13 = vld [vmem:[%s1636_s13 + $0x8] sm:$0xf]  ;;  %v339_v14 = vld [vmem:[%s1636_s13 + $0xc] sm:$0x1]  ;;  %vm1198_vm7 = vcmask 7168  }
  0x12   : > { %1399 = vmatprep.mubr.msk.bf16.mxu0 %vm272_vm0, %v1516_v8  ;;  %v336_v11 = vld [vmem:[%s1636_s13] sm:$0xf]  ;;  %v1648_v12 = vld [vmem:[%s1636_s13 + $0x4] sm:$0xf]  ;;  %v1656_v16 = vcombine.low %v1651_v13, %v339_v14  ;;  %v1517_v18 = vld [vmem:[%s1636_s13 + $0x8] ss:$0 sps:$4 sm:$0xff]  }
  0x13   : > { %1394 = vmatpush3.bf16.msra.mxu0 %v1510_v3  ;;  %v1273_v15 = vcombine.low %v336_v11, %v1648_v12  ;;  %v455_v29 = vld [vmem:[%s1636_s13] sm:$0xe]  ;;  %v1524_v31 = vld [vmem:[%s1809_s1 + $0x48] sm:$0xff]   ;;  %v1529_v48 = vld [vmem:[%s1809_s1 + $0x98] sm:$0xff]   ;;  %v1303_v0 = vcombine.low %v1648_v12, %v1651_v13 }
  0x14   : > { %1406 = vmatpush3.bf16.msra.mxu1 %v1511_v4  ;;  %1395 = vmatprep.subr.bf16.mxu0 %v1512_v5  ;;  %v367_v21 = vshll.u32 %v1656_v16, 16  ;;  %v371_v22 = vshrl.u32 %v1656_v16, 16  ;;  %v1281_v32 = vcombine.low %v455_v29, %v1648_v12  ;;  %v469_v33 = vrot.slane %v1656_v16, 1  ;;  %v552_v34 = vld [vmem:[%s1636_s13] sm:$0x8]  ;;  %v1525_v39 = vld [vmem:[%s1809_s1 + $0x68] sm:$0xff]  }
  0x15   : > { %1407 = vmatprep.subr.bf16.mxu1 %v1513_v6  ;;  %v360_v19 = vshrl.u32 %v1273_v15, 16  ;;  %v362_v20 = vshll.u32 %v1273_v15, 16  ;;  %v553_v35 = vld [vmem:[%s1636_s13 + $0xc] sm:$0x7]  ;;  %v1288_v37 = vcombine.low %v552_v34, %v1648_v12  ;;  %v1526_v40 = vld [vmem:[%s1809_s1 + $0x40] sm:$0xff]   ;;  %v1532_v53 = vld [vmem:[%s1809_s1 + $0xb8] sm:$0xff]  }
  0x16   : > { %v369_v24 = vrot.slane %v367_v21, 1  ;;  %v468_v36 = vrot.slane %v1281_v32, 1  ;;  %v1289_v38 = vcombine.low %v1651_v13, %v553_v35  ;;  %v1527_v46 = vld [vmem:[%s1809_s1 + $0x60] sm:$0xff]   ;;  %v1700_v49 = vld [vmem:[%s1636_s13 + $0xc] sm:$0xf]  ;;  %v1533_v54 = vld [vmem:[%s1809_s1 + $0x90] sm:$0xff]  }
  0x17   : > { %1396 = vmatpush3.bf16.msra.mxu0 %v1512_v5  ;;  %v364_v23 = vrot.slane %v362_v20, 1  ;;  %v569_v42 = vrot.slane %v1288_v37, 3  ;;  %v667_v45 = vshrl.u32 %v1288_v37, 16  ;;  %v670_v47 = vshll.u32 %v1288_v37, 16  ;;  %v1534_v60 = vld [vmem:[%s1809_s1 + $0xb0] sm:$0xff]   ;;  %v1535_v62 = vld [vmem:[%s1809_s1 + $0x88] sm:$0xff]  }
  0x18   : > { %1408 = vmatpush3.bf16.msra.mxu1 %v1513_v6  ;;  %1397 = vmatprep.subr.bf16.mxu0 %v1514_v7  ;;  %v373_v27 = vor.u32 %v371_v22, %v369_v24  ;;  %v470_v41 = vsel %vm467_vm2, %v468_v36, %v469_v33  ;;  %v570_v43 = vrot.slane %v1289_v38, 3  ;;  %v1296_v50 = vcombine.low %v1651_v13, %v1700_v49  ;;  %v855_v1 = vld [vmem:[%s1636_s13 + $0x4] sm:$0xc]  ;;  %v1722_v2 = vld [vmem:[%s1636_s13 + $0x8] sm:$0xf]  ;;  %v1540_v16 = vld [vmem:[%s1809_s1 + $0xd8] sm:$0xff]  }
  0x19   : > { %1409 = vmatprep.subr.bf16.mxu1 %v1515_v9  ;;  %v365_v26 = vor.u32 %v364_v23, %v360_v19  ;;  %v669_v51 = vrot.slane %v667_v45, 3  ;;  %v672_v52 = vrot.slane %v670_v47, 4  ;;  %v857_v3 = vld [vmem:[%s1636_s13 + $0xc] sm:$0xf]  ;;  %v858_v4 = vld [vmem:[%s1636_s13 + $0x10] sm:$0x3]  ;;  %v1311_v5 = vcombine.low %v855_v1, %v1722_v2 }
  0x1a   : > { %v571_v44 = vsel %vm568_vm3, %v569_v42, %v570_v43  ;;  %v675_v55 = vshrl.u32 %v1296_v50, 16  ;;  %v678_v56 = vshll.u32 %v1296_v50, 16  ;;  %v962_v6 = vld [vmem:[%s1636_s13 + $0x10] sm:$0x7]  ;;  %v1536_v8 = vld [vmem:[%s1809_s1 + $0xa8] sm:$0xff]   ;;  %v1538_v15 = vld [vmem:[%s1809_s1 + $0xa0] sm:$0xff]  }
  0x1b   : > { %1398 = vmatpush3.bf16.msra.mxu0 %v1514_v7  ;;  %v370_v30 = vsel %vm358_vm1, %v365_v26, %v369_v24  ;;  %v673_v57 = vor.u32 %v672_v52, %v669_v51  ;;  %v1730_v7 = vcombine.low %v857_v3, %v962_v6  ;;  %v976_v11 = vshrl.u32 %v1311_v5, 16  ;;  %v1543_v23 = vld [vmem:[%s1809_s1 + $0xf8] sm:$0xff]   ;;  %v1544_v24 = vld [vmem:[%s1809_s1 + $0xd0] sm:$0xff]   ;;  %v1073_v32 = vld [vmem:[%s1636_s13 + $0x4] sm:$0x8] }
  0x1c   : > { %1410 = vmatpush3.bf16.msra.mxu1 %v1515_v9  ;;  %1415 = vmatprep.subr.bf16.mxu0 %v1518_v10  ;;  %v677_v58 = vrot.slane %v675_v55, 3  ;;  %v680_v59 = vrot.slane %v678_v56, 4  ;;  %v1537_v9 = vld [vmem:[%s1809_s1 + $0x80] sm:$0xff]   ;;  %v979_v12 = vshll.u32 %v1311_v5, 16  ;;  %v1545_v29 = vld [vmem:[%s1809_s1 + $0xf0] sm:$0xff]   ;;  %v1326_v35 = vcombine.low %v1073_v32, %v1722_v2  ;;  %v1553_v37 = vld [vmem:[%s1809_s1 + $0x118] sm:$0xff]  }
  0x1d   : > { %1427 = vmatprep.subr.bf16.mxu1 %v1521_v17  ;;  %1411 = vmatprep.mubr.msk.bf16.mxu1 %vm272_vm0, %v370_v30  ;;  %v984_v13 = vshrl.u32 %v1730_v7, 16  ;;  %v987_v14 = vshll.u32 %v1730_v7, 16  ;;  %v978_v19 = vrot.slane %v976_v11, 2  ;;  %v1546_v30 = vld [vmem:[%s1809_s1 + $0xc8] sm:$0xff]   ;;  %v1548_v34 = vld [vmem:[%s1809_s1 + $0xc0] sm:$0xff]  }
  0x1e   : > { %1400 = vmatmul.mubr.msk.bf16.vlgmr.msra.gmra.mxu0 %vm272_vm0, %v1517_v18  ;;  %v681_v61 = vor.u32 %v680_v59, %v677_v58  ;;  %v981_v20 = vrot.slane %v979_v12, 3  ;;  %v1549_v36 = vld [vmem:[%s1809_s1 + $0xe0] sm:$0xff]   ;;  %v1085_v38 = vrot.slane %v1326_v35, 3  ;;  %v1555_v42 = vld [vmem:[%s1809_s1 + $0x108] sm:$0xff]  }
  0x1f   : > { %1416 = vmatpush3.bf16.msra.mxu0 %v1518_v10  ;;  %1412 = vmatmul.mubr.msk.bf16.vlgmr.msra.gmra.mxu1 %vm272_vm0, %v373_v27  ;;  %v1312_v10 = vcombine.low %v857_v3, %v858_v4  ;;  %v986_v21 = vrot.slane %v984_v13, 2  ;;  %v989_v22 = vrot.slane %v987_v14, 3 }
  0x20   : > { %1417 = vmatprep.subr.bf16.mxu0 %v1522_v25  ;;  %1428 = vmatpush3.bf16.msra.mxu1 %v1521_v17  ;;  %v682_v63 = vsel %vm665_vm4, %v673_v57, %v681_v61  ;;  %v878_v17 = vrot.slane %v1311_v5, 2  ;;  %v982_v27 = vor.u32 %v981_v20, %v978_v19 }
  0x21   : > { %1429 = vmatprep.subr.bf16.mxu1 %v1523_v28  ;;  %1423 = vmatprep.mubr.msk.bf16.mxu0 %vm272_vm0, %v470_v41  ;;  %v879_v18 = vrot.slane %v1312_v10, 2 }
  0x22   : > { %1435 = vmatprep.mubr.msk.bf16.mxu1 %vm272_vm0, %v571_v44 }
  0x23   : > { %1418 = vmatpush3.bf16.msra.mxu0 %v1522_v25  ;;  %v1304_v25 = vcombine.low %v1700_v49, %v1700_v49  ;;  %v880_v26 = vsel %vm877_vm5, %v878_v17, %v879_v18 }
  0x24   : > { %1419 = vmatprep.subr.bf16.mxu0 %v1524_v31  ;;  %1430 = vmatpush3.bf16.msra.mxu1 %v1523_v28  ;;  %v990_v28 = vor.u32 %v989_v22, %v986_v21 }
  0x25   : > { %1431 = vmatprep.subr.bf16.mxu1 %v1525_v39 }
  0x27   : > { %1420 = vmatpush3.bf16.msra.mxu0 %v1524_v31  ;;  %v991_v31 = vsel %vm974_vm6, %v982_v27, %v990_v28 }
  0x28   : > { %1421 = vmatprep.subr.bf16.mxu0 %v1526_v40  ;;  %1432 = vmatpush3.bf16.msra.mxu1 %v1525_v39  ;;  %v1086_v39 = vrot.slane %v1730_v7, 3 }
  0x29   : > { %1433 = vmatprep.subr.bf16.mxu1 %v1527_v46 }
  0x2a   : > { %v1087_v41 = vsel %vm568_vm3, %v1085_v38, %v1086_v39 }
  0x2b   : > { %1422 = vmatpush3.bf16.msra.mxu0 %v1526_v40  ;;  %v1554_v40 = vld [vmem:[%s1809_s1 + $0x110] sm:$0xff]  }
  0x2c   : > { %1439 = vmatprep.subr.bf16.mxu0 %v1529_v48  ;;  %1434 = vmatpush3.bf16.msra.mxu1 %v1527_v46 }
  0x2d   : > { %1451 = vmatprep.subr.bf16.mxu1 %v1532_v53 }
  0x2e   : > { %1424 = vmatmul.mubr.msk.bf16.vlgmr.msra.gmra.mxu0 %vm272_vm0, %v469_v33  ;;  %v1547_v33 = vld [vmem:[%s1809_s1 + $0xe8] sm:$0xff]  }
  0x2f   : > { %1440 = vmatpush3.bf16.msra.mxu0 %v1529_v48  ;;  %1436 = vmatmul.mubr.msk.bf16.vlgmr.msra.gmra.mxu1 %vm272_vm0, %v570_v43  ;;  %v1556_v43 = vld [vmem:[%s1809_s1 + $0x100] sm:$0xff]  }
  0x30   : > { %1441 = vmatprep.subr.bf16.mxu0 %v1533_v54  ;;  %1447 = vmatprep.mubr.msk.bf16.mxu0 %vm272_vm0, %v682_v63 }
  0x31   : > { %1452 = vmatpush3.bf16.msra.mxu1 %v1532_v53  ;;  %1459 = vmatprep.mubr.msk.bf16.mxu1 %vm272_vm0, %v1303_v0  ;;  %v1272_v0 = vld [vmem:[%s1810_s2] ss:$0 sm:$0xff] }
  0x32   : > { %1453 = vmatprep.subr.bf16.mxu1 %v1534_v60 }
  0x33   : > { %1442 = vmatpush3.bf16.msra.mxu0 %v1533_v54 }
  0x34   : > { %1443 = vmatprep.subr.bf16.mxu0 %v1535_v62 }
  0x35   : > { %1454 = vmatpush3.bf16.msra.mxu1 %v1534_v60 }
  0x36   : > { %1455 = vmatprep.subr.bf16.mxu1 %v1536_v8 }
  0x37   : > { %1444 = vmatpush3.bf16.msra.mxu0 %v1535_v62 }
  0x38   : > { %1445 = vmatprep.subr.bf16.mxu0 %v1537_v9 }
  0x39   : > { %1456 = vmatpush3.bf16.msra.mxu1 %v1536_v8 }
  0x3a   : > { %1457 = vmatprep.subr.bf16.mxu1 %v1538_v15 }
  0x3b   : > { %1446 = vmatpush3.bf16.msra.mxu0 %v1537_v9 }
  0x3c   : > { %1463 = vmatprep.subr.bf16.mxu0 %v1540_v16 }
  0x3d   : > { %1458 = vmatpush3.bf16.msra.mxu1 %v1538_v15 }
  0x3e   : > { %1448 = vmatmul.mubr.msk.bf16.vlgmr.msra.gmra.mxu0 %vm272_vm0, %v681_v61  ;;  %1475 = vmatprep.subr.bf16.mxu1 %v1543_v23 }
  0x3f   : > { %1464 = vmatpush3.bf16.msra.mxu0 %v1540_v16  ;;  %1471 = vmatprep.mubr.msk.bf16.mxu0 %vm272_vm0, %v880_v26 }
  0x40   : > { %1465 = vmatprep.subr.bf16.mxu0 %v1544_v24  ;;  %1460 = vmatmul.mubr.msk.bf16.vlgmr.msra.gmra.mxu1 %vm272_vm0, %v1304_v25 }
  0x41   : > { %1476 = vmatpush3.bf16.msra.mxu1 %v1543_v23  ;;  %1483 = vmatprep.mubr.msk.bf16.mxu1 %vm272_vm0, %v991_v31 }
  0x42   : > { %1477 = vmatprep.subr.bf16.mxu1 %v1545_v29 }
  0x43   : > { %1466 = vmatpush3.bf16.msra.mxu0 %v1544_v24 }
  0x44   : > { %1467 = vmatprep.subr.bf16.mxu0 %v1546_v30 }
  0x45   : > { %1478 = vmatpush3.bf16.msra.mxu1 %v1545_v29 }
  0x46   : > { %1479 = vmatprep.subr.bf16.mxu1 %v1547_v33 }
  0x47   : > { %1468 = vmatpush3.bf16.msra.mxu0 %v1546_v30 }
  0x48   : > { %1469 = vmatprep.subr.bf16.mxu0 %v1548_v34 }
  0x49   : > { %1480 = vmatpush3.bf16.msra.mxu1 %v1547_v33 }
  0x4a   : > { %1481 = vmatprep.subr.bf16.mxu1 %v1549_v36 }
  0x4b   : > { %1470 = vmatpush3.bf16.msra.mxu0 %v1548_v34 }
  0x4c   : > { %1487 = vmatprep.subr.bf16.mxu0 %v1553_v37 }
  0x4d   : > { %1482 = vmatpush3.bf16.msra.mxu1 %v1549_v36 }
  0x4e   : > { %1472 = vmatmul.mubr.msk.bf16.vlgmr.msra.gmra.mxu0 %vm272_vm0, %v879_v18 }
  0x4f   : > { %1488 = vmatpush3.bf16.msra.mxu0 %v1553_v37  ;;  %1495 = vmatprep.mubr.msk.bf16.mxu0 %vm272_vm0, %v1087_v41 }
  0x50   : > { %1489 = vmatprep.subr.bf16.mxu0 %v1554_v40  ;;  %1484 = vmatmul.mubr.msk.bf16.vlgmr.msra.gmra.mxu1 %vm272_vm0, %v990_v28 }
  0x53   : > { %1490 = vmatpush3.bf16.msra.mxu0 %v1554_v40 }
  0x54   : > { %1491 = vmatprep.subr.bf16.mxu0 %v1555_v42 }
  0x57   : > { %1492 = vmatpush3.bf16.msra.mxu0 %v1555_v42 }
  0x58   : > { %1493 = vmatprep.subr.bf16.mxu0 %v1556_v43 }
  0x5b   : > { %1494 = vmatpush3.bf16.msra.mxu0 %v1556_v43 }
  0x5e   : > { %1496 = vmatmul.mubr.msk.bf16.vlgmr.msra.gmra.mxu0 %vm272_vm0, %v1086_v39  ;;  %v1333_v39 = vld [vmem:[%s1811_s3] ss:$0 sm:$0xff] }
  0xde   : > { %v1401_v44 = vpop.f32.mrf.mxu0 }
  0xdf   : > { %v1413_v46 = vpop.f32.mrf.mxu1  ;;  %v335_v3 = vadd.f32 %v1401_v44, %v1272_v0 }
  0xe0   : > { %v313_v45 = vpop.f32.mrf.mxu0 }
  0xe1   : > { %v438_v48 = vpop.f32.mrf.mxu1  ;;  %v333_v4 = vadd.f32 %v1272_v0, %v313_v45  ;;  %v454_v5 = vadd.f32 %v1413_v46, %v335_v3 }
  0xe2   : > { %v1402_v47 = vpop.f32.mrf.mxu0 }
  0xe3   : > { %v1414_v49 = vpop.f32.mrf.mxu1  ;;  %v452_v7 = vadd.f32 %v438_v48, %v333_v4 }
  0xe4   : > { %v316_v50 = vpop.f32.mrf.mxu0 }
  0xe5   : > { %v441_v52 = vpop.f32.mrf.mxu1  ;;  %v334_v8 = vadd.f32 %v1272_v0, %v316_v50 }
  0xe7   : > { %v453_v14 = vadd.f32 %v441_v52, %v334_v8 }
  0xee   : > { %v1425_v51 = vpop.f32.mrf.mxu0 }
  0xef   : > { %v1437_v54 = vpop.f32.mrf.mxu1  ;;  %v551_v9 = vadd.f32 %v1425_v51, %v454_v5  ;;  %v1334_v51 = vld [vmem:[#allocation2] ss:$0 sm:$0xff] }
  0xf0   : > { %v535_v53 = vpop.f32.mrf.mxu0 }
  0xf1   : > { %v636_v56 = vpop.f32.mrf.mxu1  ;;  %v549_v11 = vadd.f32 %v535_v53, %v452_v7  ;;  %v652_v15 = vadd.f32 %v1437_v54, %v551_v9 }
  0xf2   : > { %v1426_v55 = vpop.f32.mrf.mxu0 }
  0xf3   : > { %v1438_v57 = vpop.f32.mrf.mxu1  ;;  %v650_v18 = vadd.f32 %v636_v56, %v549_v11 }
  0xf4   : > { %v538_v58 = vpop.f32.mrf.mxu0 }
  0xf5   : > { %v639_v60 = vpop.f32.mrf.mxu1  ;;  %v550_v19 = vadd.f32 %v538_v58, %v453_v14 }
  0xf7   : > { %v651_v24 = vadd.f32 %v639_v60, %v550_v19 }
  0xfe   : > { %v1449_v59 = vpop.f32.mrf.mxu0 }
  0xff   : > { %v763_v20 = vadd.f32 %v1449_v59, %v652_v15 }
 0x100   : > { %v747_v61 = vpop.f32.mrf.mxu0  ;;  %v1461_v62 = vpop.f32.mrf.mxu1 }
 0x101   : > { %v761_v22 = vadd.f32 %v747_v61, %v650_v18  ;;  %v854_v25 = vadd.f32 %v1461_v62, %v763_v20 }
 0x102   : > { %v1450_v63 = vpop.f32.mrf.mxu0  ;;  %v838_v1 = vpop.f32.mrf.mxu1 }
 0x103   : > { %v852_v26 = vadd.f32 %v838_v1, %v761_v22 }
 0x104   : > { %v1462_v2 = vpop.f32.mrf.mxu1  ;;  %v750_v6 = vpop.f32.mrf.mxu0 }
 0x105   : > { %v762_v27 = vadd.f32 %v750_v6, %v651_v24 }
 0x106   : > { %v841_v12 = vpop.f32.mrf.mxu1 }
 0x107   : > { %v853_v31 = vadd.f32 %v841_v12, %v762_v27 }
 0x10e   : > { %v1473_v10 = vpop.f32.mrf.mxu0 }
 0x10f   : > { %v961_v28 = vadd.f32 %v1473_v10, %v854_v25 }
 0x110   : > { %v945_v13 = vpop.f32.mrf.mxu0  ;;  %v1485_v16 = vpop.f32.mrf.mxu1 }
 0x111   : > { %v959_v29 = vadd.f32 %v945_v13, %v852_v26  ;;  %v1072_v32 = vadd.f32 %v1485_v16, %v961_v28 }
 0x112   : > { %v1474_v17 = vpop.f32.mrf.mxu0  ;;  %v1056_v21 = vpop.f32.mrf.mxu1 }
 0x113   : > { %v1070_v34 = vadd.f32 %v1056_v21, %v959_v29 }
 0x114   : > { %v1486_v23 = vpop.f32.mrf.mxu1  ;;  %v948_v30 = vpop.f32.mrf.mxu0 }
 0x115   : > { %v960_v35 = vadd.f32 %v948_v30, %v853_v31 }
 0x116   : > { %v1059_v37 = vpop.f32.mrf.mxu1 }
 0x117   : > { %v1071_v43 = vadd.f32 %v1059_v37, %v960_v35 }
 0x11e   : > { %v1497_v33 = vpop.f32.mrf.mxu0 }
 0x11f   : > { %v1168_v36 = vadd.f32 %v1497_v33, %v1072_v32 }
 0x120   : > { %v1152_v38 = vpop.f32.mrf.mxu0 }
 0x121   : > { %v1171_v40 = vmax.f32 %v1168_v36, 0.0  ;;  %v1166_v41 = vadd.f32 %v1152_v38, %v1070_v34 }
 0x122   : > { %v1498_v42 = vpop.f32.mrf.mxu0 }
 0x123   : > { %v1169_v44 = vmax.f32 %v1166_v41, 0.0  ;;  %v1181_v45 = vmul.f32 %v1333_v39, %v1171_v40 }
 0x124   : > { %v1155_v46 = vpop.f32.mrf.mxu0 }
 0x125   : > { %v1167_v47 = vadd.f32 %v1155_v46, %v1071_v43  ;;  %1186 = vadd.xlane.f32.xlu1 %v1181_v45  ;;  %v1179_v48 = vmul.f32 %v1333_v39, %v1169_v44 }
 0x127   : > { %v1170_v49 = vmax.f32 %v1167_v47, 0.0  ;;  %1182 = vadd.xlane.f32.xlu0 %v1179_v48 }
 0x129   : > { %v1180_v50 = vmul.f32 %v1333_v39, %v1170_v49 }
 0x12b   : > { %1184 = vadd.xlane.f32.xlu0 %v1180_v50 }
 0x1ae   : > { %v1187_v52 = vpop.xlane.xlu1 %1186 }
 0x1af   : > { %v1197_v53 = vadd.f32 %v1334_v51, %v1187_v52 }
 0x1b0   : > { %v1183_v54 = vpop.xlane.xlu0 %1182 }
 0x1b1   : > { %1201 = vst.msk [vmem:[%s226_s10 + $0x10] sm:$0xff] %vm1198_vm7, %v1197_v53  ;;  %v1195_v55 = vadd.f32 %v1334_v51, %v1183_v54 }
 0x1b3   : > { %1199 = vst.msk [vmem:[%s226_s10] sm:$0xff] %vm1198_vm7, %v1195_v55 }
 0x1b4   : > { %v1185_v56 = vpop.xlane.xlu0 %1184 }
 0x1b5   : > { %v1196_v57 = vadd.f32 %v1334_v51, %v1185_v56 }
 0x1b7   : > { %1200 = vst.msk [vmem:[%s226_s10 + $0x8] sm:$0xff] %vm1198_vm7, %v1196_v57 }
 0x1b8 PF: > { %s17_s20 = sadd.s32 1, %s1564_s20  }
 0x1b9   : > { %p14_p4 = scmp.ge.s32.totalorder %s17_s20, 4  }
 0x1bb   :  { %16 = sbr.rel (!%p14_p4) target bundleno = 3 (0x3), region = 70 }

</bundles_post_ra>
